<compile_context>
chip_gen: v7x
topology: tpu7x:2x2x1
jax: 0.10.0
libtpu: 0.0.40
codegen_flags: <defaults>
</compile_context>

<pallas_src>
import functools

import jax
import jax.numpy as jnp
from jax.experimental import pallas as pl
from jax.experimental.pallas import tpu as pltpu  # noqa: F401  (kept per template)


_PACKED_COLS = 128  # lane-aligned width of the packed-parameter buffer


def _packed_rows(C):
    """Row offsets of each parameter block inside the packed (rows, 128) buffer."""
    rows = {
        "dw1": 0,            # (9, C)  depthwise-1 taps, row t = 3*ki + kj
        "pw1": 9,            # (C, C)  pointwise-1 weights with BN1 scale folded in
        "b1": 9 + C,         # (1, C)  BN1 bias
        "dw2": 10 + C,       # (9, C)  depthwise-2 taps
        "pw2": 19 + C,       # (C, C)  pointwise-2 weights with BN2 scale folded in
        "b2": 19 + 2 * C,    # (1, C)  BN2 bias
        "wf": 20 + 2 * C,    # (C, K)  w_proj @ w_lin   (projection folded past the pool)
        "bf": 20 + 3 * C,    # (1, K)  b_proj @ w_lin + b_lin
    }
    total = 21 + 3 * C
    return rows, total


# ----------------------------- fused Pallas kernel -----------------------------

def _ofa_fused_kernel(x_ref, p_ref, o_ref):
    # x: (B, H, W, C) NHWC f32.  p: packed parameters (rows, 128).  o: (B, K) logits.
    B, H, W, C = x_ref.shape
    Ho, Wo = H // 2, W // 2
    K = o_ref.shape[1]
    R, _ = _packed_rows(C)
    f32 = jnp.float32

    # ---- parameter slices, hoisted once (static row/col offsets) ----
    dw1 = p_ref[R["dw1"]:R["dw1"] + 9, 0:C]        # (9, C)
    pw1 = p_ref[R["pw1"]:R["pw1"] + C, 0:C]        # (C, C)
    b1 = p_ref[R["b1"]:R["b1"] + 1, 0:C]           # (1, C)
    dw2 = p_ref[R["dw2"]:R["dw2"] + 9, 0:C]        # (9, C)
    pw2 = p_ref[R["pw2"]:R["pw2"] + C, 0:C]        # (C, C)
    b2 = p_ref[R["b2"]:R["b2"] + 1, 0:C]           # (1, C)
    wf = p_ref[R["wf"]:R["wf"] + C, 0:K]           # (C, K)
    bf = p_ref[R["bf"]:R["bf"] + 1, 0:K]           # (1, K)

    # ---- depthwise 3x3, stride 2, pad 1: even/odd phase decomposition ----
    # in_row = 2*io + ki - 1, in_col = 2*jo + kj - 1  ->  4 parity planes, 9 shifted taps.
    x_ee = x_ref[:, pl.ds(0, Ho, 2), pl.ds(0, Wo, 2), :].astype(f32)
    x_eo = x_ref[:, pl.ds(0, Ho, 2), pl.ds(1, Wo, 2), :].astype(f32)
    x_oe = x_ref[:, pl.ds(1, Ho, 2), pl.ds(0, Wo, 2), :].astype(f32)
    x_oo = x_ref[:, pl.ds(1, Ho, 2), pl.ds(1, Wo, 2), :].astype(f32)

    def shift_h(t):  # t[:, io] -> t[:, io-1], zero row at io == 0
        return jnp.concatenate([jnp.zeros_like(t[:, :1]), t[:, :-1]], axis=1)

    def shift_w(t):  # t[:, :, jo] -> t[:, :, jo-1], zero col at jo == 0
        return jnp.concatenate([jnp.zeros_like(t[:, :, :1]), t[:, :, :-1]], axis=2)

    x_oo_r = shift_h(x_oo)
    x_oo_c = shift_w(x_oo)
    x_oo_rc = shift_h(x_oo_c)
    x_oe_r = shift_h(x_oe)
    x_eo_c = shift_w(x_eo)

    a = (x_oo_rc * dw1[0:1, :] + x_oe_r * dw1[1:2, :] + x_oo_r * dw1[2:3, :]
         + x_eo_c * dw1[3:4, :] + x_ee * dw1[4:5, :] + x_eo * dw1[5:6, :]
         + x_oo_c * dw1[6:7, :] + x_oe * dw1[7:8, :] + x_oo * dw1[8:9, :])

    # ---- pointwise 1x1 (BN1 folded) + ReLU: C VPU broadcast MACs ----
    y = jnp.zeros((B, Ho, Wo, C), f32)
    for ci in range(C):
        y = y + a[..., ci:ci + 1] * pw1[ci:ci + 1, :]
    y = jnp.maximum(y + b1, 0.0)

    # ---- depthwise 3x3, stride 1, pad 1: value halo pad + 9 unit-stride slices ----
    zr = jnp.zeros((B, 1, Wo, C), f32)
    zc = jnp.zeros((B, Ho + 2, 1, C), f32)
    yp = jnp.concatenate([zr, y, zr], axis=1)
    yp = jnp.concatenate([zc, yp, zc], axis=2)              # (B, Ho+2, Wo+2, C)

    a2 = jnp.zeros((B, Ho, Wo, C), f32)
    for ki in range(3):
        for kj in range(3):
            t = 3 * ki + kj
            a2 = a2 + yp[:, ki:ki + Ho, kj:kj + Wo, :] * dw2[t:t + 1, :]

    # ---- pointwise 1x1 (BN2 folded) + ReLU ----
    z = jnp.zeros((B, Ho, Wo, C), f32)
    for ci in range(C):
        z = z + a2[..., ci:ci + 1] * pw2[ci:ci + 1, :]
    z = jnp.maximum(z + b2, 0.0)

    # ---- GlobalAvgPool, then (folded) Conv1x1(C->D) + Linear(D->K) as (B,C)@(C,K) ----
    pooled = jnp.mean(z, axis=(1, 2))                       # (B, C)
    logits = jnp.zeros((B, K), f32) + bf
    for ci in range(C):
        logits = logits + pooled[:, ci:ci + 1] * wf[ci:ci + 1, :]
    o_ref[...] = logits.astype(o_ref.dtype)


# ----------------------------- wrapper -----------------------------

@functools.partial(jax.jit, static_argnames=("num_classes",))
def ofa_projector_forward(x_nchw, packed_params, num_classes):
    # Single NCHW->NHWC transpose at the boundary; everything else runs in one kernel.
    x = jnp.transpose(x_nchw, (0, 2, 3, 1)).astype(jnp.float32)
    B = x.shape[0]
    return pl.pallas_call(
        _ofa_fused_kernel,
        out_shape=jax.ShapeDtypeStruct((B, num_classes), jnp.float32),
        in_specs=[
            pl.BlockSpec(x.shape, lambda *_: (0, 0, 0, 0)),
            pl.BlockSpec(packed_params.shape, lambda *_: (0, 0)),
        ],
        out_specs=pl.BlockSpec((B, num_classes), lambda *_: (0, 0)),
    )(x, packed_params)


# ----------------------------- parameters -----------------------------

def init_params(key, in_ch, feature_dim_s, feature_dim_t, num_classes):
    D = max(feature_dim_s, feature_dim_t)
    eps = 1e-5
    ks = list(jax.random.split(key, 16))

    def bn_fold(kg, kb, km, kv, c):
        gamma = 1.0 + 0.1 * jax.random.normal(kg, (c,), jnp.float32)
        beta = 0.1 * jax.random.normal(kb, (c,), jnp.float32)
        mean = 0.1 * jax.random.normal(km, (c,), jnp.float32)
        var = jax.random.uniform(kv, (c,), jnp.float32, 0.5, 1.5)
        scale = gamma / jnp.sqrt(var + eps)
        return scale, beta - mean * scale

    p = {}
    p["dw1"] = 0.2 * jax.random.normal(ks[0], (3, 3, in_ch), jnp.float32)
    p["pw1"] = 0.2 * jax.random.normal(ks[1], (in_ch, in_ch), jnp.float32)
    p["bn1_scale"], p["bn1_bias"] = bn_fold(ks[2], ks[3], ks[4], ks[5], in_ch)
    p["dw2"] = 0.2 * jax.random.normal(ks[6], (3, 3, in_ch), jnp.float32)
    p["pw2"] = 0.2 * jax.random.normal(ks[7], (in_ch, in_ch), jnp.float32)
    p["bn2_scale"], p["bn2_bias"] = bn_fold(ks[8], ks[9], ks[10], ks[11], in_ch)
    p["w_proj"] = 0.2 * jax.random.normal(ks[12], (in_ch, D), jnp.float32)
    p["b_proj"] = 0.1 * jax.random.normal(ks[13], (D,), jnp.float32)
    p["w_lin"] = 0.2 * jax.random.normal(ks[14], (D, num_classes), jnp.float32)
    p["b_lin"] = 0.1 * jax.random.normal(ks[15], (num_classes,), jnp.float32)
    return p


def fold_params(p):
    """One-time prep: fold eval-mode BN into the 1x1 convs, fold the C->D projection
    past the average pool into the final linear, and pack everything into one buffer."""
    C = p["pw1"].shape[0]
    K = p["w_lin"].shape[1]
    R, nrows = _packed_rows(C)
    nrows = ((nrows + 7) // 8) * 8
    buf = jnp.zeros((nrows, _PACKED_COLS), jnp.float32)

    pw1 = p["pw1"] * p["bn1_scale"][None, :]
    pw2 = p["pw2"] * p["bn2_scale"][None, :]
    w_fused = p["w_proj"] @ p["w_lin"]                      # (C, K)
    b_fused = p["b_proj"] @ p["w_lin"] + p["b_lin"]         # (K,)

    buf = buf.at[R["dw1"]:R["dw1"] + 9, :C].set(p["dw1"].reshape(9, C))
    buf = buf.at[R["pw1"]:R["pw1"] + C, :C].set(pw1)
    buf = buf.at[R["b1"], :C].set(p["bn1_bias"])
    buf = buf.at[R["dw2"]:R["dw2"] + 9, :C].set(p["dw2"].reshape(9, C))
    buf = buf.at[R["pw2"]:R["pw2"] + C, :C].set(pw2)
    buf = buf.at[R["b2"], :C].set(p["bn2_bias"])
    buf = buf.at[R["wf"]:R["wf"] + C, :K].set(w_fused)
    buf = buf.at[R["bf"], :K].set(b_fused)
    return buf


# ----------------------------- pure-JAX reference -----------------------------

def reference_forward(x_nchw, p):
    x = jnp.transpose(x_nchw, (0, 2, 3, 1))

    def dw(x, w, s):
        return jax.lax.conv_general_dilated(
            x, w.reshape(3, 3, 1, x.shape[-1]), (s, s), ((1, 1), (1, 1)),
            dimension_numbers=("NHWC", "HWIO", "NHWC"),
            feature_group_count=x.shape[-1])

    y = dw(x, p["dw1"], 2)
    y = jnp.maximum(jnp.einsum("bhwc,cd->bhwd", y, p["pw1"]) * p["bn1_scale"] + p["bn1_bias"], 0.0)
    y = dw(y, p["dw2"], 1)
    y = jnp.maximum(jnp.einsum("bhwc,cd->bhwd", y, p["pw2"]) * p["bn2_scale"] + p["bn2_bias"], 0.0)
    y = jnp.einsum("bhwc,cd->bhwd", y, p["w_proj"]) + p["b_proj"]
    pooled = y.mean(axis=(1, 2))
    return pooled @ p["w_lin"] + p["b_lin"]


if __name__ == "__main__":
    key = jax.random.PRNGKey(0)
    kx, kp = jax.random.split(key)

    B, C, H, W = 2, 4, 16, 16
    feature_dim_s, feature_dim_t, num_classes = 16, 32, 10

    x = jax.random.normal(kx, (B, C, H, W), jnp.float32)    # NCHW, PyTorch convention
    params = init_params(kp, C, feature_dim_s, feature_dim_t, num_classes)
    packed = fold_params(params)                            # one-time BN + projection fold

    out = jax.block_until_ready(ofa_projector_forward(x, packed, num_classes))
    assert out.shape == (B, num_classes), out.shape

    ref = reference_forward(x, params)
    assert jnp.allclose(out, ref, atol=1e-4, rtol=1e-4), (out, ref)

    print("KERNEL_OK")
</pallas_src>

<mosaic_0001>
module attributes {stable_mosaic.version = 11 : i64} {
  func.func @_ofa_fused_kernel(%arg0: memref<2x16x16x4xf32, #tpu.memory_space<vmem>>, %arg1: memref<40x128xf32, #tpu.memory_space<vmem>>, %arg2: memref<2x10xf32, #tpu.memory_space<vmem>>) attributes {dimension_semantics = [], scalar_prefetch = 0 : i64, scratch_operands = 0 : i64, tpu.core_type = #tpu.core_type<tc>} {
    %c0 = arith.constant 0 : index
    %c0_0 = arith.constant 0 : index
    %0 = vector.load %arg1[%c0, %c0_0] : memref<40x128xf32, #tpu.memory_space<vmem>>, vector<9x4xf32>
    %c9 = arith.constant 9 : index
    %c0_1 = arith.constant 0 : index
    %1 = vector.load %arg1[%c9, %c0_1] : memref<40x128xf32, #tpu.memory_space<vmem>>, vector<4x4xf32>
    %c13 = arith.constant 13 : index
    %c0_2 = arith.constant 0 : index
    %2 = vector.load %arg1[%c13, %c0_2] : memref<40x128xf32, #tpu.memory_space<vmem>>, vector<1x4xf32>
    %c14 = arith.constant 14 : index
    %c0_3 = arith.constant 0 : index
    %3 = vector.load %arg1[%c14, %c0_3] : memref<40x128xf32, #tpu.memory_space<vmem>>, vector<9x4xf32>
    %c23 = arith.constant 23 : index
    %c0_4 = arith.constant 0 : index
    %4 = vector.load %arg1[%c23, %c0_4] : memref<40x128xf32, #tpu.memory_space<vmem>>, vector<4x4xf32>
    %c27 = arith.constant 27 : index
    %c0_5 = arith.constant 0 : index
    %5 = vector.load %arg1[%c27, %c0_5] : memref<40x128xf32, #tpu.memory_space<vmem>>, vector<1x4xf32>
    %c28 = arith.constant 28 : index
    %c0_6 = arith.constant 0 : index
    %6 = vector.load %arg1[%c28, %c0_6] : memref<40x128xf32, #tpu.memory_space<vmem>>, vector<4x10xf32>
    %c32 = arith.constant 32 : index
    %c0_7 = arith.constant 0 : index
    %7 = vector.load %arg1[%c32, %c0_7] : memref<40x128xf32, #tpu.memory_space<vmem>>, vector<1x10xf32>
    %c0_8 = arith.constant 0 : index
    %c0_9 = arith.constant 0 : index
    %c0_10 = arith.constant 0 : index
    %c0_11 = arith.constant 0 : index
    %8 = tpu.strided_load %arg0[%c0_8, %c0_9, %c0_10, %c0_11] {strides = array<i32: 1, 2, 2, 1>} : memref<2x16x16x4xf32, #tpu.memory_space<vmem>>, vector<2x8x8x4xf32>
    %c0_12 = arith.constant 0 : index
    %c0_13 = arith.constant 0 : index
    %c1 = arith.constant 1 : index
    %c0_14 = arith.constant 0 : index
    %9 = tpu.strided_load %arg0[%c0_12, %c0_13, %c1, %c0_14] {strides = array<i32: 1, 2, 2, 1>} : memref<2x16x16x4xf32, #tpu.memory_space<vmem>>, vector<2x8x8x4xf32>
    %c0_15 = arith.constant 0 : index
    %c1_16 = arith.constant 1 : index
    %c0_17 = arith.constant 0 : index
    %c0_18 = arith.constant 0 : index
    %10 = tpu.strided_load %arg0[%c0_15, %c1_16, %c0_17, %c0_18] {strides = array<i32: 1, 2, 2, 1>} : memref<2x16x16x4xf32, #tpu.memory_space<vmem>>, vector<2x8x8x4xf32>
    %c0_19 = arith.constant 0 : index
    %c1_20 = arith.constant 1 : index
    %c1_21 = arith.constant 1 : index
    %c0_22 = arith.constant 0 : index
    %11 = tpu.strided_load %arg0[%c0_19, %c1_20, %c1_21, %c0_22] {strides = array<i32: 1, 2, 2, 1>} : memref<2x16x16x4xf32, #tpu.memory_space<vmem>>, vector<2x8x8x4xf32>
    %cst = arith.constant 0.000000e+00 : f32
    %12 = vector.broadcast %cst : f32 to vector<2x1x8x4xf32>
    %13 = vector.extract_strided_slice %11 {offsets = [0, 0, 0, 0], sizes = [2, 7, 8, 4], strides = [1, 1, 1, 1]} : vector<2x8x8x4xf32> to vector<2x7x8x4xf32>
    %14 = tpu.concatenate %12, %13 in 1 : vector<2x1x8x4xf32>, vector<2x7x8x4xf32> -> vector<2x8x8x4xf32>
    %cst_23 = arith.constant 0.000000e+00 : f32
    %15 = vector.broadcast %cst_23 : f32 to vector<2x8x1x4xf32>
    %16 = vector.extract_strided_slice %11 {offsets = [0, 0, 0, 0], sizes = [2, 8, 7, 4], strides = [1, 1, 1, 1]} : vector<2x8x8x4xf32> to vector<2x8x7x4xf32>
    %17 = tpu.concatenate %15, %16 in 2 : vector<2x8x1x4xf32>, vector<2x8x7x4xf32> -> vector<2x8x8x4xf32>
    %cst_24 = arith.constant 0.000000e+00 : f32
    %18 = vector.broadcast %cst_24 : f32 to vector<2x1x8x4xf32>
    %19 = vector.extract_strided_slice %17 {offsets = [0, 0, 0, 0], sizes = [2, 7, 8, 4], strides = [1, 1, 1, 1]} : vector<2x8x8x4xf32> to vector<2x7x8x4xf32>
    %20 = tpu.concatenate %18, %19 in 1 : vector<2x1x8x4xf32>, vector<2x7x8x4xf32> -> vector<2x8x8x4xf32>
    %cst_25 = arith.constant 0.000000e+00 : f32
    %21 = vector.broadcast %cst_25 : f32 to vector<2x1x8x4xf32>
    %22 = vector.extract_strided_slice %10 {offsets = [0, 0, 0, 0], sizes = [2, 7, 8, 4], strides = [1, 1, 1, 1]} : vector<2x8x8x4xf32> to vector<2x7x8x4xf32>
    %23 = tpu.concatenate %21, %22 in 1 : vector<2x1x8x4xf32>, vector<2x7x8x4xf32> -> vector<2x8x8x4xf32>
    %cst_26 = arith.constant 0.000000e+00 : f32
    %24 = vector.broadcast %cst_26 : f32 to vector<2x8x1x4xf32>
    %25 = vector.extract_strided_slice %9 {offsets = [0, 0, 0, 0], sizes = [2, 8, 7, 4], strides = [1, 1, 1, 1]} : vector<2x8x8x4xf32> to vector<2x8x7x4xf32>
    %26 = tpu.concatenate %24, %25 in 2 : vector<2x8x1x4xf32>, vector<2x8x7x4xf32> -> vector<2x8x8x4xf32>
    %27 = vector.extract_strided_slice %0 {offsets = [0, 0], sizes = [1, 4], strides = [1, 1]} : vector<9x4xf32> to vector<1x4xf32>
    %28 = vector.shape_cast %27 : vector<1x4xf32> to vector<1x1x1x4xf32>
    %29 = vector.broadcast %28 : vector<1x1x1x4xf32> to vector<2x8x8x4xf32>
    %30 = arith.mulf %20, %29 : vector<2x8x8x4xf32>
    %31 = vector.extract_strided_slice %0 {offsets = [1, 0], sizes = [1, 4], strides = [1, 1]} : vector<9x4xf32> to vector<1x4xf32>
    %32 = vector.shape_cast %31 : vector<1x4xf32> to vector<1x1x1x4xf32>
    %33 = vector.broadcast %32 : vector<1x1x1x4xf32> to vector<2x8x8x4xf32>
    %34 = arith.mulf %23, %33 : vector<2x8x8x4xf32>
    %35 = arith.addf %30, %34 : vector<2x8x8x4xf32>
    %36 = vector.extract_strided_slice %0 {offsets = [2, 0], sizes = [1, 4], strides = [1, 1]} : vector<9x4xf32> to vector<1x4xf32>
    %37 = vector.shape_cast %36 : vector<1x4xf32> to vector<1x1x1x4xf32>
    %38 = vector.broadcast %37 : vector<1x1x1x4xf32> to vector<2x8x8x4xf32>
    %39 = arith.mulf %14, %38 : vector<2x8x8x4xf32>
    %40 = arith.addf %35, %39 : vector<2x8x8x4xf32>
    %41 = vector.extract_strided_slice %0 {offsets = [3, 0], sizes = [1, 4], strides = [1, 1]} : vector<9x4xf32> to vector<1x4xf32>
    %42 = vector.shape_cast %41 : vector<1x4xf32> to vector<1x1x1x4xf32>
    %43 = vector.broadcast %42 : vector<1x1x1x4xf32> to vector<2x8x8x4xf32>
    %44 = arith.mulf %26, %43 : vector<2x8x8x4xf32>
    %45 = arith.addf %40, %44 : vector<2x8x8x4xf32>
    %46 = vector.extract_strided_slice %0 {offsets = [4, 0], sizes = [1, 4], strides = [1, 1]} : vector<9x4xf32> to vector<1x4xf32>
    %47 = vector.shape_cast %46 : vector<1x4xf32> to vector<1x1x1x4xf32>
    %48 = vector.broadcast %47 : vector<1x1x1x4xf32> to vector<2x8x8x4xf32>
    %49 = arith.mulf %8, %48 : vector<2x8x8x4xf32>
    %50 = arith.addf %45, %49 : vector<2x8x8x4xf32>
    %51 = vector.extract_strided_slice %0 {offsets = [5, 0], sizes = [1, 4], strides = [1, 1]} : vector<9x4xf32> to vector<1x4xf32>
    %52 = vector.shape_cast %51 : vector<1x4xf32> to vector<1x1x1x4xf32>
    %53 = vector.broadcast %52 : vector<1x1x1x4xf32> to vector<2x8x8x4xf32>
    %54 = arith.mulf %9, %53 : vector<2x8x8x4xf32>
    %55 = arith.addf %50, %54 : vector<2x8x8x4xf32>
    %56 = vector.extract_strided_slice %0 {offsets = [6, 0], sizes = [1, 4], strides = [1, 1]} : vector<9x4xf32> to vector<1x4xf32>
    %57 = vector.shape_cast %56 : vector<1x4xf32> to vector<1x1x1x4xf32>
    %58 = vector.broadcast %57 : vector<1x1x1x4xf32> to vector<2x8x8x4xf32>
    %59 = arith.mulf %17, %58 : vector<2x8x8x4xf32>
    %60 = arith.addf %55, %59 : vector<2x8x8x4xf32>
    %61 = vector.extract_strided_slice %0 {offsets = [7, 0], sizes = [1, 4], strides = [1, 1]} : vector<9x4xf32> to vector<1x4xf32>
    %62 = vector.shape_cast %61 : vector<1x4xf32> to vector<1x1x1x4xf32>
    %63 = vector.broadcast %62 : vector<1x1x1x4xf32> to vector<2x8x8x4xf32>
    %64 = arith.mulf %10, %63 : vector<2x8x8x4xf32>
    %65 = arith.addf %60, %64 : vector<2x8x8x4xf32>
    %66 = vector.extract_strided_slice %0 {offsets = [8, 0], sizes = [1, 4], strides = [1, 1]} : vector<9x4xf32> to vector<1x4xf32>
    %67 = vector.shape_cast %66 : vector<1x4xf32> to vector<1x1x1x4xf32>
    %68 = vector.broadcast %67 : vector<1x1x1x4xf32> to vector<2x8x8x4xf32>
    %69 = arith.mulf %11, %68 : vector<2x8x8x4xf32>
    %70 = arith.addf %65, %69 : vector<2x8x8x4xf32>
    %cst_27 = arith.constant 0.000000e+00 : f32
    %71 = vector.broadcast %cst_27 : f32 to vector<2x8x8x4xf32>
    %72 = vector.extract_strided_slice %70 {offsets = [0, 0, 0, 0], sizes = [2, 8, 8, 1], strides = [1, 1, 1, 1]} : vector<2x8x8x4xf32> to vector<2x8x8x1xf32>
    %73 = vector.extract_strided_slice %1 {offsets = [0, 0], sizes = [1, 4], strides = [1, 1]} : vector<4x4xf32> to vector<1x4xf32>
    %74 = vector.shape_cast %73 : vector<1x4xf32> to vector<1x1x1x4xf32>
    %75 = vector.broadcast %72 : vector<2x8x8x1xf32> to vector<2x8x8x4xf32>
    %76 = vector.broadcast %74 : vector<1x1x1x4xf32> to vector<2x8x8x4xf32>
    %77 = arith.mulf %75, %76 : vector<2x8x8x4xf32>
    %78 = arith.addf %71, %77 : vector<2x8x8x4xf32>
    %79 = vector.extract_strided_slice %70 {offsets = [0, 0, 0, 1], sizes = [2, 8, 8, 1], strides = [1, 1, 1, 1]} : vector<2x8x8x4xf32> to vector<2x8x8x1xf32>
    %80 = vector.extract_strided_slice %1 {offsets = [1, 0], sizes = [1, 4], strides = [1, 1]} : vector<4x4xf32> to vector<1x4xf32>
    %81 = vector.shape_cast %80 : vector<1x4xf32> to vector<1x1x1x4xf32>
    %82 = vector.broadcast %79 : vector<2x8x8x1xf32> to vector<2x8x8x4xf32>
    %83 = vector.broadcast %81 : vector<1x1x1x4xf32> to vector<2x8x8x4xf32>
    %84 = arith.mulf %82, %83 : vector<2x8x8x4xf32>
    %85 = arith.addf %78, %84 : vector<2x8x8x4xf32>
    %86 = vector.extract_strided_slice %70 {offsets = [0, 0, 0, 2], sizes = [2, 8, 8, 1], strides = [1, 1, 1, 1]} : vector<2x8x8x4xf32> to vector<2x8x8x1xf32>
    %87 = vector.extract_strided_slice %1 {offsets = [2, 0], sizes = [1, 4], strides = [1, 1]} : vector<4x4xf32> to vector<1x4xf32>
    %88 = vector.shape_cast %87 : vector<1x4xf32> to vector<1x1x1x4xf32>
    %89 = vector.broadcast %86 : vector<2x8x8x1xf32> to vector<2x8x8x4xf32>
    %90 = vector.broadcast %88 : vector<1x1x1x4xf32> to vector<2x8x8x4xf32>
    %91 = arith.mulf %89, %90 : vector<2x8x8x4xf32>
    %92 = arith.addf %85, %91 : vector<2x8x8x4xf32>
    %93 = vector.extract_strided_slice %70 {offsets = [0, 0, 0, 3], sizes = [2, 8, 8, 1], strides = [1, 1, 1, 1]} : vector<2x8x8x4xf32> to vector<2x8x8x1xf32>
    %94 = vector.extract_strided_slice %1 {offsets = [3, 0], sizes = [1, 4], strides = [1, 1]} : vector<4x4xf32> to vector<1x4xf32>
    %95 = vector.shape_cast %94 : vector<1x4xf32> to vector<1x1x1x4xf32>
    %96 = vector.broadcast %93 : vector<2x8x8x1xf32> to vector<2x8x8x4xf32>
    %97 = vector.broadcast %95 : vector<1x1x1x4xf32> to vector<2x8x8x4xf32>
    %98 = arith.mulf %96, %97 : vector<2x8x8x4xf32>
    %99 = arith.addf %92, %98 : vector<2x8x8x4xf32>
    %100 = vector.shape_cast %2 : vector<1x4xf32> to vector<1x1x1x4xf32>
    %101 = vector.broadcast %100 : vector<1x1x1x4xf32> to vector<2x8x8x4xf32>
    %102 = arith.addf %99, %101 : vector<2x8x8x4xf32>
    %cst_28 = arith.constant 0.000000e+00 : f32
    %103 = vector.broadcast %cst_28 : f32 to vector<2x8x8x4xf32>
    %104 = arith.maximumf %102, %103 : vector<2x8x8x4xf32>
    %cst_29 = arith.constant 0.000000e+00 : f32
    %105 = vector.broadcast %cst_29 : f32 to vector<2x1x8x4xf32>
    %cst_30 = arith.constant 0.000000e+00 : f32
    %106 = vector.broadcast %cst_30 : f32 to vector<2x10x1x4xf32>
    %107 = tpu.concatenate %105, %104, %105 in 1 : vector<2x1x8x4xf32>, vector<2x8x8x4xf32>, vector<2x1x8x4xf32> -> vector<2x10x8x4xf32>
    %108 = tpu.concatenate %106, %107, %106 in 2 : vector<2x10x1x4xf32>, vector<2x10x8x4xf32>, vector<2x10x1x4xf32> -> vector<2x10x10x4xf32>
    %cst_31 = arith.constant 0.000000e+00 : f32
    %109 = vector.broadcast %cst_31 : f32 to vector<2x8x8x4xf32>
    %110 = vector.extract_strided_slice %108 {offsets = [0, 0, 0, 0], sizes = [2, 8, 8, 4], strides = [1, 1, 1, 1]} : vector<2x10x10x4xf32> to vector<2x8x8x4xf32>
    %111 = vector.extract_strided_slice %3 {offsets = [0, 0], sizes = [1, 4], strides = [1, 1]} : vector<9x4xf32> to vector<1x4xf32>
    %112 = vector.shape_cast %111 : vector<1x4xf32> to vector<1x1x1x4xf32>
    %113 = vector.broadcast %112 : vector<1x1x1x4xf32> to vector<2x8x8x4xf32>
    %114 = arith.mulf %110, %113 : vector<2x8x8x4xf32>
    %115 = arith.addf %109, %114 : vector<2x8x8x4xf32>
    %116 = vector.extract_strided_slice %108 {offsets = [0, 0, 1, 0], sizes = [2, 8, 8, 4], strides = [1, 1, 1, 1]} : vector<2x10x10x4xf32> to vector<2x8x8x4xf32>
    %117 = vector.extract_strided_slice %3 {offsets = [1, 0], sizes = [1, 4], strides = [1, 1]} : vector<9x4xf32> to vector<1x4xf32>
    %118 = vector.shape_cast %117 : vector<1x4xf32> to vector<1x1x1x4xf32>
    %119 = vector.broadcast %118 : vector<1x1x1x4xf32> to vector<2x8x8x4xf32>
    %120 = arith.mulf %116, %119 : vector<2x8x8x4xf32>
    %121 = arith.addf %115, %120 : vector<2x8x8x4xf32>
    %122 = vector.extract_strided_slice %108 {offsets = [0, 0, 2, 0], sizes = [2, 8, 8, 4], strides = [1, 1, 1, 1]} : vector<2x10x10x4xf32> to vector<2x8x8x4xf32>
    %123 = vector.extract_strided_slice %3 {offsets = [2, 0], sizes = [1, 4], strides = [1, 1]} : vector<9x4xf32> to vector<1x4xf32>
    %124 = vector.shape_cast %123 : vector<1x4xf32> to vector<1x1x1x4xf32>
    %125 = vector.broadcast %124 : vector<1x1x1x4xf32> to vector<2x8x8x4xf32>
    %126 = arith.mulf %122, %125 : vector<2x8x8x4xf32>
    %127 = arith.addf %121, %126 : vector<2x8x8x4xf32>
    %128 = vector.extract_strided_slice %108 {offsets = [0, 1, 0, 0], sizes = [2, 8, 8, 4], strides = [1, 1, 1, 1]} : vector<2x10x10x4xf32> to vector<2x8x8x4xf32>
    %129 = vector.extract_strided_slice %3 {offsets = [3, 0], sizes = [1, 4], strides = [1, 1]} : vector<9x4xf32> to vector<1x4xf32>
    %130 = vector.shape_cast %129 : vector<1x4xf32> to vector<1x1x1x4xf32>
    %131 = vector.broadcast %130 : vector<1x1x1x4xf32> to vector<2x8x8x4xf32>
    %132 = arith.mulf %128, %131 : vector<2x8x8x4xf32>
    %133 = arith.addf %127, %132 : vector<2x8x8x4xf32>
    %134 = vector.extract_strided_slice %108 {offsets = [0, 1, 1, 0], sizes = [2, 8, 8, 4], strides = [1, 1, 1, 1]} : vector<2x10x10x4xf32> to vector<2x8x8x4xf32>
    %135 = vector.extract_strided_slice %3 {offsets = [4, 0], sizes = [1, 4], strides = [1, 1]} : vector<9x4xf32> to vector<1x4xf32>
    %136 = vector.shape_cast %135 : vector<1x4xf32> to vector<1x1x1x4xf32>
    %137 = vector.broadcast %136 : vector<1x1x1x4xf32> to vector<2x8x8x4xf32>
    %138 = arith.mulf %134, %137 : vector<2x8x8x4xf32>
    %139 = arith.addf %133, %138 : vector<2x8x8x4xf32>
    %140 = vector.extract_strided_slice %108 {offsets = [0, 1, 2, 0], sizes = [2, 8, 8, 4], strides = [1, 1, 1, 1]} : vector<2x10x10x4xf32> to vector<2x8x8x4xf32>
    %141 = vector.extract_strided_slice %3 {offsets = [5, 0], sizes = [1, 4], strides = [1, 1]} : vector<9x4xf32> to vector<1x4xf32>
    %142 = vector.shape_cast %141 : vector<1x4xf32> to vector<1x1x1x4xf32>
    %143 = vector.broadcast %142 : vector<1x1x1x4xf32> to vector<2x8x8x4xf32>
    %144 = arith.mulf %140, %143 : vector<2x8x8x4xf32>
    %145 = arith.addf %139, %144 : vector<2x8x8x4xf32>
    %146 = vector.extract_strided_slice %108 {offsets = [0, 2, 0, 0], sizes = [2, 8, 8, 4], strides = [1, 1, 1, 1]} : vector<2x10x10x4xf32> to vector<2x8x8x4xf32>
    %147 = vector.extract_strided_slice %3 {offsets = [6, 0], sizes = [1, 4], strides = [1, 1]} : vector<9x4xf32> to vector<1x4xf32>
    %148 = vector.shape_cast %147 : vector<1x4xf32> to vector<1x1x1x4xf32>
    %149 = vector.broadcast %148 : vector<1x1x1x4xf32> to vector<2x8x8x4xf32>
    %150 = arith.mulf %146, %149 : vector<2x8x8x4xf32>
    %151 = arith.addf %145, %150 : vector<2x8x8x4xf32>
    %152 = vector.extract_strided_slice %108 {offsets = [0, 2, 1, 0], sizes = [2, 8, 8, 4], strides = [1, 1, 1, 1]} : vector<2x10x10x4xf32> to vector<2x8x8x4xf32>
    %153 = vector.extract_strided_slice %3 {offsets = [7, 0], sizes = [1, 4], strides = [1, 1]} : vector<9x4xf32> to vector<1x4xf32>
    %154 = vector.shape_cast %153 : vector<1x4xf32> to vector<1x1x1x4xf32>
    %155 = vector.broadcast %154 : vector<1x1x1x4xf32> to vector<2x8x8x4xf32>
    %156 = arith.mulf %152, %155 : vector<2x8x8x4xf32>
    %157 = arith.addf %151, %156 : vector<2x8x8x4xf32>
    %158 = vector.extract_strided_slice %108 {offsets = [0, 2, 2, 0], sizes = [2, 8, 8, 4], strides = [1, 1, 1, 1]} : vector<2x10x10x4xf32> to vector<2x8x8x4xf32>
    %159 = vector.extract_strided_slice %3 {offsets = [8, 0], sizes = [1, 4], strides = [1, 1]} : vector<9x4xf32> to vector<1x4xf32>
    %160 = vector.shape_cast %159 : vector<1x4xf32> to vector<1x1x1x4xf32>
    %161 = vector.broadcast %160 : vector<1x1x1x4xf32> to vector<2x8x8x4xf32>
    %162 = arith.mulf %158, %161 : vector<2x8x8x4xf32>
    %163 = arith.addf %157, %162 : vector<2x8x8x4xf32>
    %cst_32 = arith.constant 0.000000e+00 : f32
    %164 = vector.broadcast %cst_32 : f32 to vector<2x8x8x4xf32>
    %165 = vector.extract_strided_slice %163 {offsets = [0, 0, 0, 0], sizes = [2, 8, 8, 1], strides = [1, 1, 1, 1]} : vector<2x8x8x4xf32> to vector<2x8x8x1xf32>
    %166 = vector.extract_strided_slice %4 {offsets = [0, 0], sizes = [1, 4], strides = [1, 1]} : vector<4x4xf32> to vector<1x4xf32>
    %167 = vector.shape_cast %166 : vector<1x4xf32> to vector<1x1x1x4xf32>
    %168 = vector.broadcast %165 : vector<2x8x8x1xf32> to vector<2x8x8x4xf32>
    %169 = vector.broadcast %167 : vector<1x1x1x4xf32> to vector<2x8x8x4xf32>
    %170 = arith.mulf %168, %169 : vector<2x8x8x4xf32>
    %171 = arith.addf %164, %170 : vector<2x8x8x4xf32>
    %172 = vector.extract_strided_slice %163 {offsets = [0, 0, 0, 1], sizes = [2, 8, 8, 1], strides = [1, 1, 1, 1]} : vector<2x8x8x4xf32> to vector<2x8x8x1xf32>
    %173 = vector.extract_strided_slice %4 {offsets = [1, 0], sizes = [1, 4], strides = [1, 1]} : vector<4x4xf32> to vector<1x4xf32>
    %174 = vector.shape_cast %173 : vector<1x4xf32> to vector<1x1x1x4xf32>
    %175 = vector.broadcast %172 : vector<2x8x8x1xf32> to vector<2x8x8x4xf32>
    %176 = vector.broadcast %174 : vector<1x1x1x4xf32> to vector<2x8x8x4xf32>
    %177 = arith.mulf %175, %176 : vector<2x8x8x4xf32>
    %178 = arith.addf %171, %177 : vector<2x8x8x4xf32>
    %179 = vector.extract_strided_slice %163 {offsets = [0, 0, 0, 2], sizes = [2, 8, 8, 1], strides = [1, 1, 1, 1]} : vector<2x8x8x4xf32> to vector<2x8x8x1xf32>
    %180 = vector.extract_strided_slice %4 {offsets = [2, 0], sizes = [1, 4], strides = [1, 1]} : vector<4x4xf32> to vector<1x4xf32>
    %181 = vector.shape_cast %180 : vector<1x4xf32> to vector<1x1x1x4xf32>
    %182 = vector.broadcast %179 : vector<2x8x8x1xf32> to vector<2x8x8x4xf32>
    %183 = vector.broadcast %181 : vector<1x1x1x4xf32> to vector<2x8x8x4xf32>
    %184 = arith.mulf %182, %183 : vector<2x8x8x4xf32>
    %185 = arith.addf %178, %184 : vector<2x8x8x4xf32>
    %186 = vector.extract_strided_slice %163 {offsets = [0, 0, 0, 3], sizes = [2, 8, 8, 1], strides = [1, 1, 1, 1]} : vector<2x8x8x4xf32> to vector<2x8x8x1xf32>
    %187 = vector.extract_strided_slice %4 {offsets = [3, 0], sizes = [1, 4], strides = [1, 1]} : vector<4x4xf32> to vector<1x4xf32>
    %188 = vector.shape_cast %187 : vector<1x4xf32> to vector<1x1x1x4xf32>
    %189 = vector.broadcast %186 : vector<2x8x8x1xf32> to vector<2x8x8x4xf32>
    %190 = vector.broadcast %188 : vector<1x1x1x4xf32> to vector<2x8x8x4xf32>
    %191 = arith.mulf %189, %190 : vector<2x8x8x4xf32>
    %192 = arith.addf %185, %191 : vector<2x8x8x4xf32>
    %193 = vector.shape_cast %5 : vector<1x4xf32> to vector<1x1x1x4xf32>
    %194 = vector.broadcast %193 : vector<1x1x1x4xf32> to vector<2x8x8x4xf32>
    %195 = arith.addf %192, %194 : vector<2x8x8x4xf32>
    %cst_33 = arith.constant 0.000000e+00 : f32
    %196 = vector.broadcast %cst_33 : f32 to vector<2x8x8x4xf32>
    %197 = arith.maximumf %195, %196 : vector<2x8x8x4xf32>
    %cst_34 = arith.constant dense<0.000000e+00> : vector<2x4xf32>
    %198 = vector.multi_reduction <add>, %197, %cst_34 [1, 2] : vector<2x8x8x4xf32> to vector<2x4xf32>
    %cst_35 = arith.constant 6.400000e+01 : f32
    %199 = vector.broadcast %cst_35 : f32 to vector<2x4xf32>
    %200 = arith.divf %198, %199 : vector<2x4xf32>
    %cst_36 = arith.constant 0.000000e+00 : f32
    %201 = vector.broadcast %cst_36 : f32 to vector<2x10xf32>
    %202 = vector.broadcast %7 : vector<1x10xf32> to vector<2x10xf32>
    %203 = arith.addf %201, %202 : vector<2x10xf32>
    %204 = vector.extract_strided_slice %200 {offsets = [0, 0], sizes = [2, 1], strides = [1, 1]} : vector<2x4xf32> to vector<2x1xf32>
    %205 = vector.extract_strided_slice %6 {offsets = [0, 0], sizes = [1, 10], strides = [1, 1]} : vector<4x10xf32> to vector<1x10xf32>
    %206 = vector.broadcast %204 : vector<2x1xf32> to vector<2x10xf32>
    %207 = vector.broadcast %205 : vector<1x10xf32> to vector<2x10xf32>
    %208 = arith.mulf %206, %207 : vector<2x10xf32>
    %209 = arith.addf %203, %208 : vector<2x10xf32>
    %210 = vector.extract_strided_slice %200 {offsets = [0, 1], sizes = [2, 1], strides = [1, 1]} : vector<2x4xf32> to vector<2x1xf32>
    %211 = vector.extract_strided_slice %6 {offsets = [1, 0], sizes = [1, 10], strides = [1, 1]} : vector<4x10xf32> to vector<1x10xf32>
    %212 = vector.broadcast %210 : vector<2x1xf32> to vector<2x10xf32>
    %213 = vector.broadcast %211 : vector<1x10xf32> to vector<2x10xf32>
    %214 = arith.mulf %212, %213 : vector<2x10xf32>
    %215 = arith.addf %209, %214 : vector<2x10xf32>
    %216 = vector.extract_strided_slice %200 {offsets = [0, 2], sizes = [2, 1], strides = [1, 1]} : vector<2x4xf32> to vector<2x1xf32>
    %217 = vector.extract_strided_slice %6 {offsets = [2, 0], sizes = [1, 10], strides = [1, 1]} : vector<4x10xf32> to vector<1x10xf32>
    %218 = vector.broadcast %216 : vector<2x1xf32> to vector<2x10xf32>
    %219 = vector.broadcast %217 : vector<1x10xf32> to vector<2x10xf32>
    %220 = arith.mulf %218, %219 : vector<2x10xf32>
    %221 = arith.addf %215, %220 : vector<2x10xf32>
    %222 = vector.extract_strided_slice %200 {offsets = [0, 3], sizes = [2, 1], strides = [1, 1]} : vector<2x4xf32> to vector<2x1xf32>
    %223 = vector.extract_strided_slice %6 {offsets = [3, 0], sizes = [1, 10], strides = [1, 1]} : vector<4x10xf32> to vector<1x10xf32>
    %224 = vector.broadcast %222 : vector<2x1xf32> to vector<2x10xf32>
    %225 = vector.broadcast %223 : vector<1x10xf32> to vector<2x10xf32>
    %226 = arith.mulf %224, %225 : vector<2x10xf32>
    %227 = arith.addf %221, %226 : vector<2x10xf32>
    %c0_37 = arith.constant 0 : index
    %c0_38 = arith.constant 0 : index
    %228 = vector.load %arg2[%c0_37, %c0_38] : memref<2x10xf32, #tpu.memory_space<vmem>>, vector<2x10xf32>
    tpu.vector_store %arg2[%c0_37, %c0_38], %227 {strides = array<i32>} : memref<2x10xf32, #tpu.memory_space<vmem>>, vector<2x10xf32>,
    return
  }
}

</mosaic_0001>

<bundles_post_ra>
// kernel: ofa_projector_forward.1
= control target key start
LH: loop header
LB: loop body
LE: loop exit
PB: predicated region body
PF: predicated region fallthrough
CT: control target
= control target key end

     0   :  { %v278_v0 = vlaneseq  ;;  %v5099_v1 = vmov 1   ;;  %v5097_v2 = vmov 0   ;;  %vm197_vm0 = vcmask 1040384   ;;  %s5090_s0 = inlined_call_operand.vmem [shape: f32[2,16,16,4], index: 0, kind: input, shape index: {}]   ;;  %s5091_s1 = inlined_call_operand.vmem [shape: f32[40,128], index: 1, kind: input, shape index: {}]   ;;  %s5092_s2 = inlined_call_operand.hbm [shape: f32[2,10], index: 2, kind: output, shape index: {}]  }
   0x1   :  { %2787 = vset.pattern.permute.xlu0 %v5099_v1  ;;  %2786 = vset.pattern.permute.xlu1 %v5097_v2  ;;  %v2729_v3 = vld [vmem:[%s5090_s0 + $0x41] ss:$2 sm:$0xff]  ;;  %v2881_v4 = vld [vmem:[%s5090_s0 + $0x31] ss:$2 sm:$0xff]  ;;  %v2912_v18 = vld [vmem:[%s5090_s0 + $0x30] ss:$2 sm:$0xff] }
   0x2   :  { %v2761_v5 = vld [vmem:[%s5090_s0 + $0x51] ss:$2 sm:$0xff]  ;;  %v166_v6 = vrot.slane %v2881_v4, 7  ;;  %v2887_v8 = vshrl.u32 %v278_v0, 7  ;;  %v12_v9 = vld [vmem:[%s5091_s1] sm:$0xff]  ;;  %v232_v10 = vrot.slane %v2729_v3, 7 }
   0x3   :  { %v167_v7 = vrot.slane %v2761_v5, 7  ;;  %v2745_v19 = vld [vmem:[%s5090_s0 + $0x50] ss:$2 sm:$0xff]  ;;  %v2759_v31 = vld [vmem:[%s5090_s0 + $0x11] ss:$2 sm:$0xff] }
   0x4   :  { %5200 = vst [vmem:[#allocation5_spill] sm:$0xff] %v2887_v8  ;;  %v2893_v11 = vsel %vm197_vm0, 0.0, %v166_v6  ;;  %v2897_v13 = vsub.s32 0, %v2887_v8  ;;  %v2900_v14 = vsub.s32 1, %v2887_v8  ;;  %v2903_v15 = vsub.s32 2, %v2887_v8 }
   0x5   :  { %v200_v12 = vsel %vm197_vm0, 0.0, %v167_v7  ;;  %v2906_v16 = vsub.s32 3, %v2887_v8  ;;  %v5096_v17 = vsub.s32 4, %v2887_v8  ;;  %v5095_v21 = vsub.s32 5, %v2887_v8  ;;  %v2713_v32 = vld [vmem:[%s5090_s0 + $0x40] ss:$2 sm:$0xff] }
   0x6   :  { %5201 = vst [vmem:[#allocation6_spill] sm:$0xff] %v2897_v13  ;;  %5202 = vst [vmem:[#allocation7_spill] sm:$0xff] %v2900_v14  ;;  %v2918_v20 = vrot.slane %v12_v9, %v2897_v13  ;;  %v5093_v22 = vsub.s32 6, %v2887_v8  ;;  %v264_v23 = vsel %vm197_vm0, 0.0, %v232_v10  ;;  %v2924_v24 = vrot.slane %v12_v9, %v2900_v14  ;;  %v2727_v37 = vld [vmem:[%s5090_s0 + $0x1] ss:$2 sm:$0xff] }
   0x7   :  { %5203 = vst [vmem:[#allocation8_spill] sm:$0xff] %v2903_v15  ;;  %5204 = vst [vmem:[#allocation9_spill] sm:$0xff] %v2906_v16  ;;  %v2927_v25 = vrot.slane %v12_v9, %v2903_v15  ;;  %v2930_v26 = vrot.slane %v12_v9, %v2906_v16  ;;  %v2937_v29 = vrot.slane %v12_v9, %v5096_v17  ;;  %v5094_v30 = vsub.s32 7, %v2887_v8  ;;  %v2970_v47 = vld [vmem:[%s5091_s1 + $0x8] ss:$0 sm:$0xff] }
   0x8   :  { %v284_v27 = vmul.f32 %v2918_v20, %v2893_v11  ;;  %v285_v28 = vmul.f32 %v2918_v20, %v200_v12  ;;  %v303_v33 = vmul.f32 %v2912_v18, %v2924_v24  ;;  %v304_v34 = vmul.f32 %v2745_v19, %v2924_v24  ;;  %v22_v52 = vld [vmem:[%s5090_s0] ss:$2 sm:$0xff]  ;;  %v2743_v53 = vld [vmem:[%s5090_s0 + $0x10] ss:$2 sm:$0xff]  ;;  %v2989_v58 = vld [vmem:[%s5090_s0 + $0x71] ss:$2 sm:$0xff] }
   0x9   :  { %v337_v35 = vmul.f32 %v2881_v4, %v2927_v25  ;;  %v2953_v36 = vrot.slane %v12_v9, %v5095_v21  ;;  %v2960_v38 = vrot.slane %v12_v9, %v5093_v22  ;;  %v338_v40 = vmul.f32 %v2761_v5, %v2927_v25  ;;  %v2730_v63 = vld [vmem:[%s5090_s0 + $0x61] ss:$2 sm:$0xff] }
   0xa   :  { %v318_v39 = vadd.f32 %v303_v33, %v284_v27  ;;  %v371_v41 = vmul.f32 %v2930_v26, %v264_v23  ;;  %v165_v42 = vrot.slane %v2759_v31, 7  ;;  %v407_v43 = vmul.f32 %v2713_v32, %v2937_v29 }
   0xb   :  { %v230_v44 = vrot.slane %v2727_v37, 7  ;;  %v282_v45 = vmul.f32 0.0, %v2918_v20  ;;  %v301_v46 = vmul.f32 0.0, %v2924_v24  ;;  %v319_v48 = vadd.f32 %v304_v34, %v285_v28 }
   0xc   :  { %v352_v49 = vadd.f32 %v337_v35, %v318_v39  ;;  %v443_v50 = vmul.f32 %v2729_v3, %v2953_v36  ;;  %v2975_v51 = vrot.slane %v12_v9, %v5094_v30  ;;  %v198_v54 = vsel %vm197_vm0, 0.0, %v165_v42 }
   0xd   :  { %v262_v55 = vsel %vm197_vm0, 0.0, %v230_v44  ;;  %v316_v56 = vadd.f32 %v301_v46, %v282_v45  ;;  %v335_v57 = vmul.f32 0.0, %v2927_v25  ;;  %v283_v60 = vmul.f32 %v2918_v20, %v198_v54  ;;  %v2732_v45 = vld [vmem:[%s5090_s0 + $0xa1] ss:$2 sm:$0xff]  ;;  %v3035_v46 = vld [vmem:[%s5090_s0 + $0xb1] ss:$2 sm:$0xff] }
   0xe   :  { %v387_v59 = vadd.f32 %v371_v41, %v352_v49  ;;  %v302_v61 = vmul.f32 %v2743_v53, %v2924_v24  ;;  %v369_v62 = vmul.f32 %v2930_v26, %v262_v55  ;;  %v479_v0 = vmul.f32 %v2960_v38, %v200_v12 }
   0xf   :  { %v551_v3 = vmul.f32 %v2970_v47, %v2761_v5  ;;  %v2999_v6 = vadd.f32 %v335_v57, %v316_v56  ;;  %v405_v7 = vmul.f32 %v2937_v29, %v22_v52  ;;  %v353_v9 = vadd.f32 %v338_v40, %v319_v48  ;;  %v2714_v5 = vld [vmem:[%s5090_s0 + $0x60] ss:$2 sm:$0xff]  ;;  %v2746_v40 = vld [vmem:[%s5090_s0 + $0x70] ss:$2 sm:$0xff] }
  0x10   :  { %v423_v10 = vadd.f32 %v407_v43, %v387_v59  ;;  %v515_v23 = vmul.f32 %v2745_v19, %v2975_v51  ;;  %v168_v27 = vrot.slane %v2989_v58, 7  ;;  %v3005_v28 = vmul.f32 %v2759_v31, %v2927_v25  ;;  %v3043_v52 = vld [vmem:[%s5090_s0 + $0x90] ss:$2 sm:$0xff] }
  0x11   :  { %v385_v32 = vadd.f32 %v369_v62, %v2999_v6  ;;  %v441_v33 = vmul.f32 %v2727_v37, %v2953_v36  ;;  %v233_v12 = vrot.slane %v2730_v63, 7  ;;  %v3012_v35 = vadd.f32 %v302_v61, %v283_v60  ;;  %v3022_v37 = vld [vmem:[%s5090_s0 + $0x91] ss:$2 sm:$0xff] }
  0x12   :  { %v459_v34 = vadd.f32 %v443_v50, %v423_v10  ;;  %v477_v39 = vmul.f32 %v2960_v38, %v198_v54  ;;  %v513_v19 = vmul.f32 %v2743_v53, %v2975_v51  ;;  %v549_v42 = vmul.f32 %v2970_v47, %v2759_v31 }
  0x13   :  { %v421_v41 = vadd.f32 %v405_v7, %v385_v32  ;;  %v265_v43 = vsel %vm197_vm0, 0.0, %v233_v12  ;;  %v3027_v44 = vmul.f32 %v2746_v40, %v2924_v24  ;;  %v201_v49 = vsel %vm197_vm0, 0.0, %v168_v27 }
  0x14   :  { %v495_v48 = vadd.f32 %v479_v0, %v459_v34  ;;  %v372_v50 = vmul.f32 %v2930_v26, %v265_v43  ;;  %v408_v31 = vmul.f32 %v2714_v5, %v2937_v29  ;;  %v3046_v54 = vmul.f32 %v2918_v20, %v201_v49  ;;  %v2716_v5 = vld [vmem:[%s5090_s0 + $0xa0] ss:$2 sm:$0xff] }
  0x15   :  { %v457_v53 = vadd.f32 %v441_v33, %v421_v41  ;;  %v444_v55 = vmul.f32 %v2730_v63, %v2953_v36  ;;  %v169_v56 = vrot.slane %v3022_v37, 7  ;;  %v170_v60 = vrot.slane %v3035_v46, 7  ;;  %v2748_v63 = vld [vmem:[%s5090_s0 + $0xb0] ss:$2 sm:$0xff] }
  0x16   :  { %v531_v57 = vadd.f32 %v515_v23, %v495_v48  ;;  %v388_v59 = vadd.f32 %v372_v50, %v353_v9  ;;  %v235_v61 = vrot.slane %v2732_v45, 7  ;;  %v480_v0 = vmul.f32 %v2960_v38, %v201_v49  ;;  %v2734_v48 = vld [vmem:[%s5090_s0 + $0xe1] ss:$2 sm:$0xff]  ;;  %v3083_v49 = vld [vmem:[%s5090_s0 + $0xd1] ss:$2 sm:$0xff] }
  0x17   :  { %v493_v62 = vadd.f32 %v477_v39, %v457_v53  ;;  %v3053_v7 = vsel %vm197_vm0, 0.0, %v169_v56  ;;  %v306_v10 = vmul.f32 %v3043_v52, %v2924_v24  ;;  %v203_v9 = vsel %vm197_vm0, 0.0, %v170_v60  ;;  %v2766_v56 = vld [vmem:[%s5090_s0 + $0xf1] ss:$2 sm:$0xff] }
  0x18   :  { %v3057_v27 = vadd.f32 %v551_v3, %v531_v57  ;;  %v424_v32 = vadd.f32 %v408_v31, %v388_v59  ;;  %v267_v23 = vsel %vm197_vm0, 0.0, %v235_v61  ;;  %v287_v12 = vmul.f32 %v2918_v20, %v3053_v7 }
  0x19   :  { %v529_v33 = vadd.f32 %v513_v19, %v493_v62  ;;  %v288_v3 = vmul.f32 %v2918_v20, %v203_v9  ;;  %v307_v34 = vmul.f32 %v2748_v63, %v2924_v24  ;;  %v516_v41 = vmul.f32 %v2746_v40, %v2975_v51 }
  0x1a   :  { %593 = vperm.xlu1 %2786, %v3057_v27   ;;  %v460_v39 = vadd.f32 %v444_v55, %v424_v32  ;;  %v340_v43 = vmul.f32 %v3022_v37, %v2927_v25  ;;  %v341_v19 = vmul.f32 %v3035_v46, %v2927_v25  ;;  %v321_v31 = vadd.f32 %v306_v10, %v287_v12  ;;  %v3091_v55 = vld [vmem:[%s5090_s0 + $0xd0] ss:$2 sm:$0xff] }
  0x1b   :  { %v3085_v50 = vadd.f32 %v549_v42, %v529_v33  ;;  %v322_v53 = vadd.f32 %v307_v34, %v288_v3  ;;  %v374_v40 = vmul.f32 %v2930_v26, %v267_v23 }
  0x1d   :  { %5205 = vst [vmem:[#allocation10_spill] sm:$0xff] %v3085_v50 }
  0x1e   :  { %7 = vsyncpa [#allocation3], 0  ;;  %v496_v57 = vadd.f32 %v480_v0, %v460_v39  ;;  %v552_v59 = vmul.f32 %v2970_v47, %v2989_v58  ;;  %v410_v42 = vmul.f32 %v2716_v5, %v2937_v29  ;;  %v446_v60 = vmul.f32 %v2732_v45, %v2953_v36  ;;  %698 = vperm.xlu0 %2787, %v3085_v50   ;;  %v2718_v0 = vld [vmem:[%s5090_s0 + $0xe0] ss:$2 sm:$0xff]  ;;  %v2736_v39 = vld [vmem:[%s5090_s0 + $0x121] ss:$2 sm:$0xff] }
  0x1f   :  { %v355_v61 = vadd.f32 %v340_v43, %v321_v31  ;;  %v3101_v62 = vadd.f32 %v341_v19, %v322_v53  ;;  %v482_v10 = vmul.f32 %v2960_v38, %v203_v9  ;;  %v171_v32 = vrot.slane %v3083_v49, 7  ;;  %v3133_v53 = vld [vmem:[%s5090_s0 + $0x110] ss:$2 sm:$0xff]  ;;  %s2857_s18 = smov [#allocation2]  }
  0x20   :  { %v532_v23 = vadd.f32 %v516_v41, %v496_v57  ;;  %v172_v33 = vrot.slane %v2766_v56, 7  ;;  %v237_v12 = vrot.slane %v2734_v48, 7  ;;  %v308_v5 = vmul.f32 %v3091_v55, %v2924_v24  ;;  %v3122_v41 = vld [vmem:[%s5090_s0 + $0x111] ss:$2 sm:$0xff]  ;;  %s2673_s19 = sshll.u32 %s2857_s18, 4  ;;  %s2674_s19 = int_to_ptr.vmem [resolvable:$true] %s2673_s19 }
  0x21   :  { %v390_v45 = vadd.f32 %v374_v40, %v355_v61  ;;  %v518_v3 = vmul.f32 %v2748_v63, %v2975_v51  ;;  %v3112_v34 = vsel %vm197_vm0, 0.0, %v171_v32  ;;  %v342_v9 = vmul.f32 %v3083_v49, %v2927_v25  ;;  %v3138_v40 = vld [vmem:[%s5090_s0 + $0x131] ss:$2 sm:$0xff]  ;;  %p2833_p1 = scmp.lt.s32.totalorder %s2674_s19, %s2674_s19 }
  0x22   :  { %v3124_v43 = vadd.f32 %v552_v59, %v532_v23  ;;  %v205_v19 = vsel %vm197_vm0, 0.0, %v172_v33  ;;  %v269_v63 = vsel %vm197_vm0, 0.0, %v237_v12  ;;  %v289_v31 = vmul.f32 %v2918_v20, %v3112_v34 }
  0x23   :  { %v426_v57 = vadd.f32 %v410_v42, %v390_v45  ;;  %v554_v59 = vmul.f32 %v2970_v47, %v3035_v46  ;;  %v376_v61 = vmul.f32 %v2930_v26, %v269_v63  ;;  %v412_v32 = vmul.f32 %v2718_v0, %v2937_v29  ;;  %v2750_v46 = vld [vmem:[%s5090_s0 + $0xf0] ss:$2 sm:$0xff] }
  0x24   :  { %5206 = vst [vmem:[#allocation11_spill] sm:$0xff] %v3124_v43  ;;  %598 = vperm.xlu1 %2786, %v3124_v43   ;;  %710 = vperm.xlu0 %2787, %v3124_v43   ;;  %v323_v23 = vadd.f32 %v308_v5, %v289_v31  ;;  %v448_v33 = vmul.f32 %v2734_v48, %v2953_v36  ;;  %v173_v22 = vrot.slane %v3122_v41, 7  ;;  %v2752_v42 = vld [vmem:[%s5090_s0 + $0x130] ss:$2 sm:$0xff]  ;;  %v174_v0 = vrot.slane %v3138_v40, 7 }
  0x25   :  { %v484_v12 = vmul.f32 %v2960_v38, %v205_v19  ;;  %v462_v30 = vadd.f32 %v446_v60, %v426_v57  ;;  %v239_v45 = vrot.slane %v2736_v39, 7  ;;  %v309_v5 = vmul.f32 %v3133_v53, %v2924_v24  ;;  %v2720_v57 = vld [vmem:[%s5090_s0 + $0x120] ss:$2 sm:$0xff] }
  0x26   :  { %v357_v48 = vadd.f32 %v342_v9, %v323_v23  ;;  %v3159_v19 = vsel %vm197_vm0, 0.0, %v173_v22  ;;  %v310_v60 = vmul.f32 %v2752_v42, %v2924_v24  ;;  %v343_v63 = vmul.f32 %v3122_v41, %v2927_v25 }
  0x27   :  { %v498_v31 = vadd.f32 %v482_v10, %v462_v30  ;;  %v207_v21 = vsel %vm197_vm0, 0.0, %v174_v0  ;;  %v271_v17 = vsel %vm197_vm0, 0.0, %v239_v45  ;;  %v290_v9 = vmul.f32 %v2918_v20, %v3159_v19  ;;  %v3178_v30 = vld [vmem:[%s5090_s0 + $0x151] ss:$2 sm:$0xff] }
  0x28   :  { %v392_v23 = vadd.f32 %v376_v61, %v357_v48  ;;  %v520_v22 = vmul.f32 %v2750_v46, %v2975_v51  ;;  %v291_v2 = vmul.f32 %v2918_v20, %v207_v21  ;;  %v344_v1 = vmul.f32 %v3138_v40, %v2927_v25  ;;  %v2738_v61 = vld [vmem:[%s5090_s0 + $0x161] ss:$2 sm:$0xff]  ;;  %v3188_v46 = vld [vmem:[%s5090_s0 + $0x171] ss:$2 sm:$0xff] }
  0x29   :  { %v534_v10 = vadd.f32 %v518_v3, %v498_v31  ;;  %v556_v0 = vmul.f32 %v2970_v47, %v2766_v56  ;;  %v324_v45 = vadd.f32 %v309_v5, %v290_v9  ;;  %v378_v8 = vmul.f32 %v2930_v26, %v271_v17  ;;  %v3195_v56 = vld [vmem:[%s5090_s0 + $0x150] ss:$2 sm:$0xff] }
  0x2a   :  { %v428_v48 = vadd.f32 %v412_v32, %v392_v23  ;;  %v325_v16 = vadd.f32 %v310_v60, %v291_v2  ;;  %v414_v13 = vmul.f32 %v2720_v57, %v2937_v29  ;;  %v450_v3 = vmul.f32 %v2736_v39, %v2953_v36  ;;  %v2754_v2 = vld [vmem:[%s5090_s0 + $0x170] ss:$2 sm:$0xff] }
  0x2b   :  { %v3197_v17 = vadd.f32 %v554_v59, %v534_v10  ;;  %v358_v5 = vadd.f32 %v343_v63, %v324_v45  ;;  %v486_v31 = vmul.f32 %v2960_v38, %v207_v21  ;;  %v175_v9 = vrot.slane %v3178_v30, 7 }
  0x2c   :  { %v464_v15 = vadd.f32 %v448_v33, %v428_v48  ;;  %v3201_v14 = vadd.f32 %v344_v1, %v325_v16  ;;  %v176_v39 = vrot.slane %v3188_v46, 7  ;;  %v241_v32 = vrot.slane %v2738_v61, 7  ;;  %v2722_v33 = vld [vmem:[%s5090_s0 + $0x160] ss:$2 sm:$0xff] }
  0x2d   :  { %5207 = vst [vmem:[#allocation12_spill] sm:$0xff] %v3197_v17  ;;  %608 = vperm.xlu1 %2786, %v3197_v17   ;;  %718 = vperm.xlu0 %2787, %v3197_v17   ;;  %v394_v59 = vadd.f32 %v378_v8, %v358_v5  ;;  %v3210_v60 = vsel %vm197_vm0, 0.0, %v175_v9  ;;  %v311_v21 = vmul.f32 %v3195_v56, %v2924_v24  ;;  %vm1216_vm1 = vcmask 1046528  }
  0x2e   :  { %v312_v1 = vmul.f32 %v2754_v2, %v2924_v24  ;;  %v500_v16 = vadd.f32 %v484_v12, %v464_v15  ;;  %v209_v63 = vsel %vm197_vm0, 0.0, %v176_v39  ;;  %v273_v57 = vsel %vm197_vm0, 0.0, %v241_v32  ;;  %v3232_v39 = vld [vmem:[%s5090_s0 + $0x191] ss:$2 sm:$0xff] }
  0x2f   :  { %v292_v8 = vmul.f32 %v2918_v20, %v3210_v60  ;;  %v430_v23 = vadd.f32 %v414_v13, %v394_v59  ;;  %v293_v10 = vmul.f32 %v2918_v20, %v209_v63  ;;  %v345_v45 = vmul.f32 %v3178_v30, %v2927_v25  ;;  %5208 = vst [vmem:[#allocation13_spill] sm:$0xff] %v3232_v39  ;;  %v3237_v13 = vld [vmem:[%s5090_s0 + $0x1b1] ss:$2 sm:$0xff] }
  0x30   :  { %v346_v15 = vmul.f32 %v3188_v46, %v2927_v25  ;;  %v536_v12 = vadd.f32 %v520_v22, %v500_v16  ;;  %v522_v48 = vmul.f32 %v2752_v42, %v2975_v51  ;;  %v380_v9 = vmul.f32 %v2930_v26, %v273_v57  ;;  %v3248_v16 = vld [vmem:[%s5090_s0 + $0x190] ss:$2 sm:$0xff] }
  0x31   :  { %v326_v5 = vadd.f32 %v311_v21, %v292_v8  ;;  %v466_v32 = vadd.f32 %v450_v3, %v430_v23  ;;  %v558_v59 = vmul.f32 %v2970_v47, %v3138_v40  ;;  %v327_v22 = vadd.f32 %v312_v1, %v293_v10  ;;  %v2740_v21 = vld [vmem:[%s5090_s0 + $0x1a1] ss:$2 sm:$0xff]  ;;  %5209 = vst [vmem:[#allocation14_spill] sm:$0xff] %v3248_v16 }
  0x32   :  { %v416_v42 = vmul.f32 %v2722_v33, %v2937_v29  ;;  %v3250_v57 = vadd.f32 %v556_v0, %v536_v12  ;;  %v452_v3 = vmul.f32 %v2738_v61, %v2953_v36  ;;  %v488_v23 = vmul.f32 %v2960_v38, %v209_v63  ;;  %v2756_v33 = vld [vmem:[%s5090_s0 + $0x1b0] ss:$2 sm:$0xff] }
  0x33   :  { %v360_v8 = vadd.f32 %v345_v45, %v326_v5  ;;  %v502_v40 = vadd.f32 %v486_v31, %v466_v32  ;;  %v3254_v1 = vadd.f32 %v346_v15, %v327_v22  ;;  %v177_v10 = vrot.slane %v3232_v39, 7 }
  0x34   :  { %5210 = vst [vmem:[#allocation15_spill] sm:$0xff] %v3250_v57  ;;  %v178_v17 = vrot.slane %v3237_v13, 7  ;;  %618 = vperm.xlu1 %2786, %v3250_v57   ;;  %726 = vperm.xlu0 %2787, %v3250_v57   ;;  %v243_v45 = vrot.slane %v2740_v21, 7  ;;  %v313_v61 = vmul.f32 %v3248_v16, %v2924_v24  ;;  %v314_v31 = vmul.f32 %v2756_v33, %v2924_v24 }
  0x35   :  { %v396_v0 = vadd.f32 %v380_v9, %v360_v8  ;;  %v538_v63 = vadd.f32 %v522_v48, %v502_v40  ;;  %v3267_v15 = vsel %vm197_vm0, 0.0, %v177_v10  ;;  %v347_v5 = vmul.f32 %v3232_v39, %v2927_v25  ;;  %v2724_v9 = vld [vmem:[%s5090_s0 + $0x1a0] ss:$2 sm:$0xff]  ;;  %v3282_v40 = vld [vmem:[%s5090_s0 + $0x1d1] ss:$2 sm:$0xff] }
  0x36   :  { %v211_v12 = vsel %vm197_vm0, 0.0, %v178_v17  ;;  %v275_v22 = vsel %vm197_vm0, 0.0, %v243_v45  ;;  %v294_v8 = vmul.f32 %v2918_v20, %v3267_v15  ;;  %v339_v17 = vmul.f32 %v2989_v58, %v2927_v25  ;;  %v2774_v45 = vld [vmem:[%s5090_s0 + $0x1f1] ss:$2 sm:$0xff]  ;;  %v2742_v58 = vld [vmem:[%s5090_s0 + $0x1e1] ss:$2 sm:$0xff] }
  0x37   :  { %v432_v32 = vadd.f32 %v416_v42, %v396_v0  ;;  %v295_v48 = vmul.f32 %v2918_v20, %v211_v12  ;;  %v3286_v42 = vadd.f32 %v558_v59, %v538_v63  ;;  %v524_v10 = vmul.f32 %v2754_v2, %v2975_v51  ;;  %v3301_v2 = vld [vmem:[%s5090_s0 + $0x1d0] ss:$2 sm:$0xff] }
  0x38   :  { %v348_v0 = vmul.f32 %v3237_v13, %v2927_v25  ;;  %v328_v43 = vadd.f32 %v313_v61, %v294_v8  ;;  %v382_v39 = vmul.f32 %v2930_v26, %v275_v22  ;;  %v320_v59 = vadd.f32 %v3027_v44, %v3046_v54 }
  0x39   :  { %5211 = vst [vmem:[#allocation16_spill] sm:$0xff] %v3286_v42  ;;  %v468_v57 = vadd.f32 %v452_v3, %v432_v32  ;;  %v329_v50 = vadd.f32 %v314_v31, %v295_v48  ;;  %628 = vperm.xlu1 %2786, %v3286_v42   ;;  %734 = vperm.xlu0 %2787, %v3286_v42   ;;  %v179_v31 = vrot.slane %v3282_v40, 7  ;;  %v180_v8 = vrot.slane %v2774_v45, 7 }
  0x3a   :  { %v560_v3 = vmul.f32 %v2970_v47, %v3188_v46  ;;  %v418_v61 = vmul.f32 %v2724_v9, %v2937_v29  ;;  %v362_v32 = vadd.f32 %v347_v5, %v328_v43  ;;  %v454_v48 = vmul.f32 %v2740_v21, %v2953_v36 }
  0x3b   :  { %v504_v63 = vadd.f32 %v488_v23, %v468_v57  ;;  %v3311_v22 = vadd.f32 %v348_v0, %v329_v50  ;;  %v3315_v44 = vsel %vm197_vm0, 0.0, %v179_v31  ;;  %v245_v54 = vrot.slane %v2742_v58, 7  ;;  %v2728_v50 = vld [vmem:[%s5090_s0 + $0x21] ss:$2 sm:$0xff] }
  0x3c   :  { %v315_v42 = vmul.f32 %v3301_v2, %v2924_v24  ;;  %v398_v46 = vadd.f32 %v382_v39, %v362_v32  ;;  %v296_v9 = vmul.f32 %v2918_v20, %v3315_v44  ;;  %v349_v43 = vmul.f32 %v3282_v40, %v2927_v25  ;;  %v2726_v24 = vld [vmem:[%s5090_s0 + $0x1e0] ss:$2 sm:$0xff]  ;;  %v2731_v25 = vld [vmem:[%s5090_s0 + $0x81] ss:$2 sm:$0xff] }
  0x3d   :  { %v540_v16 = vadd.f32 %v524_v10, %v504_v63  ;;  %v351_v21 = vadd.f32 %v3005_v28, %v3012_v35  ;;  %v490_v57 = vmul.f32 %v2960_v38, %v211_v12  ;;  %v213_v39 = vsel %vm197_vm0, 0.0, %v180_v8  ;;  %v2712_v35 = vld [vmem:[%s5090_s0 + $0x20] ss:$2 sm:$0xff] }
  0x3e   :  { %v277_v20 = vsel %vm197_vm0, 0.0, %v245_v54  ;;  %v434_v5 = vadd.f32 %v418_v61, %v398_v46  ;;  %v330_v10 = vadd.f32 %v315_v42, %v296_v9  ;;  %v354_v12 = vadd.f32 %v339_v17, %v320_v59  ;;  %v2758_v42 = vld [vmem:[%s5090_s0 + $0x1f0] ss:$2 sm:$0xff] }
  0x3f   :  { %v3337_v23 = vadd.f32 %v560_v3, %v540_v16  ;;  %v384_v28 = vmul.f32 %v2930_v26, %v277_v20  ;;  %v526_v0 = vmul.f32 %v2756_v33, %v2975_v51  ;;  %v562_v31 = vmul.f32 %v2970_v47, %v3237_v13  ;;  %v2715_v33 = vld [vmem:[%s5090_s0 + $0x80] ss:$2 sm:$0xff] }
  0x40   :  { %v231_v63 = vrot.slane %v2728_v50, 7  ;;  %v470_v16 = vadd.f32 %v454_v48, %v434_v5  ;;  %v364_v3 = vadd.f32 %v349_v43, %v330_v10  ;;  %v420_v61 = vmul.f32 %v2726_v24, %v2937_v29  ;;  %v2733_v43 = vld [vmem:[%s5090_s0 + $0xc1] ss:$2 sm:$0xff] }
  0x41   :  { %638 = vperm.xlu1 %2786, %v3337_v23   ;;  %742 = vperm.xlu0 %2787, %v3337_v23   ;;  %v234_v17 = vrot.slane %v2731_v25, 7  ;;  %v456_v13 = vmul.f32 %v2742_v58, %v2953_v36  ;;  %v492_v59 = vmul.f32 %v2960_v38, %v213_v39  ;;  %v406_v8 = vmul.f32 %v2712_v35, %v2937_v29  ;;  %v2717_v35 = vld [vmem:[%s5090_s0 + $0xc0] ss:$2 sm:$0xff] }
  0x42   :  { %v263_v32 = vsel %vm197_vm0, 0.0, %v231_v63  ;;  %v506_v48 = vadd.f32 %v490_v57, %v470_v16  ;;  %v400_v54 = vadd.f32 %v384_v28, %v364_v3  ;;  %v528_v24 = vmul.f32 %v2758_v42, %v2975_v51  ;;  %v2735_v3 = vld [vmem:[%s5090_s0 + $0x101] ss:$2 sm:$0xff] }
  0x43   :  { %v370_v46 = vmul.f32 %v2930_v26, %v263_v32  ;;  %v266_v9 = vsel %vm197_vm0, 0.0, %v234_v17  ;;  %v564_v58 = vmul.f32 %v2970_v47, %v2774_v45  ;;  %v409_v20 = vmul.f32 %v2715_v33, %v2937_v29 }
  0x44   :  { %v373_v39 = vmul.f32 %v2930_v26, %v266_v9  ;;  %v542_v5 = vadd.f32 %v526_v0, %v506_v48  ;;  %v436_v10 = vadd.f32 %v420_v61, %v400_v54  ;;  %v442_v28 = vmul.f32 %v2728_v50, %v2953_v36 }
  0x45   :  { %v386_v57 = vadd.f32 %v370_v46, %v351_v21  ;;  %v478_v63 = vmul.f32 %v2960_v38, %v2893_v11  ;;  %v445_v42 = vmul.f32 %v2731_v25, %v2953_v36  ;;  %v236_v45 = vrot.slane %v2733_v43, 7 }
  0x46   :  { %v389_v16 = vadd.f32 %v373_v39, %v354_v12  ;;  %v3378_v0 = vadd.f32 %v562_v31, %v542_v5  ;;  %v472_v21 = vadd.f32 %v456_v13, %v436_v10  ;;  %v514_v50 = vmul.f32 %v2912_v18, %v2975_v51  ;;  %v2719_v18 = vld [vmem:[%s5090_s0 + $0x100] ss:$2 sm:$0xff]  ;;  %v2737_v39 = vld [vmem:[%s5090_s0 + $0x141] ss:$2 sm:$0xff] }
  0x47   :  { %v422_v61 = vadd.f32 %v406_v8, %v386_v57  ;;  %v481_v17 = vmul.f32 %v2960_v38, %v3053_v7  ;;  %v268_v11 = vsel %vm197_vm0, 0.0, %v236_v45  ;;  %v411_v25 = vmul.f32 %v2717_v35, %v2937_v29 }
  0x48   :  { %v425_v33 = vadd.f32 %v409_v20, %v389_v16  ;;  %648 = vperm.xlu1 %2786, %v3378_v0   ;;  %750 = vperm.xlu0 %2787, %v3378_v0   ;;  %v508_v12 = vadd.f32 %v492_v59, %v472_v21  ;;  %v375_v13 = vmul.f32 %v2930_v26, %v268_v11  ;;  %v238_v32 = vrot.slane %v2735_v3, 7  ;;  %v2721_v16 = vld [vmem:[%s5090_s0 + $0x140] ss:$2 sm:$0xff] }
  0x49   :  { %v458_v31 = vadd.f32 %v442_v28, %v422_v61  ;;  %v550_v7 = vmul.f32 %v2970_v47, %v2881_v4  ;;  %v447_v48 = vmul.f32 %v2733_v43, %v2953_v36  ;;  %v517_v5 = vmul.f32 %v3043_v52, %v2975_v51  ;;  %v2739_v43 = vld [vmem:[%s5090_s0 + $0x181] ss:$2 sm:$0xff] }
  0x4a   :  { %v461_v8 = vadd.f32 %v445_v42, %v425_v33  ;;  %v544_v54 = vadd.f32 %v528_v24, %v508_v12  ;;  %v391_v9 = vadd.f32 %v375_v13, %v3101_v62  ;;  %v270_v59 = vsel %vm197_vm0, 0.0, %v238_v32  ;;  %v2741_v33 = vld [vmem:[%s5090_s0 + $0x1c1] ss:$2 sm:$0xff] }
  0x4b   :  { %v494_v46 = vadd.f32 %v478_v63, %v458_v31  ;;  %v377_v10 = vmul.f32 %v2930_v26, %v270_v59  ;;  %v413_v4 = vmul.f32 %v2719_v18, %v2937_v29  ;;  %v483_v28 = vmul.f32 %v2960_v38, %v3112_v34 }
  0x4c   :  { %v497_v20 = vadd.f32 %v481_v17, %v461_v8  ;;  %v3407_v24 = vadd.f32 %v564_v58, %v544_v54  ;;  %v427_v57 = vadd.f32 %v411_v25, %v391_v9  ;;  %v553_v35 = vmul.f32 %v2970_v47, %v3022_v37  ;;  %v2725_v9 = vld [vmem:[%s5090_s0 + $0x1c0] ss:$2 sm:$0xff] }
  0x4d   :  { %v530_v62 = vadd.f32 %v514_v50, %v494_v46  ;;  %v393_v52 = vadd.f32 %v377_v10, %v2999_v6  ;;  %v449_v63 = vmul.f32 %v2735_v3, %v2953_v36  ;;  %v240_v42 = vrot.slane %v2737_v39, 7  ;;  %v2723_v50 = vld [vmem:[%s5090_s0 + $0x180] ss:$2 sm:$0xff] }
  0x4e   :  { %658 = vperm.xlu1 %2786, %v3407_v24   ;;  %758 = vperm.xlu0 %2787, %v3407_v24   ;;  %v463_v45 = vadd.f32 %v447_v48, %v427_v57  ;;  %v519_v34 = vmul.f32 %v3091_v55, %v2975_v51  ;;  %v242_v37 = vrot.slane %v2739_v43, 7  ;;  %v533_v21 = vadd.f32 %v517_v5, %v497_v20 }
  0x4f   :  { %v3420_v58 = vadd.f32 %v550_v7, %v530_v62  ;;  %v429_v6 = vadd.f32 %v413_v4, %v393_v52  ;;  %v485_v3 = vmul.f32 %v2960_v38, %v3159_v19  ;;  %v272_v61 = vsel %vm197_vm0, 0.0, %v240_v42 }
  0x50   :  { %v499_v17 = vadd.f32 %v483_v28, %v463_v45  ;;  %v555_v55 = vmul.f32 %v2970_v47, %v3083_v49  ;;  %v379_v11 = vmul.f32 %v2930_v26, %v272_v61  ;;  %v415_v25 = vmul.f32 %v2721_v16, %v2937_v29 }
  0x51   :  { %v465_v12 = vadd.f32 %v449_v63, %v429_v6  ;;  %v521_v19 = vmul.f32 %v3133_v53, %v2975_v51  ;;  %v451_v31 = vmul.f32 %v2737_v39, %v2953_v36  ;;  %v274_v13 = vsel %vm197_vm0, 0.0, %v242_v37 }
  0x52   :  { %v5212_v18 = vmov 1   ;;  %v5125_v32 = vmov 2   ;;  %v395_v7 = vadd.f32 %v379_v11, %v3201_v14  ;;  %v381_v49 = vmul.f32 %v2930_v26, %v274_v13 }
  0x53   :  { %2788 = vset.pattern.permute.xlu1 %v5212_v18  ;;  %2790 = vset.pattern.permute.xlu0 %v5125_v32  ;;  %v417_v8 = vmul.f32 %v2723_v50, %v2937_v29  ;;  %v244_v48 = vrot.slane %v2741_v33, 7  ;;  %v3448_v53 = vadd.f32 %v553_v35, %v533_v21  ;;  %v535_v54 = vadd.f32 %v519_v34, %v499_v17  ;;  %v5214_v21 = vld [vmem:[#allocation13_spill] sm:$0xff]  ;;  %v5216_v17 = vld [vmem:[#allocation11_spill] sm:$0xff] }
  0x54   :  { %702 = vperm.xlu1 %2788, %v3420_v58   ;;  %802 = vperm.xlu0 %2790, %v3420_v58   ;;  %v501_v46 = vadd.f32 %v485_v3, %v465_v12  ;;  %v431_v59 = vadd.f32 %v415_v25, %v395_v7  ;;  %v487_v14 = vmul.f32 %v2960_v38, %v3210_v60  ;;  %v5220_v11 = vmov 0  }
  0x55   :  { %v397_v39 = vadd.f32 %v381_v49, %v3254_v1  ;;  %v453_v20 = vmul.f32 %v2739_v43, %v2953_v36  ;;  %v557_v5 = vmul.f32 %v2970_v47, %v3122_v41  ;;  %v523_v10 = vmul.f32 %v3195_v56, %v2975_v51 }
  0x56   :  { %v276_v4 = vsel %vm197_vm0, 0.0, %v244_v48  ;;  %v467_v62 = vadd.f32 %v451_v31, %v431_v59  ;;  %v419_v35 = vmul.f32 %v2725_v9, %v2937_v29  ;;  %v3466_v60 = vadd.f32 %v555_v55, %v535_v54  ;;  %v5213_v29 = vld [vmem:[#allocation14_spill] sm:$0xff]  ;;  %v5219_v55 = vld [vmem:[#allocation16_spill] sm:$0xff] }
  0x57   :  { %v433_v57 = vadd.f32 %v417_v8, %v397_v39  ;;  %v383_v28 = vmul.f32 %v2930_v26, %v276_v4  ;;  %v537_v1 = vadd.f32 %v521_v19, %v501_v46  ;;  %v489_v41 = vmul.f32 %v2960_v38, %v3267_v15 }
  0x58   :  { %706 = vperm.xlu1 %2788, %v3057_v27   ;;  %814 = vperm.xlu0 %2790, %v3448_v53   ;;  %v503_v43 = vadd.f32 %v487_v14, %v467_v62  ;;  %v455_v63 = vmul.f32 %v2741_v33, %v2953_v36  ;;  %v559_v26 = vmul.f32 %v2970_v47, %v3178_v30  ;;  %vm1356_vm2 = vcmask 1045504  }
  0x59   :  { %v469_v56 = vadd.f32 %v453_v20, %v433_v57  ;;  %v399_v52 = vadd.f32 %v383_v28, %v3311_v22  ;;  %v525_v16 = vmul.f32 %v5213_v29, %v2975_v51  ;;  %v491_v45 = vmul.f32 %v2960_v38, %v3315_v44  ;;  %v5223_v29 = vld [vmem:[#allocation7_spill] sm:$0xff] }
  0x5a   :  { %v573_v15 = vadd.f32 %v557_v5, %v537_v1  ;;  %v539_v34 = vadd.f32 %v523_v10, %v503_v43  ;;  %v561_v36 = vmul.f32 %v2970_v47, %v5214_v21  ;;  %v527_v30 = vmul.f32 %v3301_v2, %v2975_v51  ;;  %v5215_v2 = vld [vmem:[#allocation10_spill] sm:$0xff] }
  0x5b   :  { %v435_v42 = vadd.f32 %v419_v35, %v399_v52  ;;  %v505_v37 = vadd.f32 %v489_v41, %v469_v56  ;;  %v563_v50 = vmul.f32 %v2970_v47, %v3282_v40  ;;  %v5123_v51 = vmov 3   ;;  %v5217_v47 = vld [vmem:[#allocation12_spill] sm:$0xff]  ;;  %v5218_v40 = vld [vmem:[#allocation15_spill] sm:$0xff] }
  0x5c   :  { %714 = vperm.xlu1 %2788, %v3448_v53   ;;  %822 = vperm.xlu0 %2790, %v3466_v60   ;;  %v575_v6 = vadd.f32 %v559_v26, %v539_v34  ;;  %v2856_v1 = vmov 0.0   ;;  %v3572_v43 = vld [vmem:[%s5091_s1 + $0xe] sm:$0xff]  ;;  %vm2531_vm3 = vcmask 31744   ;;  %vm2601_vm4 = vcmask 1041409  }
  0x5d   :  { %v471_v22 = vadd.f32 %v455_v63, %v435_v42  ;;  %v541_v3 = vadd.f32 %v525_v16, %v505_v37  ;;  %v1050_v41 = vrot.slane %v2856_v1, 7  ;;  %v3586_v16 = vrot.slane %v3572_v43, %v5223_v29 }
  0x5e   :  { %vm2665_vm5 = vcmask 74752  }
  0x5f   :  { %v507_v38 = vadd.f32 %v491_v45, %v471_v22  ;;  %v577_v44 = vadd.f32 %v561_v36, %v541_v3  ;;  %v3579_v63 = vsel %vm197_vm0, 0.0, %v1050_v41  ;;  %v3582_v26 = vsel %vm197_vm0, %v1050_v41, 0.0  ;;  %v5224_v22 = vld [vmem:[#allocation8_spill] sm:$0xff]  ;;  %v5225_v3 = vld [vmem:[#allocation6_spill] sm:$0xff] }
  0x60   :  { %722 = vperm.xlu1 %2788, %v3466_v60   ;;  %830 = vperm.xlu0 %2790, %v573_v15   ;;  %5221 = vst [vmem:[#allocation14_spill] sm:$0xff] %v3579_v63  ;;  %5222 = vst [vmem:[#allocation13_spill] sm:$0xff] %v3582_v26  ;;  %v1156_v42 = vmul.f32 %v3586_v16, %v3579_v63  ;;  %v1157_v45 = vmul.f32 %v3586_v16, %v3582_v26 }
  0x61   :  { %v543_v61 = vadd.f32 %v527_v30, %v507_v38  ;;  %v3599_v21 = vrot.slane %v3572_v43, %v5224_v22 }
  0x63   :  { %v579_v33 = vadd.f32 %v563_v50, %v543_v61  ;;  %v1296_v30 = vmul.f32 %v3599_v21, %v3579_v63  ;;  %v1218_v61 = vrot.slane %v1157_v45, 1 }
  0x64   :  { %730 = vperm.xlu1 %2788, %v573_v15   ;;  %838 = vperm.xlu0 %2790, %v575_v6  }
  0x65   :  { %v1357_v41 = vrot.slane %v1296_v30, 2 }
  0x68   :  { %738 = vperm.xlu1 %2788, %v575_v6   ;;  %846 = vperm.xlu0 %2790, %v577_v44  }
  0x6c   :  { %746 = vperm.xlu1 %2788, %v577_v44   ;;  %854 = vperm.xlu0 %2790, %v579_v33  }
  0x70   :  { %754 = vperm.xlu1 %2788, %v579_v33   ;;  %2791 = vset.pattern.permute.xlu0 %v5123_v51 }
  0x71   :  { %898 = vperm.xlu0 %2791, %v5215_v2  }
  0x74   :  { %2789 = vset.pattern.permute.xlu1 %v5125_v32 }
  0x75   :  { %798 = vperm.xlu1 %2789, %v5215_v2   ;;  %910 = vperm.xlu0 %2791, %v5216_v17  }
  0x79   :  { %806 = vperm.xlu1 %2789, %v3057_v27   ;;  %918 = vperm.xlu0 %2791, %v5217_v47  }
  0x7d   :  { %810 = vperm.xlu1 %2789, %v5216_v17   ;;  %926 = vperm.xlu0 %2791, %v5218_v40  }
  0x81   :  { %818 = vperm.xlu1 %2789, %v5217_v47   ;;  %934 = vperm.xlu0 %2791, %v5219_v55  }
  0x85   :  { %826 = vperm.xlu1 %2789, %v5218_v40   ;;  %942 = vperm.xlu0 %2791, %v3337_v23  }
  0x89   :  { %834 = vperm.xlu1 %2789, %v5219_v55   ;;  %950 = vperm.xlu0 %2791, %v3378_v0  }
  0x8d   :  { %842 = vperm.xlu1 %2789, %v3337_v23   ;;  %958 = vperm.xlu0 %2791, %v3407_v24  }
  0x91   :  { %850 = vperm.xlu1 %2789, %v3378_v0   ;;  %2793 = vset.pattern.permute.xlu0 %v5220_v11 }
  0x92   :  { %583 = vperm.xlu0 %2793, %v5215_v2   ;;  %v3615_v2 = vrot.slane %v3572_v43, %v5225_v3 }
  0x94   :  { %5226 = vst [vmem:[#allocation10_spill] sm:$0xff] %v3615_v2  ;;  %v1122_v1 = vmul.f32 %v3615_v2, %v3579_v63 }
  0x95   :  { %858 = vperm.xlu1 %2789, %v3407_v24  }
  0x96   :  { %588 = vperm.xlu0 %2793, %v3420_v58  }
  0x99   :  { %2792 = vset.pattern.permute.xlu1 %v5123_v51  ;;  %v3515_v23 = vpop.permute.xlu1 %593  ;;  %v5227_v51 = vld [vmem:[#allocation9_spill] sm:$0xff] }
  0x9a   :  { %902 = vperm.xlu1 %2792, %v3420_v58   ;;  %603 = vperm.xlu0 %2793, %v3448_v53  }
  0x9d   :  { %v3517_v0 = vpop.permute.xlu0 %698 }
  0x9e   :  { %906 = vperm.xlu1 %2792, %v3057_v27   ;;  %613 = vperm.xlu0 %2793, %v3466_v60  }
  0xa2   :  { %914 = vperm.xlu1 %2792, %v3448_v53   ;;  %623 = vperm.xlu0 %2793, %v573_v15  }
  0xa3   :  { %v599_v24 = vpop.permute.xlu1 %598  ;;  %v711_v58 = vpop.permute.xlu0 %710 }
  0xa6   :  { %922 = vperm.xlu1 %2792, %v3466_v60   ;;  %633 = vperm.xlu0 %2793, %v575_v6  }
  0xaa   :  { %930 = vperm.xlu1 %2792, %v573_v15   ;;  %643 = vperm.xlu0 %2793, %v577_v44   ;;  %v14_v15 = vld [vmem:[%s5091_s1 + $0x9] sm:$0xf] }
  0xab   :  { %v3602_v36 = vrot.slane %v14_v15, %v5223_v29  ;;  %v3609_v38 = vrot.slane %v14_v15, %v5225_v3  ;;  %v3624_v45 = vrot.slane %v14_v15, %v5224_v22  ;;  %v3627_v32 = vrot.slane %v14_v15, %v5227_v51  ;;  %v5228_v3 = vld [vmem:[#allocation5_spill] sm:$0xff] }
  0xac   :  { %v609_v25 = vpop.permute.xlu1 %608  ;;  %v719_v27 = vpop.permute.xlu0 %718  ;;  %v3647_v15 = vrot.slane %v3572_v43, %v5227_v51 }
  0xad   :  { %v668_v17 = vmul.f32 %v3609_v38, %v599_v24  ;;  %v768_v47 = vmul.f32 %v3602_v36, %v711_v58  ;;  %v670_v40 = vmul.f32 %v3609_v38, %v609_v25  ;;  %v770_v55 = vmul.f32 %v3602_v36, %v719_v27 }
  0xae   :  { %938 = vperm.xlu1 %2792, %v575_v6   ;;  %653 = vperm.xlu0 %2793, %v579_v33   ;;  %v1297_v6 = vmul.f32 %v3599_v21, %v3582_v26  ;;  %v5229_v58 = vsub.s32 4, %v5228_v3  ;;  %v5230_v26 = vsub.s32 5, %v5228_v3  ;;  %5232 = vst [vmem:[#allocation11_spill] sm:$0xff] %v3647_v15 }
  0xb0   :  { %v3633_v25 = vrot.slane %v3572_v43, %v5229_v58  ;;  %v3638_v30 = vrot.slane %v3572_v43, %v5230_v26 }
  0xb2   :  { %946 = vperm.xlu1 %2792, %v577_v44   ;;  %v1217_v44 = vrot.slane %v1156_v42, 1  ;;  %v1358_v42 = vrot.slane %v1297_v6, 2  ;;  %v5231_v6 = vsub.s32 7, %v5228_v3 }
  0xb3   :  { %v3520_v12 = vpop.permute.xlu1 %618  ;;  %v3522_v19 = vpop.permute.xlu0 %726 }
  0xb4   :  { %v1219_v24 = vsel %vm1216_vm1, %v1217_v44, %v1218_v61  ;;  %v3643_v22 = vrot.slane %v3572_v43, %v5231_v6  ;;  %v784_v44 = vadd.f32 %v768_v47, %v668_v17  ;;  %v786_v61 = vadd.f32 %v770_v55, %v670_v40 }
  0xb5   :  { %v672_v63 = vmul.f32 %v3609_v38, %v3520_v12  ;;  %v772_v26 = vmul.f32 %v3602_v36, %v3522_v19  ;;  %v1359_v18 = vsel %vm1356_vm2, %v1357_v41, %v1358_v42 }
  0xb6   :  { %954 = vperm.xlu1 %2792, %v579_v33  }
  0xb8   :  { %v3525_v31 = vpop.permute.xlu1 %628  ;;  %v3527_v13 = vpop.permute.xlu0 %734 }
  0xb9   :  { %v674_v6 = vmul.f32 %v3609_v38, %v3525_v31  ;;  %v774_v51 = vmul.f32 %v3602_v36, %v3527_v13  ;;  %v3671_v31 = vld [vmem:[%s5091_s1 + $0xd] ss:$0 sm:$0xff] }
  0xba   :  { %2794 = vset.pattern.permute.xlu1 %v5220_v11  ;;  %v1277_v11 = vadd.f32 %v1219_v24, %v1122_v1  ;;  %v5233_v24 = vsub.s32 6, %v5228_v3 }
  0xc0   :  { %v3529_v7 = vpop.permute.xlu1 %638  ;;  %v3531_v49 = vpop.permute.xlu0 %742 }
  0xc1   :  { %v676_v40 = vmul.f32 %v3609_v38, %v3529_v7  ;;  %v776_v12 = vmul.f32 %v3602_v36, %v3531_v49 }
  0xc7   :  { %v3533_v8 = vpop.permute.xlu1 %648  ;;  %v3535_v48 = vpop.permute.xlu0 %750 }
  0xc8   :  { %v678_v19 = vmul.f32 %v3609_v38, %v3533_v8  ;;  %v778_v55 = vmul.f32 %v3602_v36, %v3535_v48  ;;  %v667_v8 = vmul.f32 %v3609_v38, %v3515_v23  ;;  %v3682_v48 = vmul.f32 %v3602_v36, %v3517_v0 }
  0xc9   :  { %v788_v23 = vadd.f32 %v772_v26, %v672_v63 }
  0xca   :  { %v3695_v0 = vadd.f32 %v778_v55, %v678_v19 }
  0xcd   :  { %v3537_v53 = vpop.permute.xlu1 %658  ;;  %v3539_v54 = vpop.permute.xlu0 %758 }
  0xce   :  { %v680_v1 = vmul.f32 %v3609_v38, %v3537_v53  ;;  %v780_v7 = vmul.f32 %v3602_v36, %v3539_v54  ;;  %v3689_v53 = vrot.slane %v3572_v43, %v5233_v24 }
  0xd3   :  { %v3541_v46 = vpop.permute.xlu1 %702  ;;  %v3543_v9 = vpop.permute.xlu0 %802 }
  0xd7   :  { %v3545_v59 = vpop.permute.xlu1 %706  ;;  %v3547_v14 = vpop.permute.xlu0 %814 }
  0xd8   :  { %v767_v42 = vmul.f32 %v3602_v36, %v3545_v59  ;;  %v3697_v59 = vadd.f32 %v780_v7, %v680_v1 }
  0xdb   :  { %v3549_v39 = vpop.permute.xlu1 %714  ;;  %v3551_v20 = vpop.permute.xlu0 %822 }
  0xdf   :  { %v3553_v5 = vpop.permute.xlu1 %722  ;;  %v3555_v10 = vpop.permute.xlu0 %830 }
  0xe3   :  { %v3557_v4 = vpop.permute.xlu1 %730  ;;  %v3559_v62 = vpop.permute.xlu0 %838 }
  0xe7   :  { %v3561_v57 = vpop.permute.xlu1 %738  ;;  %v3563_v28 = vpop.permute.xlu0 %846 }
  0xeb   :  { %v3565_v35 = vpop.permute.xlu1 %746  ;;  %v3567_v60 = vpop.permute.xlu0 %854 }
  0xec   :  { %v3752_v1 = vmul.f32 %v3602_v36, %v3565_v35 }
  0xef   :  { %v3574_v56 = vpop.permute.xlu1 %754 }
  0xf0   :  { %v3576_v52 = vpop.permute.xlu0 %898 }
  0xf4   :  { %v3595_v34 = vpop.permute.xlu1 %798  ;;  %v911_v37 = vpop.permute.xlu0 %910 }
  0xf5   :  { %v968_v17 = vmul.f32 %v3627_v32, %v911_v37 }
  0xf8   :  { %v3611_v50 = vpop.permute.xlu1 %806  ;;  %v919_v33 = vpop.permute.xlu0 %918 }
  0xf9   :  { %v970_v54 = vmul.f32 %v3627_v32, %v919_v33  ;;  %v3702_v33 = vmul.f32 %v3602_v36, %v3541_v46  ;;  %v3720_v46 = vmul.f32 %v3624_v45, %v3551_v20  ;;  %v867_v7 = vmul.f32 %v3624_v45, %v3611_v50 }
  0xfc   :  { %v811_v27 = vpop.permute.xlu1 %810  ;;  %v927_v29 = vpop.permute.xlu0 %926 }
  0xfd   :  { %v868_v58 = vmul.f32 %v3624_v45, %v811_v27 }
  0xff   :  { %v884_v47 = vadd.f32 %v868_v58, %v784_v44  ;;  %v3693_v58 = vadd.f32 %v1359_v18, %v1277_v11  ;;  %v3706_v18 = vmul.f32 %v3624_v45, %v3543_v9  ;;  %v3710_v11 = vmul.f32 %v3624_v45, %v3547_v14 }
 0x100   :  { %v819_v13 = vpop.permute.xlu1 %818  ;;  %v935_v37 = vpop.permute.xlu0 %934  ;;  %v3724_v9 = vmul.f32 %v3602_v36, %v3553_v5  ;;  %v3728_v14 = vmul.f32 %v3624_v45, %v3555_v10  ;;  %v3740_v5 = vmul.f32 %v3602_v36, %v3561_v57  ;;  %v3744_v10 = vmul.f32 %v3624_v45, %v3563_v28 }
 0x101   :  { %v984_v49 = vadd.f32 %v968_v17, %v884_v47  ;;  %v870_v41 = vmul.f32 %v3624_v45, %v819_v13  ;;  %v790_v17 = vadd.f32 %v774_v51, %v674_v6  ;;  %v792_v47 = vadd.f32 %v776_v12, %v676_v40 }
 0x102   :  { %v783_v51 = vadd.f32 %v767_v42, %v667_v8  ;;  %v3716_v40 = vmul.f32 %v3602_v36, %v3549_v39  ;;  %v3736_v39 = vmul.f32 %v3624_v45, %v3559_v62  ;;  %v3756_v62 = vmul.f32 %v3624_v45, %v3567_v60 }
 0x103   :  { %v1004_v27 = vadd.f32 %v3671_v31, %v984_v49  ;;  %v886_v44 = vadd.f32 %v870_v41, %v786_v61  ;;  %v972_v61 = vmul.f32 %v3627_v32, %v927_v29  ;;  %v3760_v57 = vmul.f32 %v3602_v36, %v3574_v56 }
 0x104   :  { %v827_v13 = vpop.permute.xlu1 %826  ;;  %v943_v15 = vpop.permute.xlu0 %942  ;;  %v974_v41 = vmul.f32 %v3627_v32, %v935_v37 }
 0x105   :  { %v1020_v3 = vmax.f32 %v1004_v27, 0.0  ;;  %v986_v2 = vadd.f32 %v970_v54, %v886_v44  ;;  %v872_v43 = vmul.f32 %v3624_v45, %v827_v13  ;;  %v965_v54 = vmul.f32 %v3627_v32, %v3576_v52 }
 0x106   :  { %v865_v44 = vmul.f32 %v3624_v45, %v3595_v34 }
 0x107   :  { %v1054_v63 = vrot.slane %v1020_v3, 7  ;;  %v1006_v26 = vadd.f32 %v3671_v31, %v986_v2  ;;  %v888_v6 = vadd.f32 %v872_v43, %v788_v23  ;;  %v3732_v2 = vmul.f32 %v3602_v36, %v3557_v4 }
 0x108   :  { %v835_v29 = vpop.permute.xlu1 %834  ;;  %v951_v12 = vpop.permute.xlu0 %950  ;;  %v3787_v3 = vadd.f32 %v867_v7, %v783_v51 }
 0x109   :  { %v1022_v20 = vmax.f32 %v1006_v26, 0.0  ;;  %v988_v19 = vadd.f32 %v972_v61, %v888_v6  ;;  %v3747_v55 = vsel %vm197_vm0, %v1054_v63, 0.0  ;;  %v874_v4 = vmul.f32 %v3624_v45, %v835_v29 }
 0x10a   :  { %v3766_v49 = vsel %vm197_vm0, 0.0, %v1054_v63  ;;  %v3771_v60 = vmul.f32 %v3586_v16, %v3747_v55  ;;  %v3778_v50 = vmul.f32 %v3599_v21, %v3747_v55  ;;  %v3782_v37 = vmul.f32 %v3633_v25, %v3747_v55 }
 0x10b   :  { %v1008_v28 = vadd.f32 %v3671_v31, %v988_v19  ;;  %v890_v35 = vadd.f32 %v874_v4, %v790_v17  ;;  %v1056_v24 = vrot.slane %v1022_v20, 7  ;;  %v976_v17 = vmul.f32 %v3627_v32, %v943_v15 }
 0x10c   :  { %v843_v8 = vpop.permute.xlu1 %842  ;;  %v959_v42 = vpop.permute.xlu0 %958  ;;  %5234 = vst [vmem:[#allocation12_spill] sm:$0xff] %v3771_v60  ;;  %5235 = vst [vmem:[#allocation15_spill] sm:$0xff] %v3778_v50  ;;  %v978_v43 = vmul.f32 %v3627_v32, %v951_v12  ;;  %v3793_v61 = vmul.f32 %v3689_v53, %v3766_v49 }
 0x10d   :  { %v1024_v56 = vmax.f32 %v1008_v28, 0.0  ;;  %v876_v36 = vmul.f32 %v3624_v45, %v843_v8  ;;  %5236 = vst [vmem:[#allocation16_spill] sm:$0xff] %v3782_v37  ;;  %v990_v27 = vadd.f32 %v974_v41, %v890_v35  ;;  %v3797_v6 = vsel %vm197_vm0, %v1056_v24, 0.0 }
 0x10e   :  { %5237 = vst [vmem:[#allocation5_spill] sm:$0xff] %v3793_v61  ;;  %5238 = vst [vmem:[#allocation17_spill] sm:$0xff] %v3797_v6  ;;  %v3803_v12 = vsel %vm197_vm0, 0.0, %v1056_v24  ;;  %v3813_v41 = vmul.f32 %v3586_v16, %v3797_v6  ;;  %v3817_v35 = vmul.f32 %v3599_v21, %v3797_v6  ;;  %v3821_v8 = vmul.f32 %v3633_v25, %v3797_v6 }
 0x10f   :  { %v1058_v23 = vrot.slane %v1024_v56, 7  ;;  %v892_v13 = vadd.f32 %v876_v36, %v792_v47  ;;  %v1010_v52 = vadd.f32 %v3671_v31, %v990_v27  ;;  %5239 = vst [vmem:[#allocation18_spill] sm:$0xff] %v3803_v12 }
 0x110   :  { %v851_v63 = vpop.permute.xlu1 %850  ;;  %5241 = vst [vmem:[#allocation20_spill] sm:$0xff] %v3813_v41  ;;  %5242 = vst [vmem:[#allocation21_spill] sm:$0xff] %v3817_v35 }
 0x111   :  { %v992_v34 = vadd.f32 %v976_v17, %v892_v13  ;;  %v878_v15 = vmul.f32 %v3624_v45, %v851_v63  ;;  %v584_v47 = vpop.permute.xlu0 %583  ;;  %v3806_v20 = vsel %vm197_vm0, 0.0, %v1058_v23  ;;  %v1026_v19 = vmax.f32 %v1010_v52, 0.0  ;;  %5243 = vst [vmem:[#allocation22_spill] sm:$0xff] %v3821_v8 }
 0x112   :  { %5240 = vst [vmem:[#allocation19_spill] sm:$0xff] %v3806_v20  ;;  %v665_v7 = vmul.f32 %v3609_v38, %v584_v47  ;;  %v3824_v24 = vsel %vm197_vm0, %v1058_v23, 0.0  ;;  %v3829_v52 = vmul.f32 %v3633_v25, %v3806_v20  ;;  %v980_v63 = vmul.f32 %v3627_v32, %v959_v42 }
 0x113   :  { %v1012_v4 = vadd.f32 %v3671_v31, %v992_v34  ;;  %v894_v28 = vadd.f32 %v878_v15, %v3695_v0  ;;  %5244 = vst [vmem:[#allocation23_spill] sm:$0xff] %v3824_v24  ;;  %v1060_v36 = vrot.slane %v1026_v19, 7  ;;  %v3835_v15 = vmul.f32 %v3643_v22, %v3766_v49 }
 0x114   :  { %v859_v56 = vpop.permute.xlu1 %858  ;;  %v781_v17 = vadd.f32 %v3682_v48, %v665_v7  ;;  %5245 = vst [vmem:[#allocation24_spill] sm:$0xff] %v3829_v52  ;;  %v3839_v23 = vmul.f32 %v3633_v25, %v3824_v24  ;;  %v3843_v48 = vmul.f32 %v3638_v30, %v3824_v24 }
 0x115   :  { %v1028_v0 = vmax.f32 %v1012_v4, 0.0  ;;  %v994_v27 = vadd.f32 %v978_v43, %v894_v28  ;;  %v589_v13 = vpop.permute.xlu0 %588  ;;  %v880_v34 = vmul.f32 %v3624_v45, %v859_v56  ;;  %v3850_v28 = vsel %vm197_vm0, %v1060_v36, 0.0 }
 0x116   :  { %5246 = vst [vmem:[#allocation25_spill] sm:$0xff] %v3839_v23  ;;  %5247 = vst [vmem:[#allocation26_spill] sm:$0xff] %v3843_v48  ;;  %v881_v45 = vadd.f32 %v865_v44, %v781_v17  ;;  %v666_v4 = vmul.f32 %v3609_v38, %v589_v13  ;;  %v3861_v44 = vmul.f32 %v3643_v22, %v3824_v24 }
 0x117   :  { %v1062_v43 = vrot.slane %v1028_v0, 7  ;;  %v1014_v47 = vadd.f32 %v3671_v31, %v994_v27  ;;  %v896_v56 = vadd.f32 %v880_v34, %v3697_v59  ;;  %v3855_v0 = vmul.f32 %v3643_v22, %v3747_v55 }
 0x118   :  { %v981_v34 = vadd.f32 %v965_v54, %v881_v45  ;;  %v3871_v42 = vmul.f32 %v3586_v16, %v3850_v28  ;;  %v782_v29 = vadd.f32 %v3702_v33, %v666_v4  ;;  %v3876_v24 = vmul.f32 %v3599_v21, %v3850_v28 }
 0x119   :  { %v1030_v7 = vmax.f32 %v1014_v47, 0.0  ;;  %v903_v51 = vpop.permute.xlu1 %902  ;;  %v604_v26 = vpop.permute.xlu0 %603  ;;  %v3864_v17 = vsel %vm197_vm0, %v1062_v43, 0.0  ;;  %v996_v19 = vadd.f32 %v980_v63, %v896_v56  ;;  %v3880_v13 = vmul.f32 %v3633_v25, %v3850_v28 }
 0x11a   :  { %5248 = vst [vmem:[#allocation27_spill] sm:$0xff] %v3864_v17  ;;  %5249 = vst [vmem:[#allocation28_spill] sm:$0xff] %v3871_v42  ;;  %v3884_v54 = vmul.f32 %v3586_v16, %v3864_v17  ;;  %v3888_v63 = vsel %vm197_vm0, 0.0, %v1060_v36  ;;  %v3891_v33 = vsel %vm197_vm0, 0.0, %v1062_v43  ;;  %v1001_v4 = vadd.f32 %v3671_v31, %v981_v34 }
 0x11b   :  { %v1064_v27 = vrot.slane %v1030_v7, 7  ;;  %5250 = vst [vmem:[#allocation29_spill] sm:$0xff] %v3876_v24  ;;  %5251 = vst [vmem:[#allocation30_spill] sm:$0xff] %v3880_v13  ;;  %v966_v7 = vmul.f32 %v3627_v32, %v903_v51  ;;  %v3897_v56 = vmul.f32 %v3599_v21, %v3864_v17  ;;  %v1016_v35 = vadd.f32 %v3671_v31, %v996_v19 }
 0x11c   :  { %5252 = vst [vmem:[#allocation31_spill] sm:$0xff] %v3884_v54  ;;  %5253 = vst [vmem:[#allocation32_spill] sm:$0xff] %v3891_v33  ;;  %v882_v41 = vadd.f32 %v3706_v18, %v782_v29  ;;  %v1017_v43 = vmax.f32 %v1001_v4, 0.0  ;;  %v669_v34 = vmul.f32 %v3609_v38, %v604_v26  ;;  %v3912_v19 = vmul.f32 %v3633_v25, %v3864_v17 }
 0x11d   :  { %v907_v45 = vpop.permute.xlu1 %906  ;;  %v614_v59 = vpop.permute.xlu0 %613  ;;  %5254 = vst [vmem:[#allocation33_spill] sm:$0xff] %v3897_v56  ;;  %v3904_v48 = vsel %vm197_vm0, %v1064_v27, 0.0  ;;  %v1032_v36 = vmax.f32 %v1016_v35, 0.0 }
 0x11e   :  { %v967_v47 = vmul.f32 %v3627_v32, %v907_v45  ;;  %5255 = vst [vmem:[#allocation34_spill] sm:$0xff] %v3904_v48  ;;  %5256 = vst [vmem:[#allocation35_spill] sm:$0xff] %v3912_v19  ;;  %v1051_v45 = vrot.slane %v1017_v43, 7  ;;  %v982_v42 = vadd.f32 %v966_v7, %v882_v41  ;;  %v3918_v26 = vmul.f32 %v3586_v16, %v3904_v48 }
 0x11f   :  { %v3922_v52 = vmul.f32 %v3599_v21, %v3904_v48  ;;  %v3926_v51 = vmul.f32 %v3633_v25, %v3904_v48  ;;  %v671_v35 = vmul.f32 %v3609_v38, %v614_v59  ;;  %v3936_v7 = vsel %vm197_vm0, 0.0, %v1064_v27 }
 0x120   :  { %v983_v23 = vadd.f32 %v967_v47, %v3787_v3  ;;  %5257 = vst [vmem:[#allocation36_spill] sm:$0xff] %v3918_v26  ;;  %v3929_v43 = vsel %vm197_vm0, 0.0, %v1051_v45  ;;  %v1102_v41 = vsel %vm197_vm0, %v1051_v45, 0.0  ;;  %v785_v3 = vadd.f32 %v3716_v40, %v669_v34  ;;  %5260 = vst [vmem:[#allocation39_spill] sm:$0xff] %v3936_v7 }
 0x121   :  { %v915_v18 = vpop.permute.xlu1 %914  ;;  %v624_v29 = vpop.permute.xlu0 %623  ;;  %5258 = vst [vmem:[#allocation37_spill] sm:$0xff] %v3922_v52  ;;  %5259 = vst [vmem:[#allocation38_spill] sm:$0xff] %v3926_v51  ;;  %v1158_v4 = vmul.f32 %v3586_v16, %v3929_v43  ;;  %v1159_v33 = vmul.f32 %v3586_v16, %v1102_v41  ;;  %v1066_v56 = vrot.slane %v1032_v36, 7  ;;  %v1002_v54 = vadd.f32 %v3671_v31, %v982_v42  ;;  %v5264_v51 = vld [vmem:[#allocation10_spill] sm:$0xff] }
 0x122   :  { %v1003_v45 = vadd.f32 %v3671_v31, %v983_v23  ;;  %v673_v40 = vmul.f32 %v3609_v38, %v624_v29  ;;  %v969_v7 = vmul.f32 %v3627_v32, %v915_v18  ;;  %v3950_v19 = vmul.f32 %v3599_v21, %v3929_v43 }
 0x123   :  { %v3953_v36 = vmul.f32 %v3599_v21, %v1102_v41  ;;  %v885_v23 = vadd.f32 %v3710_v11, %v785_v3  ;;  %v787_v42 = vadd.f32 %v3724_v9, %v671_v35  ;;  %v1220_v29 = vrot.slane %v1158_v4, 1 }
 0x124   :  { %5261 = vst [vmem:[#allocation40_spill] sm:$0xff] %v3950_v19  ;;  %v1221_v17 = vrot.slane %v1159_v33, 1  ;;  %v3958_v59 = vmul.f32 %v3633_v25, %v1102_v41  ;;  %v3961_v47 = vmul.f32 %v3638_v30, %v1102_v41  ;;  %v3964_v18 = vsel %vm197_vm0, 0.0, %v1066_v56 }
 0x125   :  { %v634_v48 = vpop.permute.xlu0 %633  ;;  %v923_v34 = vpop.permute.xlu1 %922  ;;  %5262 = vst [vmem:[#allocation41_spill] sm:$0xff] %v3953_v36  ;;  %5263 = vst [vmem:[#allocation42_spill] sm:$0xff] %v3964_v18  ;;  %v1018_v27 = vmax.f32 %v1002_v54, 0.0  ;;  %v1019_v52 = vmax.f32 %v1003_v45, 0.0  ;;  %v789_v26 = vadd.f32 %v3732_v2, %v673_v40  ;;  %v3969_v11 = vmul.f32 %v5264_v51, %v3929_v43 }
 0x126   :  { %v3973_v9 = vmul.f32 %v3633_v25, %v3929_v43  ;;  %v3976_v33 = vsel %vm197_vm0, %v1066_v56, 0.0  ;;  %v985_v4 = vadd.f32 %v969_v7, %v885_v23  ;;  %v3981_v40 = vsel %vm1216_vm1, %v1220_v29, %v1221_v17 }
 0x127   :  { %5265 = vst [vmem:[#allocation10_spill] sm:$0xff] %v3969_v11  ;;  %5266 = vst [vmem:[#allocation43_spill] sm:$0xff] %v3976_v33  ;;  %v1052_v35 = vrot.slane %v1018_v27, 7  ;;  %v1053_v45 = vrot.slane %v1019_v52, 7  ;;  %v3987_v56 = vmul.f32 %v3633_v25, %v3964_v18  ;;  %v3991_v7 = vmul.f32 %v3633_v25, %v3976_v33 }
 0x128   :  { %5267 = vst [vmem:[#allocation44_spill] sm:$0xff] %v3981_v40  ;;  %v3995_v27 = vmul.f32 %v3643_v22, %v3976_v33  ;;  %v887_v17 = vadd.f32 %v3720_v46, %v787_v42  ;;  %v1005_v29 = vadd.f32 %v3671_v31, %v985_v4  ;;  %v971_v3 = vmul.f32 %v3627_v32, %v923_v34 }
 0x129   :  { %v644_v41 = vpop.permute.xlu0 %643  ;;  %v931_v2 = vpop.permute.xlu1 %930  ;;  %5268 = vst [vmem:[#allocation45_spill] sm:$0xff] %v3987_v56  ;;  %5269 = vst [vmem:[#allocation46_spill] sm:$0xff] %v3991_v7  ;;  %v3998_v52 = vsel %vm197_vm0, %v1052_v35, 0.0  ;;  %v4002_v23 = vsel %vm197_vm0, %v1053_v45, 0.0  ;;  %v889_v46 = vadd.f32 %v3728_v14, %v789_v26  ;;  %v4018_v42 = vsel %vm197_vm0, 0.0, %v1052_v35 }
 0x12a   :  { %5270 = vst [vmem:[#allocation47_spill] sm:$0xff] %v3995_v27  ;;  %5271 = vst [vmem:[#allocation48_spill] sm:$0xff] %v4002_v23  ;;  %v973_v54 = vmul.f32 %v3627_v32, %v931_v2  ;;  %v4009_v13 = vmul.f32 %v3586_v16, %v3998_v52  ;;  %v4013_v24 = vmul.f32 %v3599_v21, %v3998_v52  ;;  %v4025_v4 = vsel %vm197_vm0, 0.0, %v1053_v45 }
 0x12b   :  { %v675_v27 = vmul.f32 %v3609_v38, %v634_v48  ;;  %v4022_v34 = vmul.f32 %v3633_v25, %v3998_v52  ;;  %v677_v2 = vmul.f32 %v3609_v38, %v644_v41  ;;  %v4030_v56 = vmul.f32 %v3638_v30, %v3998_v52 }
 0x12c   :  { %v4034_v14 = vmul.f32 %v3586_v16, %v4002_v23  ;;  %v4038_v48 = vmul.f32 %v3599_v21, %v4002_v23  ;;  %v4042_v26 = vmul.f32 %v3633_v25, %v4002_v23  ;;  %v4046_v41 = vmul.f32 %v3638_v30, %v4002_v23  ;;  %v5274_v23 = vld [vmem:[#allocation11_spill] sm:$0xff] }
 0x12d   :  { %5272 = vst [vmem:[#allocation49_spill] sm:$0xff] %v4022_v34  ;;  %v654_v7 = vpop.permute.xlu0 %653  ;;  %5273 = vst [vmem:[#allocation50_spill] sm:$0xff] %v4030_v56  ;;  %v1021_v35 = vmax.f32 %v1005_v29, 0.0  ;;  %v987_v45 = vadd.f32 %v971_v3, %v887_v17  ;;  %v989_v33 = vadd.f32 %v973_v54, %v889_v46  ;;  %v791_v50 = vadd.f32 %v3740_v5, %v675_v27  ;;  %v939_v19 = vpop.permute.xlu1 %938 }
 0x12e   :  { %v679_v60 = vmul.f32 %v3609_v38, %v654_v7  ;;  %v1436_v36 = vmul.f32 %v5274_v23, %v3929_v43  ;;  %v4066_v46 = vadd.f32 %v3752_v1, %v677_v2  ;;  %v1536_v1 = vrot.slane %v3973_v9, 1 }
 0x12f   :  { %v1055_v8 = vrot.slane %v1021_v35, 7  ;;  %v1007_v6 = vadd.f32 %v3671_v31, %v987_v45  ;;  %v1009_v12 = vadd.f32 %v3671_v31, %v989_v33  ;;  %v891_v35 = vadd.f32 %v3736_v39, %v791_v50 }
 0x130   :  { %v975_v45 = vmul.f32 %v3627_v32, %v939_v19  ;;  %v4071_v29 = vadd.f32 %v3760_v57, %v679_v60  ;;  %v1452_v17 = vadd.f32 %v1436_v36, %v3693_v58  ;;  %v1620_v39 = vmul.f32 %v3638_v30, %v3929_v43 }
 0x131   :  { %v4062_v38 = vsel %vm197_vm0, %v1055_v8, 0.0  ;;  %v1023_v7 = vmax.f32 %v1007_v6, 0.0  ;;  %v1025_v27 = vmax.f32 %v1009_v12, 0.0  ;;  %v4075_v5 = vsel %vm197_vm0, 0.0, %v1055_v8 }
 0x132   :  { %5275 = vst [vmem:[#allocation11_spill] sm:$0xff] %v4062_v38  ;;  %v4079_v6 = vmul.f32 %v3586_v16, %v4062_v38  ;;  %v4094_v8 = vmul.f32 %v3599_v21, %v4062_v38  ;;  %v4098_v19 = vmul.f32 %v3633_v25, %v4062_v38  ;;  %v4106_v9 = vmul.f32 %v3638_v30, %v4062_v38 }
 0x133   :  { %v1057_v54 = vrot.slane %v1023_v7, 7  ;;  %v1059_v3 = vrot.slane %v1025_v27, 7  ;;  %v991_v56 = vadd.f32 %v975_v45, %v891_v35  ;;  %v5285_v34 = vrot.slane %v3958_v59, 1  ;;  %v4147_v45 = vld [vmem:[%s5091_s1 + $0x16] ss:$0 sm:$0xff] }
 0x134   :  { %5276 = vst [vmem:[#allocation51_spill] sm:$0xff] %v4079_v6  ;;  %5279 = vst [vmem:[#allocation54_spill] sm:$0xff] %v4094_v8  ;;  %v893_v6 = vadd.f32 %v3744_v10, %v4066_v46  ;;  %v895_v10 = vadd.f32 %v3756_v62, %v4071_v29 }
 0x135   :  { %v4085_v50 = vsel %vm197_vm0, 0.0, %v1057_v54  ;;  %v4088_v57 = vsel %vm197_vm0, %v1057_v54, 0.0  ;;  %v1093_v60 = vsel %vm197_vm0, 0.0, %v1059_v3  ;;  %v1110_v12 = vsel %vm197_vm0, %v1059_v3, 0.0  ;;  %5280 = vst [vmem:[#allocation55_spill] sm:$0xff] %v4098_v19  ;;  %5281 = vst [vmem:[#allocation56_spill] sm:$0xff] %v4106_v9 }
 0x136   :  { %5277 = vst [vmem:[#allocation52_spill] sm:$0xff] %v4085_v50  ;;  %5278 = vst [vmem:[#allocation53_spill] sm:$0xff] %v4088_v57  ;;  %v1170_v43 = vmul.f32 %v3586_v16, %v4085_v50  ;;  %v1171_v36 = vmul.f32 %v3586_v16, %v4088_v57  ;;  %v4110_v2 = vmul.f32 %v3599_v21, %v4088_v57 }
 0x137   :  { %v1172_v3 = vmul.f32 %v3586_v16, %v1093_v60  ;;  %v1173_v54 = vmul.f32 %v3586_v16, %v1110_v12  ;;  %v4116_v33 = vmul.f32 %v3633_v25, %v4088_v57  ;;  %v4120_v20 = vmul.f32 %v3638_v30, %v4088_v57 }
 0x138   :  { %5282 = vst [vmem:[#allocation57_spill] sm:$0xff] %v4110_v2  ;;  %v1238_v7 = vrot.slane %v1170_v43, 1  ;;  %v1239_v27 = vrot.slane %v1171_v36, 1  ;;  %v1538_v40 = vsel %vm1216_vm1, %v1536_v1, %v5285_v34  ;;  %v1312_v61 = vmul.f32 %v3599_v21, %v1093_v60 }
 0x139   :  { %5283 = vst [vmem:[#allocation58_spill] sm:$0xff] %v4116_v33  ;;  %5284 = vst [vmem:[#allocation59_spill] sm:$0xff] %v4120_v20  ;;  %v1241_v18 = vrot.slane %v1172_v3, 1  ;;  %v1242_v50 = vrot.slane %v1173_v54, 1  ;;  %v1130_v3 = vmul.f32 %v5264_v51, %v1093_v60  ;;  %v1313_v35 = vmul.f32 %v3599_v21, %v1110_v12 }
 0x13a   :  { %v4134_v59 = vsel %vm1216_vm1, %v1238_v7, %v1239_v27  ;;  %v1444_v1 = vmul.f32 %v5274_v23, %v1093_v60  ;;  %v1488_v36 = vmul.f32 %v3633_v25, %v1093_v60  ;;  %v1011_v37 = vadd.f32 %v3671_v31, %v991_v56  ;;  %v947_v27 = vpop.permute.xlu1 %946 }
 0x13b   :  { %5286 = vst [vmem:[#allocation60_spill] sm:$0xff] %v4134_v59  ;;  %v1243_v54 = vsel %vm1216_vm1, %v1241_v18, %v1242_v50  ;;  %v1600_v57 = vadd.f32 %v1538_v40, %v1452_v17  ;;  %v1381_v43 = vrot.slane %v1312_v61, 2  ;;  %v1489_v11 = vmul.f32 %v3633_v25, %v1110_v12 }
 0x13c   :  { %v1636_v2 = vmul.f32 %v3638_v30, %v1093_v60  ;;  %v1684_v7 = vrot.slane %v1620_v39, 2  ;;  %v1382_v59 = vrot.slane %v1313_v35, 2  ;;  %v1027_v34 = vmax.f32 %v1011_v37, 0.0 }
 0x13d   :  { %v1803_v18 = vmul.f32 %v3643_v22, %v4018_v42  ;;  %v1804_v40 = vmul.f32 %v3643_v22, %v3998_v52  ;;  %v5287_v61 = vrot.slane %v3961_v47, 2  ;;  %v1768_v17 = vmul.f32 %v3689_v53, %v4018_v42 }
 0x13e   :  { %v1943_v37 = vmul.f32 %v4147_v45, %v4018_v42  ;;  %v1944_v39 = vmul.f32 %v4147_v45, %v3998_v52  ;;  %v1061_v50 = vrot.slane %v1027_v34, 7  ;;  %v1637_v33 = vmul.f32 %v3638_v30, %v1110_v12  ;;  %v955_v12 = vpop.permute.xlu1 %954 }
 0x13f   :  { %v1686_v56 = vsel %vm1356_vm2, %v1684_v7, %v5287_v61  ;;  %v1863_v35 = vrot.slane %v1803_v18, 1  ;;  %v1864_v20 = vrot.slane %v1804_v40, 1  ;;  %v977_v47 = vmul.f32 %v3627_v32, %v947_v27 }
 0x140   :  { %v1748_v60 = vadd.f32 %v1686_v56, %v1600_v57  ;;  %v2003_v9 = vrot.slane %v1943_v37, 2  ;;  %v2004_v19 = vrot.slane %v1944_v39, 2  ;;  %v1285_v7 = vadd.f32 %v1243_v54, %v1130_v3 }
 0x141   :  { %v4165_v61 = vsel %vm197_vm0, 0.0, %v1061_v50  ;;  %v1560_v38 = vrot.slane %v1488_v36, 1  ;;  %v1561_v52 = vrot.slane %v1489_v11, 1  ;;  %v4170_v57 = vsel %vm197_vm0, %v1061_v50, 0.0 }
 0x142   :  { %v1783_v8 = vadd.f32 %v1768_v17, %v1748_v60  ;;  %v1865_v34 = vsel %vm1216_vm1, %v1863_v35, %v1864_v20  ;;  %v1383_v18 = vsel %vm1356_vm2, %v1381_v43, %v1382_v59  ;;  %v1708_v40 = vrot.slane %v1636_v2, 2 }
 0x143   :  { %v993_v3 = vadd.f32 %v977_v47, %v893_v6  ;;  %v1709_v54 = vrot.slane %v1637_v33, 2  ;;  %v1176_v56 = vmul.f32 %v3586_v16, %v4165_v61  ;;  %v2005_v17 = vsel %vm1356_vm2, %v2003_v9, %v2004_v19 }
 0x144   :  { %v1923_v27 = vadd.f32 %v1865_v34, %v1783_v8  ;;  %v1177_v11 = vmul.f32 %v3586_v16, %v4170_v57  ;;  %v979_v2 = vmul.f32 %v3627_v32, %v955_v12  ;;  %v4187_v33 = vmul.f32 %v3599_v21, %v4170_v57 }
 0x145   :  { %v1013_v20 = vadd.f32 %v3671_v31, %v993_v3  ;;  %v4191_v6 = vmul.f32 %v3633_v25, %v4170_v57  ;;  %v1460_v8 = vadd.f32 %v1444_v1, %v3693_v58  ;;  %v1562_v62 = vsel %vm1216_vm1, %v1560_v38, %v1561_v52 }
 0x146   :  { %v4181_v46 = vadd.f32 %v2005_v17, %v1923_v27  ;;  %v4197_v29 = vmul.f32 %v3638_v30, %v4170_v57  ;;  %v995_v32 = vadd.f32 %v979_v2, %v895_v10  ;;  %v1819_v9 = vmul.f32 %v3643_v22, %v3888_v63 }
 0x147   :  { %v1029_v19 = vmax.f32 %v1013_v20, 0.0  ;;  %v1608_v43 = vadd.f32 %v1562_v62, %v1460_v8  ;;  %v1820_v36 = vmul.f32 %v3643_v22, %v3850_v28  ;;  %v1959_v58 = vmul.f32 %v4147_v45, %v3888_v63 }
 0x148   :  { %5288 = vst [vmem:[#allocation61_spill] sm:$0xff] %v4181_v46  ;;  %2081 = vperm.xlu1 %2794, %v4181_v46   ;;  %v1960_v38 = vmul.f32 %v4147_v45, %v3850_v28  ;;  %v1247_v59 = vrot.slane %v1176_v56, 1  ;;  %v1015_v37 = vadd.f32 %v3671_v31, %v995_v32  ;;  %v1710_v39 = vsel %vm1356_vm2, %v1708_v40, %v1709_v54 }
 0x149   :  { %v1063_v1 = vrot.slane %v1029_v19, 7  ;;  %v1248_v50 = vrot.slane %v1177_v11, 1  ;;  %v1756_v60 = vadd.f32 %v1710_v39, %v1608_v43  ;;  %v1887_v35 = vrot.slane %v1819_v9, 1 }
 0x14a   :  { %v1888_v47 = vrot.slane %v1820_v36, 1  ;;  %v1031_v12 = vmax.f32 %v1015_v37, 0.0  ;;  %v5289_v27 = vmov 1   ;;  %v1776_v3 = vmul.f32 %v3689_v53, %v3888_v63 }
 0x14b   :  { %v4211_v52 = vsel %vm197_vm0, 0.0, %v1063_v1  ;;  %v4214_v34 = vsel %vm197_vm0, %v1063_v1, 0.0  ;;  %v2027_v54 = vrot.slane %v1959_v58, 2  ;;  %v2028_v56 = vrot.slane %v1960_v38, 2 }
 0x14c   :  { %2796 = vset.pattern.permute.xlu1 %v5289_v27  ;;  %v1180_v31 = vmul.f32 %v3586_v16, %v4211_v52  ;;  %v1181_v40 = vmul.f32 %v3586_v16, %v4214_v34  ;;  %v4225_v17 = vmul.f32 %v3599_v21, %v4214_v34  ;;  %v1065_v10 = vrot.slane %v1031_v12, 7 }
 0x14d   :  { %v1791_v11 = vadd.f32 %v1776_v3, %v1756_v60  ;;  %v1160_v20 = vmul.f32 %v3586_v16, %v4018_v42  ;;  %v4231_v62 = vmul.f32 %v3633_v25, %v4214_v34  ;;  %v1889_v19 = vsel %vm1216_vm1, %v1887_v35, %v1888_v47 }
 0x14e   :  { %v1253_v2 = vrot.slane %v1180_v31, 1  ;;  %v1254_v8 = vrot.slane %v1181_v40, 1  ;;  %v4234_v32 = vadd.f32 %v1383_v18, %v1285_v7  ;;  %v4241_v38 = vmul.f32 %v3638_v30, %v4214_v34 }
 0x14f   :  { %v1931_v36 = vadd.f32 %v1889_v19, %v1791_v11  ;;  %v4244_v1 = vsel %vm197_vm0, 0.0, %v1065_v10  ;;  %v4247_v37 = vsel %vm197_vm0, %v1065_v10, 0.0  ;;  %v4250_v7 = vsel %vm1216_vm1, %v1247_v59, %v1248_v50 }
 0x150   :  { %v2029_v18 = vsel %vm1356_vm2, %v2027_v54, %v2028_v56  ;;  %v1124_v39 = vmul.f32 %v5264_v51, %v4018_v42  ;;  %v1223_v60 = vrot.slane %v1160_v20, 1  ;;  %v4256_v35 = vsel %vm1216_vm1, %v1253_v2, %v1254_v8 }
 0x151   :  { %v4260_v3 = vadd.f32 %v2029_v18, %v1931_v36  ;;  %v4264_v31 = vmul.f32 %v3586_v16, %v4244_v1  ;;  %v4268_v59 = vmul.f32 %v3586_v16, %v4247_v37  ;;  %v5291_v50 = vrot.slane %v4009_v13, 1 }
 0x152   :  { %v1300_v54 = vmul.f32 %v3599_v21, %v4018_v42  ;;  %v4278_v10 = vmul.f32 %v3599_v21, %v4247_v37  ;;  %v4282_v11 = vmul.f32 %v3633_v25, %v4247_v37  ;;  %v4288_v20 = vmul.f32 %v3638_v30, %v4247_v37 }
 0x153   :  { %5290 = vst [vmem:[#allocation62_spill] sm:$0xff] %v4260_v3  ;;  %v1225_v40 = vsel %vm1216_vm1, %v1223_v60, %v5291_v50  ;;  %2228 = vperm.xlu1 %2796, %v4260_v3   ;;  %2121 = vperm.xlu0 %2793, %v4260_v3   ;;  %v1476_v8 = vmul.f32 %v3633_v25, %v4025_v4  ;;  %v5294_v50 = vrot.slane %v4013_v24, 2  ;;  %v5295_v12 = vmov 0  }
 0x154   :  { %5292 = vst [vmem:[#allocation63_spill] sm:$0xff] %v4278_v10  ;;  %v1279_v13 = vadd.f32 %v1225_v40, %v1124_v39  ;;  %5293 = vst [vmem:[#allocation64_spill] sm:$0xff] %v4288_v20  ;;  %v1363_v2 = vrot.slane %v1300_v54, 2  ;;  %v1624_v19 = vmul.f32 %v3638_v30, %v4025_v4  ;;  %v1438_v36 = vmul.f32 %v5274_v23, %v4025_v4  ;;  %v5310_v20 = vld [vmem:[#allocation40_spill] sm:$0xff] }
 0x155   :  { %v1947_v18 = vmul.f32 %v4147_v45, %v3766_v49  ;;  %v1162_v39 = vmul.f32 %v3586_v16, %v4025_v4  ;;  %v1542_v54 = vrot.slane %v1476_v8, 1  ;;  %v1302_v56 = vmul.f32 %v3599_v21, %v4025_v4 }
 0x156   :  { %v1365_v40 = vsel %vm1356_vm2, %v1363_v2, %v5294_v50  ;;  %v1690_v47 = vrot.slane %v1624_v19, 2  ;;  %v5296_v58 = vrot.slane %v3855_v0, 1  ;;  %v5297_v43 = vrot.slane %v3835_v15, 1 }
 0x157   :  { %2798 = vset.pattern.permute.xlu1 %v5295_v12  ;;  %2795 = vset.pattern.permute.xlu0 %v5289_v27  ;;  %v1419_v9 = vadd.f32 %v1365_v40, %v1279_v13  ;;  %v1948_v24 = vmul.f32 %v4147_v45, %v3747_v55  ;;  %v1226_v2 = vrot.slane %v1162_v39, 1  ;;  %v5298_v8 = vrot.slane %v4042_v26, 1 }
 0x158   :  { %v1871_v60 = vsel %vm1216_vm1, %v5297_v43, %v5296_v58  ;;  %v2009_v50 = vrot.slane %v1947_v18, 2  ;;  %2196 = vperm.xlu0 %2795, %v4181_v46   ;;  %v1125_v13 = vmul.f32 %v5264_v51, %v4025_v4  ;;  %v1366_v40 = vrot.slane %v1302_v56, 2 }
 0x159   :  { %v1544_v19 = vsel %vm1216_vm1, %v1542_v54, %v5298_v8  ;;  %v1454_v0 = vadd.f32 %v1438_v36, %v1419_v9  ;;  %v5299_v15 = vrot.slane %v4046_v41, 2  ;;  %v5300_v58 = vrot.slane %v4034_v14, 1 }
 0x15a   :  { %v1478_v26 = vmul.f32 %v3633_v25, %v3766_v49  ;;  %v1439_v18 = vmul.f32 %v5274_v23, %v3766_v49  ;;  %v1626_v8 = vmul.f32 %v3638_v30, %v3766_v49  ;;  %v1627_v9 = vmul.f32 %v3638_v30, %v3747_v55  ;;  %v5303_v55 = vld [vmem:[#allocation16_spill] sm:$0xff] }
 0x15b   :  { %v1692_v43 = vsel %vm1356_vm2, %v1690_v47, %v5299_v15  ;;  %v1228_v39 = vsel %vm1216_vm1, %v1226_v2, %v5300_v58  ;;  %v1602_v41 = vadd.f32 %v1544_v19, %v1454_v0  ;;  %v5301_v47 = vrot.slane %v4038_v48, 2  ;;  %v5302_v58 = vld [vmem:[#allocation11_spill] sm:$0xff] }
 0x15c   :  { %v1280_v54 = vadd.f32 %v1228_v39, %v1125_v13  ;;  %v1545_v56 = vrot.slane %v1478_v26, 1  ;;  %v1809_v36 = vmul.f32 %v3643_v22, %v4075_v5  ;;  %v1693_v13 = vrot.slane %v1626_v8, 2  ;;  %2797 = vset.pattern.permute.xlu0 %v5295_v12 }
 0x15d   :  { %v1368_v14 = vsel %vm1356_vm2, %v1366_v40, %v5301_v47  ;;  %v1694_v15 = vrot.slane %v1627_v9, 2  ;;  %v1810_v39 = vmul.f32 %v3643_v22, %v5302_v58  ;;  %v1750_v46 = vadd.f32 %v1692_v43, %v1602_v41  ;;  %v5305_v9 = vld [vmem:[#allocation5_spill] sm:$0xff]  ;;  %v5306_v43 = vld [vmem:[#allocation10_spill] sm:$0xff] }
 0x15e   :  { %v1420_v2 = vadd.f32 %v1368_v14, %v1280_v54  ;;  %v2010_v3 = vrot.slane %v1948_v24, 2  ;;  %v5304_v19 = vrot.slane %v5303_v55, 1  ;;  %v1949_v40 = vmul.f32 %v4147_v45, %v4075_v5  ;;  %v5307_v24 = vld [vmem:[#allocation44_spill] sm:$0xff] }
 0x15f   :  { %v1695_v26 = vsel %vm1356_vm2, %v1693_v13, %v1694_v15  ;;  %v1872_v54 = vrot.slane %v1809_v36, 1  ;;  %v1950_v8 = vmul.f32 %v4147_v45, %v5302_v58  ;;  %v1785_v47 = vadd.f32 %v5305_v9, %v1750_v46 }
 0x160   :  { %v1547_v48 = vsel %vm1216_vm1, %v1545_v56, %v5304_v19  ;;  %v1455_v0 = vadd.f32 %v1439_v18, %v1420_v2  ;;  %v1873_v14 = vrot.slane %v1810_v39, 1  ;;  %v2012_v12 = vrot.slane %v1949_v40, 2  ;;  %v5308_v56 = vld [vmem:[#allocation41_spill] sm:$0xff] }
 0x161   :  { %v1278_v41 = vadd.f32 %v5307_v24, %v5306_v43  ;;  %v2013_v27 = vrot.slane %v1950_v8, 2  ;;  %v5309_v19 = vrot.slane %v5308_v56, 2  ;;  %v5311_v10 = vrot.slane %v5310_v20, 2 }
 0x162   :  { %v1603_v55 = vadd.f32 %v1547_v48, %v1455_v0  ;;  %v1437_v36 = vmul.f32 %v5274_v23, %v4018_v42  ;;  %v1925_v2 = vadd.f32 %v1871_v60, %v1785_v47  ;;  %v1474_v46 = vmul.f32 %v3633_v25, %v4018_v42  ;;  %v5313_v47 = vld [vmem:[#allocation48_spill] sm:$0xff] }
 0x163   :  { %v1362_v18 = vsel %vm1356_vm2, %v5311_v10, %v5309_v19  ;;  %v1622_v15 = vmul.f32 %v3638_v30, %v4018_v42  ;;  %v2011_v58 = vsel %vm1356_vm2, %v2009_v50, %v2010_v3  ;;  %v1771_v48 = vmul.f32 %v3689_v53, %v4075_v5 }
 0x164   :  { %v1418_v13 = vadd.f32 %v1362_v18, %v1278_v41  ;;  %v1751_v39 = vadd.f32 %v1695_v26, %v1603_v55  ;;  %v1805_v10 = vmul.f32 %v3643_v22, %v4025_v4  ;;  %v4370_v20 = vadd.f32 %v2011_v58, %v1925_v2  ;;  %v5314_v26 = vld [vmem:[#allocation49_spill] sm:$0xff] }
 0x165   :  { %v1539_v60 = vrot.slane %v1474_v46, 1  ;;  %v1687_v0 = vrot.slane %v1622_v15, 2  ;;  %v1874_v9 = vsel %vm1216_vm1, %v1872_v54, %v1873_v14  ;;  %v1806_v42 = vmul.f32 %v3643_v22, %v5313_v47  ;;  %v5316_v14 = vld [vmem:[#allocation50_spill] sm:$0xff] }
 0x166   :  { %5312 = vst [vmem:[#allocation11_spill] sm:$0xff] %v4370_v20  ;;  %v1453_v40 = vadd.f32 %v1437_v36, %v1418_v13  ;;  %v1786_v8 = vadd.f32 %v1771_v48, %v1751_v39  ;;  %v1945_v3 = vmul.f32 %v4147_v45, %v4025_v4  ;;  %2091 = vperm.xlu1 %2798, %v4370_v20   ;;  %v5315_v43 = vrot.slane %v5314_v26, 1  ;;  %v5318_v39 = vld [vmem:[#allocation18_spill] sm:$0xff]  ;;  %v5320_v26 = vld [vmem:[#allocation51_spill] sm:$0xff] }
 0x167   :  { %v2014_v50 = vsel %vm1356_vm2, %v2012_v12, %v2013_v27  ;;  %v1866_v41 = vrot.slane %v1805_v10, 1  ;;  %v1946_v55 = vmul.f32 %v4147_v45, %v5313_v47  ;;  %v5317_v19 = vrot.slane %v5316_v14, 2 }
 0x168   :  { %v1541_v24 = vsel %vm1216_vm1, %v1539_v60, %v5315_v43  ;;  %v1926_v56 = vadd.f32 %v1874_v9, %v1786_v8  ;;  %v1867_v36 = vrot.slane %v1806_v42, 1  ;;  %v2006_v2 = vrot.slane %v1945_v3, 2  ;;  %v5319_v42 = vld [vmem:[#allocation17_spill] sm:$0xff] }
 0x169   :  { %v1601_v54 = vadd.f32 %v1541_v24, %v1453_v40  ;;  %v1689_v18 = vsel %vm1356_vm2, %v1687_v0, %v5317_v19  ;;  %v2007_v13 = vrot.slane %v1946_v55, 2  ;;  %v1166_v27 = vmul.f32 %v3586_v16, %v4075_v5  ;;  %v5322_v55 = vld [vmem:[#allocation52_spill] sm:$0xff]  ;;  %v5323_v19 = vld [vmem:[#allocation54_spill] sm:$0xff] }
 0x16a   :  { %v1306_v12 = vmul.f32 %v3599_v21, %v4075_v5  ;;  %v4391_v46 = vadd.f32 %v2014_v50, %v1926_v56  ;;  %v1769_v58 = vmul.f32 %v3689_v53, %v4025_v4  ;;  %v1482_v48 = vmul.f32 %v3633_v25, %v5318_v39 }
 0x16b   :  { %v1749_v15 = vadd.f32 %v1689_v18, %v1601_v54  ;;  %v1127_v10 = vmul.f32 %v5264_v51, %v4075_v5  ;;  %v1232_v40 = vrot.slane %v1166_v27, 1  ;;  %v1630_v0 = vmul.f32 %v3638_v30, %v5318_v39 }
 0x16c   :  { %v1372_v60 = vrot.slane %v1306_v12, 2  ;;  %2096 = vperm.xlu1 %2798, %v4391_v46   ;;  %v1441_v9 = vmul.f32 %v5274_v23, %v5318_v39  ;;  %v1551_v47 = vrot.slane %v1482_v48, 1  ;;  %v1631_v4 = vmul.f32 %v3638_v30, %v5319_v42 }
 0x16d   :  { %v1784_v8 = vadd.f32 %v1769_v58, %v1749_v15  ;;  %v1868_v3 = vsel %vm1216_vm1, %v1866_v41, %v1867_v36  ;;  %v2008_v50 = vsel %vm1356_vm2, %v2006_v2, %v2007_v13  ;;  %v5321_v43 = vrot.slane %v5320_v26, 1  ;;  %v5325_v58 = vld [vmem:[#allocation53_spill] sm:$0xff] }
 0x16e   :  { %v1813_v56 = vmul.f32 %v3643_v22, %v5322_v55  ;;  %v5324_v18 = vrot.slane %v5323_v19, 2  ;;  %v1699_v12 = vrot.slane %v1630_v0, 2  ;;  %v1700_v15 = vrot.slane %v1631_v4, 2 }
 0x16f   :  { %v1234_v24 = vsel %vm1216_vm1, %v1232_v40, %v5321_v43  ;;  %v1924_v54 = vadd.f32 %v1868_v3, %v1784_v8  ;;  %v1814_v41 = vmul.f32 %v3643_v22, %v5325_v58  ;;  %v1953_v36 = vmul.f32 %v4147_v45, %v5322_v55  ;;  %v5326_v40 = vld [vmem:[#allocation22_spill] sm:$0xff] }
 0x170   :  { %v1282_v14 = vadd.f32 %v1234_v24, %v1127_v10  ;;  %v1374_v27 = vsel %vm1356_vm2, %v1372_v60, %v5324_v18  ;;  %v1954_v2 = vmul.f32 %v4147_v45, %v5325_v58  ;;  %v5327_v10 = vrot.slane %v5326_v40, 1 }
 0x171   :  { %v4422_v13 = vadd.f32 %v2008_v50, %v1924_v54  ;;  %v1773_v60 = vmul.f32 %v3689_v53, %v5322_v55  ;;  %v1878_v0 = vrot.slane %v1813_v56, 1  ;;  %v1879_v4 = vrot.slane %v1814_v41, 1  ;;  %v5328_v41 = vld [vmem:[#allocation12_spill] sm:$0xff] }
 0x172   :  { %v1422_v48 = vadd.f32 %v1374_v27, %v1282_v14  ;;  %v1553_v8 = vsel %vm1216_vm1, %v1551_v47, %v5327_v10  ;;  %v2018_v3 = vrot.slane %v1953_v36, 2  ;;  %v1164_v26 = vmul.f32 %v3586_v16, %v3766_v49 }
 0x173   :  { %2086 = vperm.xlu0 %2797, %v4422_v13   ;;  %v2019_v24 = vrot.slane %v1954_v2, 2  ;;  %v1304_v50 = vmul.f32 %v3599_v21, %v3766_v49  ;;  %v1480_v54 = vmul.f32 %v3633_v25, %v4075_v5  ;;  %v1701_v47 = vsel %vm1356_vm2, %v1699_v12, %v1700_v15 }
 0x174   :  { %v1457_v43 = vadd.f32 %v1441_v9, %v1422_v48  ;;  %v1126_v56 = vmul.f32 %v5264_v51, %v3766_v49  ;;  %v1229_v14 = vrot.slane %v1164_v26, 1  ;;  %v1628_v19 = vmul.f32 %v3638_v30, %v4075_v5  ;;  %v5330_v26 = vld [vmem:[#allocation15_spill] sm:$0xff] }
 0x175   :  { %v1369_v27 = vrot.slane %v1304_v50, 2  ;;  %v1440_v9 = vmul.f32 %v5274_v23, %v4075_v5  ;;  %v1548_v58 = vrot.slane %v1480_v54, 1  ;;  %v5329_v36 = vrot.slane %v5328_v41, 1 }
 0x176   :  { %v1605_v18 = vadd.f32 %v1553_v8, %v1457_v43  ;;  %v1696_v48 = vrot.slane %v1628_v19, 2  ;;  %v1811_v12 = vmul.f32 %v3643_v22, %v5318_v39  ;;  %v1812_v49 = vmul.f32 %v3643_v22, %v5319_v42 }
 0x177   :  { %v1231_v2 = vsel %vm1216_vm1, %v1229_v14, %v5329_v36  ;;  %v1880_v40 = vsel %vm1216_vm1, %v1878_v0, %v1879_v4  ;;  %v2020_v10 = vsel %vm1356_vm2, %v2018_v3, %v2019_v24  ;;  %v5331_v5 = vrot.slane %v5330_v26, 2  ;;  %v5332_v4 = vld [vmem:[#allocation55_spill] sm:$0xff] }
 0x178   :  { %v1753_v15 = vadd.f32 %v1701_v47, %v1605_v18  ;;  %v1281_v8 = vadd.f32 %v1231_v2, %v1126_v56  ;;  %v1875_v50 = vrot.slane %v1811_v12, 1  ;;  %v1876_v54 = vrot.slane %v1812_v49, 1  ;;  %v5334_v47 = vld [vmem:[#allocation56_spill] sm:$0xff] }
 0x179   :  { %v1371_v43 = vsel %vm1356_vm2, %v1369_v27, %v5331_v5  ;;  %v1951_v14 = vmul.f32 %v4147_v45, %v5318_v39  ;;  %v1952_v36 = vmul.f32 %v4147_v45, %v5319_v42  ;;  %v1129_v0 = vmul.f32 %v5264_v51, %v5322_v55  ;;  %v5336_v49 = vld [vmem:[#allocation60_spill] sm:$0xff] }
 0x17a   :  { %v1788_v19 = vadd.f32 %v1773_v60, %v1753_v15  ;;  %v1421_v41 = vadd.f32 %v1371_v43, %v1281_v8  ;;  %v5333_v3 = vrot.slane %v5332_v4, 1  ;;  %v5335_v56 = vrot.slane %v5334_v47, 2  ;;  %v5338_v47 = vld [vmem:[#allocation14_spill] sm:$0xff] }
 0x17b   :  { %v1772_v27 = vmul.f32 %v3689_v53, %v5318_v39  ;;  %v1310_v60 = vmul.f32 %v3599_v21, %v5322_v55  ;;  %v1877_v42 = vsel %vm1216_vm1, %v1875_v50, %v1876_v54  ;;  %v1284_v15 = vadd.f32 %v5336_v49, %v1129_v0 }
 0x17c   :  { %v1550_v24 = vsel %vm1216_vm1, %v1548_v58, %v5333_v3  ;;  %v1698_v18 = vsel %vm1356_vm2, %v1696_v48, %v5335_v56  ;;  %v1928_v2 = vadd.f32 %v1880_v40, %v1788_v19  ;;  %v1456_v12 = vadd.f32 %v1440_v9, %v1421_v41  ;;  %v5337_v58 = vld [vmem:[#allocation19_spill] sm:$0xff]  ;;  %v5339_v9 = vld [vmem:[#allocation57_spill] sm:$0xff] }
 0x17d   :  { %v2015_v8 = vrot.slane %v1951_v14, 2  ;;  %v2016_v26 = vrot.slane %v1952_v36, 2  ;;  %v1378_v5 = vrot.slane %v1310_v60, 2  ;;  %v1634_v43 = vmul.f32 %v3638_v30, %v5337_v58  ;;  %v5341_v14 = vld [vmem:[#allocation13_spill] sm:$0xff]  ;;  %v5344_v60 = vld [vmem:[#allocation24_spill] sm:$0xff] }
 0x17e   :  { %v4475_v4 = vadd.f32 %v2020_v10, %v1928_v2  ;;  %v1604_v48 = vadd.f32 %v1550_v24, %v1456_v12  ;;  %v1443_v3 = vmul.f32 %v5274_v23, %v5337_v58  ;;  %v1817_v40 = vmul.f32 %v3643_v22, %v5338_v47  ;;  %v5342_v24 = vld [vmem:[#allocation25_spill] sm:$0xff] }
 0x17f   :  { %v5340_v19 = vrot.slane %v5339_v9, 2  ;;  %v1705_v54 = vrot.slane %v1634_v43, 2  ;;  %v1818_v41 = vmul.f32 %v3643_v22, %v5341_v14  ;;  %v1957_v36 = vmul.f32 %v4147_v45, %v5338_v47 }
 0x180   :  { %2106 = vperm.xlu1 %2798, %v4475_v4   ;;  %v1752_v10 = vadd.f32 %v1698_v18, %v1604_v48  ;;  %v5343_v56 = vrot.slane %v5342_v24, 1  ;;  %v5345_v2 = vrot.slane %v5344_v60, 1  ;;  %v1958_v49 = vmul.f32 %v4147_v45, %v5341_v14 }
 0x181   :  { %v1380_v50 = vsel %vm1356_vm2, %v1378_v5, %v5340_v19  ;;  %v2017_v5 = vsel %vm1356_vm2, %v2015_v8, %v2016_v26  ;;  %v4499_v43 = vmul.f32 %v3689_v53, %v5338_v47  ;;  %v1884_v9 = vrot.slane %v1817_v40, 1 }
 0x182   :  { %v1424_v0 = vadd.f32 %v1380_v50, %v1284_v15  ;;  %v1559_v12 = vsel %vm1216_vm1, %v5345_v2, %v5343_v56  ;;  %v1885_v19 = vrot.slane %v1818_v41, 1  ;;  %v1787_v20 = vadd.f32 %v1772_v27, %v1752_v10  ;;  %v5346_v15 = vld [vmem:[#allocation26_spill] sm:$0xff]  ;;  %v5348_v2 = vld [vmem:[#allocation20_spill] sm:$0xff] }
 0x183   :  { %v5347_v48 = vrot.slane %v5346_v15, 2  ;;  %v1168_v24 = vmul.f32 %v3586_v16, %v5318_v39  ;;  %v2024_v56 = vrot.slane %v1957_v36, 2  ;;  %v2025_v60 = vrot.slane %v1958_v49, 2 }
 0x184   :  { %v1459_v18 = vadd.f32 %v1443_v3, %v1424_v0  ;;  %v1308_v8 = vmul.f32 %v3599_v21, %v5318_v39  ;;  %v1484_v26 = vmul.f32 %v3633_v25, %v5322_v55  ;;  %v1927_v47 = vadd.f32 %v1877_v42, %v1787_v20 }
 0x185   :  { %v1707_v50 = vsel %vm1356_vm2, %v1705_v54, %v5347_v48  ;;  %v1128_v27 = vmul.f32 %v5264_v51, %v5318_v39  ;;  %v1235_v3 = vrot.slane %v1168_v24, 1  ;;  %v4513_v14 = vsel %vm1216_vm1, %v1884_v9, %v1885_v19  ;;  %v5350_v9 = vld [vmem:[#allocation21_spill] sm:$0xff]  ;;  %v5352_v24 = vld [vmem:[#allocation23_spill] sm:$0xff] }
 0x186   :  { %v1607_v40 = vadd.f32 %v1559_v12, %v1459_v18  ;;  %v1375_v54 = vrot.slane %v1308_v8, 2  ;;  %v1554_v41 = vrot.slane %v1484_v26, 1  ;;  %v1632_v36 = vmul.f32 %v3638_v30, %v5322_v55  ;;  %v5353_v8 = vld [vmem:[#allocation58_spill] sm:$0xff] }
 0x187   :  { %v4517_v10 = vadd.f32 %v2017_v5, %v1927_v47  ;;  %v5349_v49 = vrot.slane %v5348_v2, 1  ;;  %v1815_v42 = vmul.f32 %v3643_v22, %v5337_v58  ;;  %v4525_v39 = vsel %vm1356_vm2, %v2024_v56, %v2025_v60 }
 0x188   :  { %v1755_v0 = vadd.f32 %v1707_v50, %v1607_v40  ;;  %v5351_v19 = vrot.slane %v5350_v9, 2  ;;  %v1442_v5 = vmul.f32 %v5274_v23, %v5322_v55  ;;  %v1702_v48 = vrot.slane %v1632_v36, 2 }
 0x189   :  { %v1237_v20 = vsel %vm1216_vm1, %v1235_v3, %v5349_v49  ;;  %2101 = vperm.xlu0 %2797, %v4517_v10   ;;  %v1955_v50 = vmul.f32 %v4147_v45, %v5337_v58  ;;  %v1956_v56 = vmul.f32 %v4147_v45, %v5352_v24  ;;  %v5354_v26 = vrot.slane %v5353_v8, 1 }
 0x18a   :  { %v1283_v12 = vadd.f32 %v1237_v20, %v1128_v27  ;;  %v1377_v18 = vsel %vm1356_vm2, %v1375_v54, %v5351_v19  ;;  %v1790_v15 = vadd.f32 %v4499_v43, %v1755_v0  ;;  %v1445_v40 = vmul.f32 %v5274_v23, %v3888_v63 }
 0x18b   :  { %v1556_v47 = vsel %vm1216_vm1, %v1554_v41, %v5354_v26  ;;  %v1490_v55 = vmul.f32 %v3633_v25, %v3888_v63  ;;  %v1881_v3 = vrot.slane %v1815_v42, 1  ;;  %v2021_v54 = vrot.slane %v1955_v50, 2 }
 0x18c   :  { %v1423_v60 = vadd.f32 %v1377_v18, %v1283_v12  ;;  %v1930_v27 = vadd.f32 %v4513_v14, %v1790_v15  ;;  %v2022_v36 = vrot.slane %v1956_v56, 2  ;;  %v1461_v2 = vadd.f32 %v1445_v40, %v4234_v32  ;;  %v5355_v12 = vld [vmem:[#allocation59_spill] sm:$0xff]  ;;  %v5357_v15 = vld [vmem:[#allocation30_spill] sm:$0xff] }
 0x18d   :  { %v1563_v49 = vrot.slane %v1490_v55, 1  ;;  %v1638_v20 = vmul.f32 %v3638_v30, %v3888_v63  ;;  %v5356_v9 = vrot.slane %v5355_v12, 2  ;;  %v1774_v18 = vmul.f32 %v3689_v53, %v5337_v58 }
 0x18e   :  { %v1458_v0 = vadd.f32 %v1442_v5, %v1423_v60  ;;  %v4550_v41 = vadd.f32 %v4525_v39, %v1930_v27  ;;  %v1639_v42 = vmul.f32 %v3638_v30, %v3850_v28  ;;  %v5358_v32 = vrot.slane %v5357_v15, 1 }
 0x18f   :  { %v1704_v19 = vsel %vm1356_vm2, %v1702_v48, %v5356_v9  ;;  %v1711_v24 = vrot.slane %v1638_v20, 2  ;;  %v1821_v56 = vmul.f32 %v3643_v22, %v4165_v61  ;;  %v1822_v48 = vmul.f32 %v3643_v22, %v4170_v57 }
 0x190   :  { %v1606_v5 = vadd.f32 %v1556_v47, %v1458_v0  ;;  %v1565_v50 = vsel %vm1216_vm1, %v1563_v49, %v5358_v32  ;;  %2116 = vperm.xlu1 %2798, %v4550_v41   ;;  %v1712_v8 = vrot.slane %v1639_v42, 2  ;;  %v1961_v58 = vmul.f32 %v4147_v45, %v4165_v61  ;;  %v5360_v32 = vld [vmem:[#allocation28_spill] sm:$0xff] }
 0x191   :  { %v1609_v60 = vadd.f32 %v1565_v50, %v1461_v2  ;;  %v5359_v26 = vrot.slane %v3861_v44, 1  ;;  %v2023_v40 = vsel %vm1356_vm2, %v2021_v54, %v2022_v36  ;;  %v1962_v55 = vmul.f32 %v4147_v45, %v4170_v57 }
 0x192   :  { %v1754_v28 = vadd.f32 %v1704_v19, %v1606_v5  ;;  %v1713_v27 = vsel %vm1356_vm2, %v1711_v24, %v1712_v8  ;;  %v1890_v0 = vrot.slane %v1821_v56, 1  ;;  %v1891_v2 = vrot.slane %v1822_v48, 1 }
 0x193   :  { %v1883_v47 = vsel %vm1216_vm1, %v1881_v3, %v5359_v26  ;;  %v1174_v49 = vmul.f32 %v3586_v16, %v3888_v63  ;;  %v1757_v12 = vadd.f32 %v1713_v27, %v1609_v60  ;;  %v1777_v9 = vmul.f32 %v3689_v53, %v4165_v61  ;;  %v5362_v26 = vld [vmem:[#allocation29_spill] sm:$0xff]  ;;  %v5364_v27 = vld [vmem:[#allocation32_spill] sm:$0xff] }
 0x194   :  { %v1789_v20 = vadd.f32 %v1774_v18, %v1754_v28  ;;  %v1314_v44 = vmul.f32 %v3599_v21, %v3888_v63  ;;  %v2030_v3 = vrot.slane %v1961_v58, 2  ;;  %v2031_v54 = vrot.slane %v1962_v55, 2 }
 0x195   :  { %v1244_v36 = vrot.slane %v1174_v49, 1  ;;  %v1492_v57 = vmul.f32 %v3633_v25, %v4165_v61  ;;  %v1792_v42 = vadd.f32 %v1777_v9, %v1757_v12  ;;  %v1131_v5 = vmul.f32 %v5264_v51, %v3888_v63 }
 0x196   :  { %v1929_v19 = vadd.f32 %v1883_v47, %v1789_v20  ;;  %v1384_v15 = vrot.slane %v1314_v44, 2  ;;  %v1892_v18 = vsel %vm1216_vm1, %v1890_v0, %v1891_v2  ;;  %v5361_v50 = vrot.slane %v5360_v32, 1  ;;  %v5365_v2 = vld [vmem:[#allocation27_spill] sm:$0xff] }
 0x197   :  { %v1566_v56 = vrot.slane %v1492_v57, 1  ;;  %v1640_v60 = vmul.f32 %v3638_v30, %v4165_v61  ;;  %v1932_v48 = vadd.f32 %v1892_v18, %v1792_v42  ;;  %v1446_v28 = vmul.f32 %v5274_v23, %v4165_v61 }
 0x198   :  { %v1246_v24 = vsel %vm1216_vm1, %v1244_v36, %v5361_v50  ;;  %v4592_v8 = vadd.f32 %v2023_v40, %v1929_v19  ;;  %v2032_v63 = vsel %vm1356_vm2, %v2030_v3, %v2031_v54  ;;  %v5363_v47 = vrot.slane %v5362_v26, 2 }
 0x199   :  { %v1286_v58 = vadd.f32 %v1246_v24, %v1131_v5  ;;  %v1823_v0 = vmul.f32 %v3643_v22, %v5364_v27  ;;  %v1824_v49 = vmul.f32 %v3643_v22, %v5365_v2  ;;  %v4605_v40 = vadd.f32 %v2032_v63, %v1932_v48 }
 0x19a   :  { %v1386_v55 = vsel %vm1356_vm2, %v1384_v15, %v5363_v47  ;;  %2111 = vperm.xlu0 %2797, %v4592_v8   ;;  %v1963_v12 = vmul.f32 %v4147_v45, %v5364_v27  ;;  %v1964_v9 = vmul.f32 %v4147_v45, %v5365_v2  ;;  %v1259_v44 = vrot.slane %v4264_v31, 1 }
 0x19b   :  { %v1426_v20 = vadd.f32 %v1386_v55, %v1286_v58  ;;  %v5366_v3 = vrot.slane %v4191_v6, 1  ;;  %v1714_v36 = vrot.slane %v1640_v60, 2  ;;  %v1132_v57 = vmul.f32 %v5264_v51, %v4165_v61  ;;  %2126 = vperm.xlu1 %2798, %v4605_v40  }
 0x19c   :  { %v1778_v42 = vmul.f32 %v3689_v53, %v5364_v27  ;;  %v1893_v5 = vrot.slane %v1823_v0, 1  ;;  %v1316_v15 = vmul.f32 %v3599_v21, %v4165_v61  ;;  %v1894_v18 = vrot.slane %v1824_v49, 1 }
 0x19d   :  { %v1568_v54 = vsel %vm1216_vm1, %v1566_v56, %v5366_v3  ;;  %v1462_v19 = vadd.f32 %v1446_v28, %v1426_v20  ;;  %v2033_v32 = vrot.slane %v1963_v12, 2  ;;  %v1287_v6 = vadd.f32 %v4250_v7, %v1132_v57  ;;  %v5369_v57 = vld [vmem:[#allocation35_spill] sm:$0xff] }
 0x19e   :  { %v1494_v50 = vmul.f32 %v3633_v25, %v5364_v27  ;;  %v2034_v56 = vrot.slane %v1964_v9, 2  ;;  %v1387_v60 = vrot.slane %v1316_v15, 2  ;;  %v1642_v48 = vmul.f32 %v3638_v30, %v5364_v27 }
 0x19f   :  { %v1610_v24 = vadd.f32 %v1568_v54, %v1462_v19  ;;  %v5367_v58 = vrot.slane %v4197_v29, 2  ;;  %v1643_v61 = vmul.f32 %v3638_v30, %v5365_v2  ;;  %v1825_v7 = vmul.f32 %v3643_v22, %v4211_v52 }
 0x1a0   :  { %v1569_v63 = vrot.slane %v1494_v50, 1  ;;  %v5368_v47 = vrot.slane %v4187_v33, 2  ;;  %v1717_v0 = vrot.slane %v1642_v48, 2  ;;  %v1826_v49 = vmul.f32 %v3643_v22, %v4214_v34 }
 0x1a1   :  { %v1716_v28 = vsel %vm1356_vm2, %v1714_v36, %v5367_v58  ;;  %v1895_v29 = vsel %vm1216_vm1, %v1893_v5, %v1894_v18  ;;  %v1447_v12 = vmul.f32 %v5274_v23, %v5364_v27  ;;  %v1718_v9 = vrot.slane %v1643_v61, 2 }
 0x1a2   :  { %v1758_v26 = vadd.f32 %v1716_v28, %v1610_v24  ;;  %v1389_v55 = vsel %vm1356_vm2, %v1387_v60, %v5368_v47  ;;  %v2035_v3 = vsel %vm1356_vm2, %v2033_v32, %v2034_v56  ;;  %v1965_v54 = vmul.f32 %v4147_v45, %v4211_v52 }
 0x1a3   :  { %v1427_v20 = vadd.f32 %v1389_v55, %v1287_v6  ;;  %v1966_v33 = vmul.f32 %v4147_v45, %v4214_v34  ;;  %v5370_v19 = vrot.slane %v5369_v57, 1  ;;  %v1896_v5 = vrot.slane %v1825_v7, 1 }
 0x1a4   :  { %v1793_v2 = vadd.f32 %v1778_v42, %v1758_v26  ;;  %v1178_v18 = vmul.f32 %v3586_v16, %v5364_v27  ;;  %v1719_v42 = vsel %vm1356_vm2, %v1717_v0, %v1718_v9  ;;  %v1897_v50 = vrot.slane %v1826_v49, 1  ;;  %v5371_v26 = vld [vmem:[#allocation31_spill] sm:$0xff] }
 0x1a5   :  { %v1463_v36 = vadd.f32 %v1447_v12, %v1427_v20  ;;  %v1571_v15 = vsel %vm1216_vm1, %v1569_v63, %v5370_v19  ;;  %v1133_v32 = vmul.f32 %v5264_v51, %v5364_v27  ;;  %v2036_v56 = vrot.slane %v1965_v54, 2  ;;  %v5373_v20 = vld [vmem:[#allocation39_spill] sm:$0xff] }
 0x1a6   :  { %v1933_v6 = vadd.f32 %v1895_v29, %v1793_v2  ;;  %v1250_v60 = vrot.slane %v1178_v18, 1  ;;  %v1318_v34 = vmul.f32 %v3599_v21, %v5364_v27  ;;  %v2037_v58 = vrot.slane %v1966_v33, 2  ;;  %v5374_v2 = vld [vmem:[#allocation33_spill] sm:$0xff]  ;;  %v5376_v33 = vld [vmem:[#allocation34_spill] sm:$0xff] }
 0x1a7   :  { %v1611_v24 = vadd.f32 %v1571_v15, %v1463_v36  ;;  %v1496_v28 = vmul.f32 %v3633_v25, %v4211_v52  ;;  %v1644_v63 = vmul.f32 %v3638_v30, %v4211_v52  ;;  %v1779_v7 = vmul.f32 %v3689_v53, %v4211_v52 }
 0x1a8   :  { %v4657_v48 = vadd.f32 %v2035_v3, %v1933_v6  ;;  %v5372_v47 = vrot.slane %v5371_v26, 1  ;;  %v1390_v0 = vrot.slane %v1318_v34, 2  ;;  %v1448_v49 = vmul.f32 %v5274_v23, %v4211_v52 }
 0x1a9   :  { %v1759_v61 = vadd.f32 %v1719_v42, %v1611_v24  ;;  %v1572_v29 = vrot.slane %v1496_v28, 1  ;;  %v1827_v12 = vmul.f32 %v3643_v22, %v5373_v20  ;;  %v5375_v3 = vrot.slane %v5374_v2, 2 }
 0x1aa   :  { %v1252_v55 = vsel %vm1216_vm1, %v1250_v60, %v5372_v47  ;;  %2131 = vperm.xlu0 %2797, %v4657_v48   ;;  %v1828_v36 = vmul.f32 %v3643_v22, %v5376_v33  ;;  %v1967_v57 = vmul.f32 %v4147_v45, %v5373_v20  ;;  %v1898_v19 = vsel %vm1216_vm1, %v1896_v5, %v1897_v50 }
 0x1ab   :  { %v1288_v27 = vadd.f32 %v1252_v55, %v1133_v32  ;;  %v1794_v9 = vadd.f32 %v1779_v7, %v1759_v61  ;;  %v1392_v54 = vsel %vm1356_vm2, %v1390_v0, %v5375_v3  ;;  %v2038_v15 = vsel %vm1356_vm2, %v2036_v56, %v2037_v58 }
 0x1ac   :  { %v1720_v6 = vrot.slane %v1644_v63, 2  ;;  %v5377_v32 = vrot.slane %v4231_v62, 1  ;;  %v1899_v60 = vrot.slane %v1827_v12, 1  ;;  %v1968_v34 = vmul.f32 %v4147_v45, %v5376_v33 }
 0x1ad   :  { %v1428_v18 = vadd.f32 %v1392_v54, %v1288_v27  ;;  %v1934_v42 = vadd.f32 %v1898_v19, %v1794_v9  ;;  %v1900_v61 = vrot.slane %v1828_v36, 1  ;;  %v1134_v7 = vmul.f32 %v5264_v51, %v4211_v52 }
 0x1ae   :  { %v1574_v24 = vsel %vm1216_vm1, %v1572_v29, %v5377_v32  ;;  %v1320_v5 = vmul.f32 %v3599_v21, %v4211_v52  ;;  %v2039_v56 = vrot.slane %v1967_v57, 2  ;;  %v2040_v58 = vrot.slane %v1968_v34, 2  ;;  %v5380_v34 = vld [vmem:[#allocation38_spill] sm:$0xff] }
 0x1af   :  { %v1464_v28 = vadd.f32 %v1448_v49, %v1428_v18  ;;  %v4691_v50 = vadd.f32 %v2038_v15, %v1934_v42  ;;  %v1498_v62 = vmul.f32 %v3633_v25, %v5373_v20  ;;  %v1289_v26 = vadd.f32 %v4256_v35, %v1134_v7 }
 0x1b0   :  { %v1393_v47 = vrot.slane %v1320_v5, 2  ;;  %v1646_v55 = vmul.f32 %v3638_v30, %v5373_v20  ;;  %v5378_v0 = vrot.slane %v4241_v38, 2  ;;  %v1780_v27 = vmul.f32 %v3689_v53, %v5373_v20 }
 0x1b1   :  { %v1612_v63 = vadd.f32 %v1574_v24, %v1464_v28  ;;  %2136 = vperm.xlu1 %2798, %v4691_v50   ;;  %v1449_v49 = vmul.f32 %v5274_v23, %v5373_v20  ;;  %v1647_v29 = vmul.f32 %v3638_v30, %v5376_v33  ;;  %v5379_v12 = vrot.slane %v4225_v17, 2 }
 0x1b2   :  { %v1722_v52 = vsel %vm1356_vm2, %v1720_v6, %v5378_v0  ;;  %v1575_v2 = vrot.slane %v1498_v62, 1  ;;  %v1829_v38 = vmul.f32 %v3643_v22, %v4244_v1  ;;  %v1723_v54 = vrot.slane %v1646_v55, 2 }
 0x1b3   :  { %v1760_v35 = vadd.f32 %v1722_v52, %v1612_v63  ;;  %v1395_v9 = vsel %vm1356_vm2, %v1393_v47, %v5379_v12  ;;  %v1724_v36 = vrot.slane %v1647_v29, 2  ;;  %v1830_v57 = vmul.f32 %v3643_v22, %v4247_v37  ;;  %v5384_v12 = vld [vmem:[#allocation63_spill] sm:$0xff] }
 0x1b4   :  { %v1429_v3 = vadd.f32 %v1395_v9, %v1289_v26  ;;  %v1260_v19 = vrot.slane %v4268_v59, 1  ;;  %v1901_v33 = vsel %vm1216_vm1, %v1899_v60, %v1900_v61  ;;  %v2041_v18 = vsel %vm1356_vm2, %v2039_v56, %v2040_v58 }
 0x1b5   :  { %v1795_v15 = vadd.f32 %v1780_v27, %v1760_v35  ;;  %v1781_v6 = vmul.f32 %v3689_v53, %v4244_v1  ;;  %v1969_v42 = vmul.f32 %v4147_v45, %v4244_v1  ;;  %v1970_v32 = vmul.f32 %v4147_v45, %v4247_v37  ;;  %v5382_v27 = vld [vmem:[#allocation36_spill] sm:$0xff] }
 0x1b6   :  { %v1465_v17 = vadd.f32 %v1449_v49, %v1429_v3  ;;  %v5381_v28 = vrot.slane %v5380_v34, 1  ;;  %v1902_v7 = vrot.slane %v1829_v38, 1  ;;  %v1182_v60 = vmul.f32 %v3586_v16, %v5373_v20  ;;  %v5385_v3 = vld [vmem:[#allocation64_spill] sm:$0xff]  ;;  %v5389_v34 = vld [vmem:[#allocation43_spill] sm:$0xff] }
 0x1b7   :  { %v1935_v24 = vadd.f32 %v1901_v33, %v1795_v15  ;;  %v1725_v5 = vsel %vm1356_vm2, %v1723_v54, %v1724_v36  ;;  %v1903_v56 = vrot.slane %v1830_v57, 1  ;;  %v1322_v58 = vmul.f32 %v3599_v21, %v5373_v20  ;;  %v5386_v57 = vld [vmem:[#allocation37_spill] sm:$0xff] }
 0x1b8   :  { %v1577_v59 = vsel %vm1216_vm1, %v1575_v2, %v5381_v28  ;;  %v1135_v37 = vmul.f32 %v5264_v51, %v5373_v20  ;;  %v1256_v63 = vrot.slane %v1182_v60, 1  ;;  %v1500_v26 = vmul.f32 %v3633_v25, %v4244_v1 }
 0x1b9   :  { %v1613_v61 = vadd.f32 %v1577_v59, %v1465_v17  ;;  %v4732_v62 = vadd.f32 %v2041_v18, %v1935_v24  ;;  %v2042_v55 = vrot.slane %v1969_v42, 2  ;;  %v2043_v0 = vrot.slane %v1970_v32, 2  ;;  %v5388_v24 = vld [vmem:[#allocation42_spill] sm:$0xff] }
 0x1ba   :  { %v1396_v16 = vrot.slane %v1322_v58, 2  ;;  %v1579_v52 = vrot.slane %v4282_v11, 1  ;;  %v5383_v49 = vrot.slane %v5382_v27, 1  ;;  %v1578_v35 = vrot.slane %v1500_v26, 1  ;;  %v5391_v58 = vld [vmem:[#allocation46_spill] sm:$0xff] }
 0x1bb   :  { %v1761_v47 = vadd.f32 %v1725_v5, %v1613_v61  ;;  %2141 = vperm.xlu0 %2797, %v4732_v62   ;;  %v1648_v20 = vmul.f32 %v3638_v30, %v4244_v1  ;;  %v1400_v9 = vrot.slane %v5384_v12, 2  ;;  %v1450_v38 = vmul.f32 %v5274_v23, %v4244_v1 }
 0x1bc   :  { %v1258_v29 = vsel %vm1216_vm1, %v1256_v63, %v5383_v49  ;;  %v1261_v11 = vsel %vm1216_vm1, %v1259_v44, %v1260_v19  ;;  %v1727_v54 = vrot.slane %v5385_v3, 2  ;;  %v1904_v36 = vsel %vm1216_vm1, %v1902_v7, %v1903_v56 }
 0x1bd   :  { %v1796_v2 = vadd.f32 %v1781_v6, %v1761_v47  ;;  %v1290_v25 = vadd.f32 %v1258_v29, %v1135_v37  ;;  %v5387_v15 = vrot.slane %v5386_v57, 2  ;;  %v2044_v17 = vsel %vm1356_vm2, %v2042_v55, %v2043_v0  ;;  %v5392_v47 = vld [vmem:[#allocation47_spill] sm:$0xff] }
 0x1be   :  { %v1136_v42 = vmul.f32 %v5264_v51, %v4244_v1  ;;  %v1580_v32 = vsel %vm1216_vm1, %v1578_v35, %v1579_v52  ;;  %v1726_v31 = vrot.slane %v1648_v20, 2  ;;  %v1831_v44 = vmul.f32 %v3643_v22, %v5388_v24  ;;  %v2827_v51 = vld [vmem:[%s5091_s1 + $0x16] ss:$0 sm:$0xff] }
 0x1bf   :  { %v1398_v33 = vsel %vm1356_vm2, %v1396_v16, %v5387_v15  ;;  %v1936_v18 = vadd.f32 %v1904_v36, %v1796_v2  ;;  %v1324_v19 = vmul.f32 %v3599_v21, %v4244_v1  ;;  %v1651_v28 = vmul.f32 %v3638_v30, %v5389_v34  ;;  %v5390_v1 = vld [vmem:[#allocation45_spill] sm:$0xff] }
 0x1c0   :  { %v1430_v6 = vadd.f32 %v1398_v33, %v1290_v25  ;;  %v1291_v60 = vadd.f32 %v1261_v11, %v1136_v42  ;;  %v1971_v61 = vmul.f32 %v4147_v45, %v5388_v24  ;;  %v1972_v5 = vmul.f32 %v2827_v51, %v5389_v34  ;;  %v5398_v51 = vld [vmem:[#allocation62_spill] sm:$0xff] }
 0x1c1   :  { %v4766_v59 = vadd.f32 %v2044_v17, %v1936_v18  ;;  %v1399_v22 = vrot.slane %v1324_v19, 2  ;;  %v1650_v21 = vmul.f32 %v3638_v30, %v5388_v24  ;;  %v1581_v56 = vrot.slane %v5390_v1, 1  ;;  %v5395_v17 = vld [vmem:[#allocation11_spill] sm:$0xff] }
 0x1c2   :  { %v1466_v7 = vadd.f32 %v1450_v38, %v1430_v6  ;;  %v1582_v37 = vrot.slane %v5391_v58, 1  ;;  %v1728_v26 = vsel %vm1356_vm2, %v1726_v31, %v1727_v54  ;;  %v1905_v45 = vrot.slane %v1831_v44, 1  ;;  %v5396_v6 = vld [vmem:[#allocation6_spill] sm:$0xff] }
 0x1c3   :  { %2146 = vperm.xlu1 %2798, %v4766_v59   ;;  %v1906_v55 = vrot.slane %v5392_v47, 1  ;;  %v1401_v0 = vsel %vm1356_vm2, %v1399_v22, %v1400_v9  ;;  %v1782_v52 = vmul.f32 %v3689_v53, %v5388_v24  ;;  %v1451_v30 = vmul.f32 %v5274_v23, %v5388_v24 }
 0x1c4   :  { %v1614_v63 = vadd.f32 %v1580_v32, %v1466_v7  ;;  %v1431_v27 = vadd.f32 %v1401_v0, %v1291_v60  ;;  %v1730_v49 = vrot.slane %v1651_v28, 2  ;;  %v2045_v29 = vrot.slane %v1971_v61, 2 }
 0x1c5   :  { %v2046_v35 = vrot.slane %v1972_v5, 2  ;;  %v1729_v20 = vrot.slane %v1650_v21, 2  ;;  %v1907_v25 = vsel %vm1216_vm1, %v1905_v45, %v1906_v55  ;;  %v1583_v38 = vsel %vm1216_vm1, %v1581_v56, %v1582_v37  ;;  %v5399_v5 = vld [vmem:[#allocation61_spill] sm:$0xff] }
 0x1c6   :  { %v1762_v16 = vadd.f32 %v1728_v26, %v1614_v63  ;;  %v1467_v2 = vadd.f32 %v1451_v30, %v1431_v27  ;;  %v5393_v33 = vmov 1   ;;  %v5397_v61 = vmov 2  }
 0x1c7   :  { %v2047_v3 = vsel %vm1356_vm2, %v2045_v29, %v2046_v35  ;;  %v1731_v53 = vsel %vm1356_vm2, %v1729_v20, %v1730_v49  ;;  %v5400_v22 = vmov 3   ;;  %v5401_v0 = vmov 0  }
 0x1c8   :  { %v1797_v12 = vadd.f32 %v1782_v52, %v1762_v16  ;;  %v1615_v9 = vadd.f32 %v1583_v38, %v1467_v2 }
 0x1ca   :  { %v1937_v11 = vadd.f32 %v1907_v25, %v1797_v12  ;;  %v1763_v36 = vadd.f32 %v1731_v53, %v1615_v9 }
 0x1cc   :  { %v4790_v54 = vadd.f32 %v2047_v3, %v1937_v11  ;;  %v1798_v23 = vadd.f32 %v4499_v43, %v1763_v36  ;;  %v4807_v43 = vld [vmem:[%s5091_s1 + $0x17] sm:$0xf] }
 0x1cd   :  { %v4817_v42 = vrot.slane %v4807_v43, %v5396_v6 }
 0x1ce   :  { %2151 = vperm.xlu0 %2797, %v4790_v54   ;;  %v1938_v57 = vadd.f32 %v4513_v14, %v1798_v23  ;;  %v2082_v14 = vpop.permute.xlu1 %2081 }
 0x1cf   :  { %v2163_v28 = vmul.f32 %v4817_v42, %v2082_v14 }
 0x1d0   :  { %v4796_v15 = vadd.f32 %v4525_v39, %v1938_v57  ;;  %v5394_v39 = vld [vmem:[#allocation7_spill] sm:$0xff]  ;;  %v5402_v57 = vld [vmem:[#allocation8_spill] sm:$0xff] }
 0x1d1   :  { %v4812_v18 = vrot.slane %v4807_v43, %v5394_v39 }
 0x1d2   :  { %2800 = vset.pattern.permute.xlu0 %v5393_v33  ;;  %2156 = vperm.xlu1 %2798, %v4796_v15   ;;  %v2229_v32 = vpop.permute.xlu1 %2228  ;;  %v2122_v31 = vpop.permute.xlu0 %2121 }
 0x1d3   :  { %2208 = vperm.xlu0 %2800, %v4391_v46   ;;  %v2271_v24 = vmul.f32 %v4812_v18, %v2229_v32  ;;  %v2171_v44 = vmul.f32 %v4817_v42, %v2122_v31 }
 0x1d5   :  { %v4823_v19 = vadd.f32 %v2271_v24, %v2171_v44 }
 0x1d6   :  { %2799 = vset.pattern.permute.xlu1 %v5393_v33 }
 0x1d7   :  { %2216 = vperm.xlu0 %2800, %v4475_v4   ;;  %2200 = vperm.xlu1 %2799, %v4422_v13   ;;  %v2197_v34 = vpop.permute.xlu0 %2196 }
 0x1d8   :  { %v2263_v7 = vmul.f32 %v4812_v18, %v2197_v34 }
 0x1da   :  { %v4829_v60 = vadd.f32 %v2263_v7, %v2163_v28 }
 0x1db   :  { %2224 = vperm.xlu0 %2800, %v4550_v41   ;;  %2204 = vperm.xlu1 %2799, %v5395_v17  }
 0x1df   :  { %2232 = vperm.xlu0 %2800, %v4605_v40   ;;  %2212 = vperm.xlu1 %2799, %v4517_v10  }
 0x1e3   :  { %2252 = vperm.xlu0 %2800, %v4790_v54   ;;  %2220 = vperm.xlu1 %2799, %v4592_v8  }
 0x1e7   :  { %2811 = vset.pattern.permute.xlu0 %v5397_v61  ;;  %2236 = vperm.xlu1 %2799, %v4657_v48  }
 0x1e8   :  { %2328 = vperm.xlu0 %2811, %v5398_v51  }
 0x1eb   :  { %2801 = vset.pattern.permute.xlu1 %v5397_v61 }
 0x1ec   :  { %2296 = vperm.xlu0 %2811, %v5399_v5   ;;  %2332 = vperm.xlu1 %2801, %v4605_v40  }
 0x1f0   :  { %2336 = vperm.xlu0 %2811, %v4657_v48   ;;  %2802 = vset.pattern.permute.xlu1 %v5393_v33 }
 0x1f1   :  { %2240 = vperm.xlu1 %2802, %v4691_v50  }
 0x1f4   :  { %2340 = vperm.xlu0 %2811, %v4691_v50  }
 0x1f5   :  { %2803 = vset.pattern.permute.xlu1 %v5397_v61 }
 0x1f6   :  { %2300 = vperm.xlu1 %2803, %v4422_v13  }
 0x1f8   :  { %2344 = vperm.xlu0 %2811, %v4732_v62  }
 0x1fa   :  { %2804 = vset.pattern.permute.xlu1 %v5400_v22 }
 0x1fb   :  { %2428 = vperm.xlu1 %2804, %v5398_v51  }
 0x1fc   :  { %2316 = vperm.xlu0 %2811, %v4475_v4  }
 0x1ff   :  { %2805 = vset.pattern.permute.xlu1 %v5393_v33 }
 0x200   :  { %2324 = vperm.xlu0 %2811, %v4550_v41   ;;  %2244 = vperm.xlu1 %2805, %v4732_v62  }
 0x204   :  { %2819 = vset.pattern.permute.xlu0 %v5400_v22  ;;  %2806 = vset.pattern.permute.xlu1 %v5397_v61 }
 0x205   :  { %2432 = vperm.xlu0 %2819, %v4605_v40   ;;  %2304 = vperm.xlu1 %2806, %v5395_v17  }
 0x209   :  { %2436 = vperm.xlu0 %2819, %v4657_v48   ;;  %2807 = vset.pattern.permute.xlu1 %v5400_v22 }
 0x20a   :  { %2396 = vperm.xlu1 %2807, %v5399_v5  }
 0x20d   :  { %2408 = vperm.xlu0 %2819, %v4391_v46  }
 0x20e   :  { %2400 = vperm.xlu1 %2807, %v4422_v13   ;;  %v2092_v13 = vpop.permute.xlu1 %2091 }
 0x211   :  { %2448 = vperm.xlu0 %2819, %v4766_v59  }
 0x212   :  { %2808 = vset.pattern.permute.xlu1 %v5393_v33 }
 0x213   :  { %2248 = vperm.xlu1 %2808, %v4766_v59  }
 0x215   :  { %2416 = vperm.xlu0 %2819, %v4475_v4   ;;  %v4873_v4 = vpop.permute.xlu1 %2096 }
 0x217   :  { %2809 = vset.pattern.permute.xlu1 %v5397_v61 }
 0x218   :  { %2308 = vperm.xlu1 %2809, %v4391_v46  }
 0x219   :  { %2424 = vperm.xlu0 %2819, %v4550_v41   ;;  %v2087_v41 = vpop.permute.xlu0 %2086  ;;  %v4878_v46 = vpop.permute.xlu1 %2106 }
 0x21a   :  { %v2164_v45 = vmul.f32 %v4817_v42, %v2087_v41 }
 0x21c   :  { %2810 = vset.pattern.permute.xlu1 %v5400_v22 }
 0x21d   :  { %2821 = vset.pattern.permute.xlu0 %v5393_v33  ;;  %2404 = vperm.xlu1 %2810, %v5395_v17   ;;  %v2102_v40 = vpop.permute.xlu0 %2101  ;;  %v4883_v48 = vpop.permute.xlu1 %2116 }
 0x21e   :  { %v2167_v35 = vmul.f32 %v4817_v42, %v2102_v40 }
 0x221   :  { %2440 = vperm.xlu1 %2810, %v4691_v50   ;;  %v2112_v50 = vpop.permute.xlu0 %2111 }
 0x222   :  { %v2169_v38 = vmul.f32 %v4817_v42, %v2112_v50  ;;  %v5403_v50 = vld [vmem:[#allocation9_spill] sm:$0xff] }
 0x225   :  { %2812 = vset.pattern.permute.xlu1 %v5397_v61 }
 0x226   :  { %2312 = vperm.xlu1 %2812, %v4517_v10  }
 0x22a   :  { %2348 = vperm.xlu1 %2812, %v4766_v59   ;;  %v2127_v59 = vpop.permute.xlu1 %2126 }
 0x22b   :  { %v2172_v23 = vmul.f32 %v4817_v42, %v2127_v59  ;;  %v4946_v59 = vrot.slane %v4807_v43, %v5403_v50 }
 0x22e   :  { %2813 = vset.pattern.permute.xlu1 %v5400_v22 }
 0x22f   :  { %2444 = vperm.xlu1 %2813, %v4732_v62   ;;  %v4887_v62 = vpop.permute.xlu0 %2131 }
 0x230   :  { %v2137_v21 = vpop.permute.xlu1 %2136 }
 0x231   :  { %v2174_v34 = vmul.f32 %v4817_v42, %v2137_v21 }
 0x233   :  { %2814 = vset.pattern.permute.xlu1 %v5393_v33 }
 0x234   :  { %2256 = vperm.xlu1 %2814, %v4796_v15  }
 0x238   :  { %2815 = vset.pattern.permute.xlu1 %v5397_v61 }
 0x239   :  { %2352 = vperm.xlu1 %2815, %v4790_v54  }
 0x23a   :  { %v4891_v1 = vpop.permute.xlu0 %2141 }
 0x23d   :  { %2816 = vset.pattern.permute.xlu1 %v5400_v22 }
 0x23e   :  { %2412 = vperm.xlu1 %2816, %v4517_v10  }
 0x242   :  { %2817 = vset.pattern.permute.xlu1 %v5397_v61  ;;  %v4895_v56 = vpop.permute.xlu1 %2146 }
 0x243   :  { %2320 = vperm.xlu1 %2817, %v4592_v8  }
 0x247   :  { %2356 = vperm.xlu1 %2817, %v4796_v15  }
 0x24b   :  { %2818 = vset.pattern.permute.xlu1 %v5400_v22 }
 0x24c   :  { %2452 = vperm.xlu1 %2818, %v4790_v54  }
 0x24d   :  { %v4897_v58 = vpop.permute.xlu0 %2151 }
 0x250   :  { %2420 = vperm.xlu1 %2818, %v4592_v8   ;;  %v2165_v8 = vmul.f32 %v4817_v42, %v2092_v13 }
 0x251   :  { %v4903_v37 = vpop.permute.xlu1 %2156 }
 0x252   :  { %v4901_v10 = vpop.permute.xlu0 %2208 }
 0x254   :  { %2456 = vperm.xlu1 %2818, %v4796_v15   ;;  %v4931_v15 = vrot.slane %v4807_v43, %v5402_v57 }
 0x256   :  { %v4906_v63 = vpop.permute.xlu0 %2216  ;;  %v2201_v26 = vpop.permute.xlu1 %2200 }
 0x257   :  { %v2264_v47 = vmul.f32 %v4812_v18, %v2201_v26 }
 0x258   :  { %2820 = vset.pattern.permute.xlu1 %v5401_v0 }
 0x259   :  { %v2280_v16 = vadd.f32 %v2264_v47, %v2164_v45 }
 0x25a   :  { %v4910_v55 = vpop.permute.xlu0 %2224  ;;  %v2205_v52 = vpop.permute.xlu1 %2204 }
 0x25b   :  { %v2265_v27 = vmul.f32 %v4812_v18, %v2205_v52 }
 0x25d   :  { %v4915_v49 = vadd.f32 %v2265_v27, %v2165_v8 }
 0x25e   :  { %v2233_v30 = vpop.permute.xlu0 %2232  ;;  %v2213_v29 = vpop.permute.xlu1 %2212 }
 0x25f   :  { %v2267_v20 = vmul.f32 %v4812_v18, %v2213_v29  ;;  %v2272_v54 = vmul.f32 %v4812_v18, %v2233_v30  ;;  %v4959_v30 = vld [vmem:[%s5091_s1 + $0x1b] ss:$0 sm:$0xff]  ;;  %v2173_v29 = vmul.f32 %v4817_v42, %v4887_v62 }
 0x261   :  { %v4921_v2 = vadd.f32 %v2267_v20, %v2167_v35  ;;  %v2288_v17 = vadd.f32 %v2272_v54, %v2172_v23 }
 0x262   :  { %v4919_v12 = vpop.permute.xlu0 %2252  ;;  %v2221_v25 = vpop.permute.xlu1 %2220 }
 0x263   :  { %v2269_v11 = vmul.f32 %v4812_v18, %v2221_v25 }
 0x265   :  { %v4925_v9 = vadd.f32 %v2269_v11, %v2169_v38 }
 0x266   :  { %v2237_v53 = vpop.permute.xlu1 %2236 }
 0x267   :  { %v2329_v3 = vpop.permute.xlu0 %2328  ;;  %v2273_v43 = vmul.f32 %v4812_v18, %v2237_v53 }
 0x268   :  { %v2371_v40 = vmul.f32 %v4931_v15, %v2329_v3 }
 0x269   :  { %v2289_v38 = vadd.f32 %v2273_v43, %v2173_v29 }
 0x26a   :  { %v2387_v47 = vadd.f32 %v2371_v40, %v4823_v19 }
 0x26b   :  { %v2297_v36 = vpop.permute.xlu0 %2296  ;;  %v2333_v14 = vpop.permute.xlu1 %2332 }
 0x26c   :  { %v2372_v32 = vmul.f32 %v4931_v15, %v2333_v14  ;;  %v2363_v3 = vmul.f32 %v4931_v15, %v2297_v36 }
 0x26e   :  { %v2388_v24 = vadd.f32 %v2372_v32, %v2288_v17 }
 0x26f   :  { %v2337_v31 = vpop.permute.xlu0 %2336 }
 0x270   :  { %v2241_v44 = vpop.permute.xlu1 %2240  ;;  %v2373_v19 = vmul.f32 %v4931_v15, %v2337_v31 }
 0x271   :  { %v2274_v28 = vmul.f32 %v4812_v18, %v2241_v44  ;;  %v2379_v44 = vadd.f32 %v2363_v3, %v4829_v60 }
 0x272   :  { %v2389_v23 = vadd.f32 %v2373_v19, %v2289_v38  ;;  %v2166_v38 = vmul.f32 %v4817_v42, %v4873_v4 }
 0x273   :  { %v4936_v7 = vpop.permute.xlu0 %2340  ;;  %v4938_v51 = vadd.f32 %v2274_v28, %v2174_v34 }
 0x274   :  { %v2374_v4 = vmul.f32 %v4931_v15, %v4936_v7 }
 0x275   :  { %v2301_v5 = vpop.permute.xlu1 %2300 }
 0x276   :  { %v2364_v41 = vmul.f32 %v4931_v15, %v2301_v5 }
 0x277   :  { %v4940_v13 = vpop.permute.xlu0 %2344 }
 0x278   :  { %v2380_v26 = vadd.f32 %v2364_v41, %v2280_v16 }
 0x27a   :  { %v2429_v21 = vpop.permute.xlu1 %2428 }
 0x27b   :  { %v4948_v45 = vpop.permute.xlu0 %2316  ;;  %v2471_v0 = vmul.f32 %v4946_v59, %v2429_v21 }
 0x27d   :  { %v2487_v52 = vadd.f32 %v2471_v0, %v2387_v47 }
 0x27f   :  { %v4952_v8 = vpop.permute.xlu0 %2324  ;;  %v4954_v27 = vpop.permute.xlu1 %2244  ;;  %v2507_v35 = vadd.f32 %v4959_v30, %v2487_v52 }
 0x281   :  { %v2523_v14 = vmax.f32 %v2507_v35, 0.0  ;;  %v2266_v35 = vmul.f32 %v4812_v18, %v4901_v10 }
 0x283   :  { %v2553_v28 = vsel %vm2531_vm3, %v2523_v14, 0.0 }
 0x284   :  { %v2433_v16 = vpop.permute.xlu0 %2432  ;;  %v2305_v25 = vpop.permute.xlu1 %2304 }
 0x285   :  { %v2472_v20 = vmul.f32 %v4946_v59, %v2433_v16 }
 0x287   :  { %v2488_v11 = vadd.f32 %v2472_v20, %v2388_v24 }
 0x288   :  { %v2437_v54 = vpop.permute.xlu0 %2436 }
 0x289   :  { %v2508_v53 = vadd.f32 %v4959_v30, %v2488_v11  ;;  %v2473_v17 = vmul.f32 %v4946_v59, %v2437_v54  ;;  %v2397_v32 = vpop.permute.xlu1 %2396 }
 0x28a   :  { %v2463_v34 = vmul.f32 %v4946_v59, %v2397_v32 }
 0x28b   :  { %v2524_v62 = vmax.f32 %v2508_v53, 0.0  ;;  %v2489_v31 = vadd.f32 %v2473_v17, %v2389_v23  ;;  %v2282_v53 = vadd.f32 %v2266_v35, %v2166_v38  ;;  %v2365_v17 = vmul.f32 %v4931_v15, %v2305_v25 }
 0x28c   :  { %v2479_v41 = vadd.f32 %v2463_v34, %v2379_v44  ;;  %v2409_v23 = vpop.permute.xlu0 %2408  ;;  %v2176_v35 = vmul.f32 %v4817_v42, %v4895_v56  ;;  %v2175_v38 = vmul.f32 %v4817_v42, %v4891_v1 }
 0x28d   :  { %v2554_v24 = vsel %vm2531_vm3, %v2524_v62, 0.0  ;;  %v2509_v36 = vadd.f32 %v4959_v30, %v2489_v31  ;;  %v2401_v21 = vpop.permute.xlu1 %2400  ;;  %v2466_v62 = vmul.f32 %v4946_v59, %v2409_v23  ;;  %v2381_v44 = vadd.f32 %v2365_v17, %v4915_v49 }
 0x28e   :  { %v2555_v5 = vadd.f32 %v2554_v24, %v2553_v28  ;;  %v2499_v47 = vadd.f32 %v4959_v30, %v2479_v41  ;;  %v2464_v0 = vmul.f32 %v4946_v59, %v2401_v21  ;;  %v2375_v17 = vmul.f32 %v4931_v15, %v4940_v13 }
 0x28f   :  { %v2525_v40 = vmax.f32 %v2509_v36, 0.0  ;;  %v2168_v13 = vmul.f32 %v4817_v42, %v4878_v46 }
 0x290   :  { %v2480_v60 = vadd.f32 %v2464_v0, %v2380_v26  ;;  %v2515_v16 = vmax.f32 %v2499_v47, 0.0 }
 0x291   :  { %v2556_v52 = vsel %vm2531_vm3, %v2525_v40, 0.0 }
 0x292   :  { %v2557_v43 = vadd.f32 %v2556_v52, %v2555_v5  ;;  %v2500_v29 = vadd.f32 %v4959_v30, %v2480_v60  ;;  %v2249_v19 = vpop.permute.xlu1 %2248  ;;  %v2532_v11 = vsel %vm2531_vm3, %v2515_v16, 0.0  ;;  %v2390_v5 = vadd.f32 %v2374_v4, %v4938_v51 }
 0x293   :  { %v2276_v52 = vmul.f32 %v4812_v18, %v2249_v19  ;;  %v2275_v16 = vmul.f32 %v4812_v18, %v4954_v27 }
 0x294   :  { %v2516_v20 = vmax.f32 %v2500_v29, 0.0 }
 0x296   :  { %v2533_v3 = vsel %vm2531_vm3, %v2516_v20, 0.0 }
 0x297   :  { %v2534_v54 = vadd.f32 %v2533_v3, %v2532_v11  ;;  %v2309_v14 = vpop.permute.xlu1 %2308  ;;  %v2449_v11 = vpop.permute.xlu0 %2448 }
 0x298   :  { %v2366_v26 = vmul.f32 %v4931_v15, %v2309_v14  ;;  %v2292_v14 = vadd.f32 %v2276_v52, %v2176_v35  ;;  %v2476_v27 = vmul.f32 %v4946_v59, %v2449_v11 }
 0x29a   :  { %v2382_v32 = vadd.f32 %v2366_v26, %v2282_v53  ;;  %v2291_v53 = vadd.f32 %v2275_v16, %v2175_v38 }
 0x29c   :  { %v2482_v10 = vadd.f32 %v2466_v62, %v2382_v32  ;;  %v2405_v31 = vpop.permute.xlu1 %2404  ;;  %v2391_v32 = vadd.f32 %v2375_v17, %v2291_v53  ;;  %v2177_v53 = vmul.f32 %v4817_v42, %v4897_v58 }
 0x29d   :  { %v2465_v34 = vmul.f32 %v4946_v59, %v2405_v31 }
 0x29e   :  { %v2502_v28 = vadd.f32 %v4959_v30, %v2482_v10 }
 0x29f   :  { %v2481_v24 = vadd.f32 %v2465_v34, %v2381_v44  ;;  %v2268_v44 = vmul.f32 %v4812_v18, %v4906_v63  ;;  %v2417_v34 = vpop.permute.xlu0 %2416 }
 0x2a0   :  { %v2441_v36 = vpop.permute.xlu1 %2440  ;;  %v2518_v40 = vmax.f32 %v2502_v28, 0.0 }
 0x2a1   :  { %v2501_v25 = vadd.f32 %v4959_v30, %v2481_v24  ;;  %v2474_v41 = vmul.f32 %v4946_v59, %v2441_v36  ;;  %v2368_v36 = vmul.f32 %v4931_v15, %v4948_v45 }
 0x2a2   :  { %v2537_v51 = vsel %vm2531_vm3, %v2518_v40, 0.0 }
 0x2a3   :  { %v2517_v21 = vmax.f32 %v2501_v25, 0.0  ;;  %v2490_v47 = vadd.f32 %v2474_v41, %v2390_v5  ;;  %v2284_v25 = vadd.f32 %v2268_v44, %v2168_v13  ;;  %v2468_v41 = vmul.f32 %v4946_v59, %v2417_v34 }
 0x2a5   :  { %v2535_v0 = vsel %vm2531_vm3, %v2517_v21, 0.0  ;;  %v2510_v7 = vadd.f32 %v4959_v30, %v2490_v47  ;;  %v2313_v49 = vpop.permute.xlu1 %2312 }
 0x2a6   :  { %v2536_v60 = vadd.f32 %v2535_v0, %v2534_v54  ;;  %v2384_v0 = vadd.f32 %v2368_v36, %v2284_v25  ;;  %v2367_v63 = vmul.f32 %v4931_v15, %v2313_v49  ;;  %v2277_v49 = vmul.f32 %v4812_v18, %v4919_v12 }
 0x2a7   :  { %v2526_v29 = vmax.f32 %v2510_v7, 0.0 }
 0x2a8   :  { %v2538_v20 = vadd.f32 %v2537_v51, %v2536_v60  ;;  %v2484_v52 = vadd.f32 %v2468_v41, %v2384_v0  ;;  %v2383_v46 = vadd.f32 %v2367_v63, %v4921_v2  ;;  %v2170_v2 = vmul.f32 %v4817_v42, %v4883_v48 }
 0x2a9   :  { %v2558_v3 = vsel %vm2531_vm3, %v2526_v29, 0.0  ;;  %v2349_v23 = vpop.permute.xlu1 %2348 }
 0x2aa   :  { %v2559_v19 = vadd.f32 %v2558_v3, %v2557_v43  ;;  %v2376_v54 = vmul.f32 %v4931_v15, %v2349_v23  ;;  %v2504_v45 = vadd.f32 %v4959_v30, %v2484_v52  ;;  %v2270_v3 = vmul.f32 %v4812_v18, %v4910_v55 }
 0x2ac   :  { %v2392_v26 = vadd.f32 %v2376_v54, %v2292_v14  ;;  %v2520_v38 = vmax.f32 %v2504_v45, 0.0  ;;  %v2286_v12 = vadd.f32 %v2270_v3, %v2170_v2 }
 0x2ae   :  { %v2492_v56 = vadd.f32 %v2476_v27, %v2392_v26  ;;  %v2445_v62 = vpop.permute.xlu1 %2444  ;;  %v2370_v27 = vmul.f32 %v4931_v15, %v4952_v8  ;;  %v2541_v26 = vsel %vm2531_vm3, %v2520_v38, 0.0 }
 0x2af   :  { %v2475_v1 = vmul.f32 %v4946_v59, %v2445_v62 }
 0x2b0   :  { %v2512_v10 = vadd.f32 %v4959_v30, %v2492_v56  ;;  %v2293_v56 = vadd.f32 %v2277_v49, %v2177_v53 }
 0x2b1   :  { %v2491_v31 = vadd.f32 %v2475_v1, %v2391_v32  ;;  %v2386_v1 = vadd.f32 %v2370_v27, %v2286_v12 }
 0x2b2   :  { %v2528_v28 = vmax.f32 %v2512_v10, 0.0 }
 0x2b3   :  { %v2511_v4 = vadd.f32 %v4959_v30, %v2491_v31  ;;  %v2257_v43 = vpop.permute.xlu1 %2256 }
 0x2b4   :  { %v2562_v47 = vsel %vm2531_vm3, %v2528_v28, 0.0  ;;  %v2278_v31 = vmul.f32 %v4812_v18, %v2257_v43 }
 0x2b5   :  { %v2527_v24 = vmax.f32 %v2511_v4, 0.0  ;;  %v2178_v4 = vmul.f32 %v4817_v42, %v4903_v37 }
 0x2b7   :  { %v2560_v5 = vsel %vm2531_vm3, %v2527_v24, 0.0 }
 0x2b8   :  { %v2561_v40 = vadd.f32 %v2560_v5, %v2559_v19  ;;  %v2353_v21 = vpop.permute.xlu1 %2352  ;;  %v2425_v19 = vpop.permute.xlu0 %2424  ;;  %v2294_v5 = vadd.f32 %v2278_v31, %v2178_v4 }
 0x2b9   :  { %v2377_v55 = vmul.f32 %v4931_v15, %v2353_v21  ;;  %v2470_v62 = vmul.f32 %v4946_v59, %v2425_v19 }
 0x2ba   :  { %v2563_v7 = vadd.f32 %v2562_v47, %v2561_v40 }
 0x2bb   :  { %v2393_v48 = vadd.f32 %v2377_v55, %v2293_v56  ;;  %v2486_v58 = vadd.f32 %v2470_v62, %v2386_v1 }
 0x2bd   :  { %v2413_v60 = vpop.permute.xlu1 %2412  ;;  %v2506_v36 = vadd.f32 %v4959_v30, %v2486_v58 }
 0x2be   :  { %v2467_v16 = vmul.f32 %v4946_v59, %v2413_v60 }
 0x2bf   :  { %v2522_v37 = vmax.f32 %v2506_v36, 0.0 }
 0x2c0   :  { %v2483_v51 = vadd.f32 %v2467_v16, %v2383_v46 }
 0x2c1   :  { %v2545_v52 = vsel %vm2531_vm3, %v2522_v37, 0.0 }
 0x2c2   :  { %v2503_v29 = vadd.f32 %v4959_v30, %v2483_v51  ;;  %v2321_v35 = vpop.permute.xlu1 %2320 }
 0x2c4   :  { %v2519_v11 = vmax.f32 %v2503_v29, 0.0 }
 0x2c6   :  { %v2539_v23 = vsel %vm2531_vm3, %v2519_v11, 0.0  ;;  %v2357_v14 = vpop.permute.xlu1 %2356 }
 0x2c7   :  { %v2540_v54 = vadd.f32 %v2539_v23, %v2538_v20  ;;  %v2369_v20 = vmul.f32 %v4931_v15, %v2321_v35  ;;  %v2378_v28 = vmul.f32 %v4931_v15, %v2357_v14 }
 0x2c9   :  { %v2542_v17 = vadd.f32 %v2541_v26, %v2540_v54  ;;  %v2385_v34 = vadd.f32 %v2369_v20, %v4925_v9  ;;  %v2394_v40 = vadd.f32 %v2378_v28, %v2294_v5  ;;  %v20_v26 = vld [vmem:[%s5091_s1 + $0x1c] sm:$0xf] }
 0x2ca   :  { %v2595_v55 = vrot.slane %v20_v26, %v5396_v6  ;;  %v2779_v6 = vld [vmem:[%s5091_s1 + $0x20] ss:$0 sm:$0xff]  ;;  %s2828_s1 = scalar_lea.vmem %s2674_s19, 32 }
 0x2cb   :  { %v2453_v32 = vpop.permute.xlu1 %2452  ;;  %p2829_p0 = scmp.ne.s32.totalorder %s2674_s19, %s2828_s1  ;;  %p2834_p2 = scmp.lt.s32.totalorder %s2828_s1, %s2828_s1 }
 0x2cc   :  { %v2477_v10 = vmul.f32 %v4946_v59, %v2453_v32 }
 0x2cd   :  { %p2835_p3 = por %p2834_p2, %p2833_p1 }
 0x2ce   :  { %v2493_v8 = vadd.f32 %v2477_v10, %v2393_v48  ;;  %v2656_v10 = vrot.slane %v20_v26, %v5403_v50 }
 0x2cf   :  { %v2421_v44 = vpop.permute.xlu1 %2420  ;;  %p2836_p4 = pnand %p2835_p3, %p2829_p0 }
 0x2d0   :  { %v2513_v24 = vadd.f32 %v4959_v30, %v2493_v8  ;;  %v2469_v13 = vmul.f32 %v4946_v59, %v2421_v44 }
 0x2d2   :  { %v2485_v25 = vadd.f32 %v2469_v13, %v2385_v34  ;;  %v2529_v18 = vmax.f32 %v2513_v24, 0.0 }
 0x2d3   :  { %v2457_v41 = vpop.permute.xlu1 %2456 }
 0x2d4   :  { %v2505_v43 = vadd.f32 %v4959_v30, %v2485_v25  ;;  %v2478_v42 = vmul.f32 %v4946_v59, %v2457_v41  ;;  %v2564_v15 = vsel %vm2531_vm3, %v2529_v18, 0.0 }
 0x2d5   :  { %v2565_v46 = vadd.f32 %v2564_v15, %v2563_v7 }
 0x2d6   :  { %v2521_v21 = vmax.f32 %v2505_v43, 0.0  ;;  %v2494_v9 = vadd.f32 %v2478_v42, %v2394_v40 }
 0x2d8   :  { %v2543_v47 = vsel %vm2531_vm3, %v2521_v21, 0.0  ;;  %v2514_v0 = vadd.f32 %v4959_v30, %v2494_v9 }
 0x2d9   :  { %v2544_v63 = vadd.f32 %v2543_v47, %v2542_v17 }
 0x2da   :  { %v2530_v60 = vmax.f32 %v2514_v0, 0.0 }
 0x2db   :  { %v2546_v16 = vadd.f32 %v2545_v52, %v2544_v63 }
 0x2dc   :  { %v2566_v45 = vsel %vm2531_vm3, %v2530_v60, 0.0 }
 0x2dd   :  { %v2547_v51 = vrot.slane %v2546_v16, 4  ;;  %v2567_v29 = vadd.f32 %v2566_v45, %v2565_v46 }
 0x2df   :  { %v2568_v59 = vrot.slane %v2567_v29, 4  ;;  %v2548_v35 = vadd.f32 %v2547_v51, %v2546_v16 }
 0x2e1   :  { %v2569_v38 = vadd.f32 %v2568_v59, %v2567_v29  ;;  %v2549_v11 = vrot.slane %v2548_v35, 2 }
 0x2e3   :  { %v2570_v3 = vrot.slane %v2569_v38, 2  ;;  %v2550_v49 = vadd.f32 %v2549_v11, %v2548_v35 }
 0x2e5   :  { %v2571_v23 = vadd.f32 %v2570_v3, %v2569_v38  ;;  %v2551_v2 = vrot.slane %v2550_v49, 1 }
 0x2e7   :  { %v2572_v14 = vrot.slane %v2571_v23, 1  ;;  %v2552_v54 = vadd.f32 %v2551_v2, %v2550_v49 }
 0x2e9   :  { %v2573_v30 = vadd.f32 %v2572_v14, %v2571_v23  ;;  %v2575_v7 = vmul.f32 0.015625, %v2552_v54 }
 0x2eb   :  { %v2576_v19 = vmul.f32 0.015625, %v2573_v30 }
 0x2ed   :  { %2610 = vperm.xlu0 %2821, %v2576_v19   ;;  %2589 = vperm.xlu1 %2820, %v2576_v19  }
 0x2f1   :  { %2824 = vset.pattern.permute.xlu0 %v5397_v61  ;;  %2584 = vperm.xlu1 %2820, %v2575_v7  }
 0x2f2   :  { %2626 = vperm.xlu0 %2824, %v2575_v7  }
 0x2f5   :  { %2822 = vset.pattern.permute.xlu1 %v5393_v33  ;;  %v2616_v33 = vrot.slane %v20_v26, %v5394_v39 }
 0x2f6   :  { %2606 = vperm.xlu1 %2822, %v2575_v7   ;;  %2826 = vset.pattern.permute.xlu0 %v5400_v22 }
 0x2fa   :  { %2823 = vset.pattern.permute.xlu1 %v5397_v61  ;;  %v2636_v61 = vrot.slane %v20_v26, %v5402_v57 }
 0x2fb   :  { %2630 = vperm.xlu1 %2823, %v2576_v19  }
 0x2ff   :  { %2825 = vset.pattern.permute.xlu1 %v5400_v22 }
 0x300   :  { %2650 = vperm.xlu1 %2825, %v2576_v19  }
 0x304   :  { %2646 = vperm.xlu1 %2825, %v2575_v7  }
 0x36c   :  { %v2590_v53 = vpop.permute.xlu1 %2589  ;;  %v2611_v12 = vpop.permute.xlu0 %2610 }
 0x36d   :  { %v2597_v56 = vmul.f32 %v2595_v55, %v2590_v53  ;;  %v2618_v62 = vmul.f32 %v2616_v33, %v2611_v12 }
 0x36f   :  { %v2600_v48 = vrot.slane %v2597_v56, 7  ;;  %v2621_v31 = vrot.slane %v2618_v62, 7 }
 0x370   :  { %v2585_v27 = vpop.permute.xlu1 %2584 }
 0x371   :  { %v2596_v32 = vmul.f32 %v2595_v55, %v2585_v27  ;;  %v2627_v58 = vpop.permute.xlu0 %2626 }
 0x372   :  { %v2637_v57 = vmul.f32 %v2636_v61, %v2627_v58 }
 0x373   :  { %v2602_v39 = vsel %vm2601_vm4, %v2600_v48, %v2596_v32 }
 0x374   :  { %v2604_v28 = vadd.f32 %v2779_v6, %v2602_v39 }
 0x375   :  { %v2607_v17 = vpop.permute.xlu1 %2606 }
 0x376   :  { %v2617_v20 = vmul.f32 %v2616_v33, %v2607_v17 }
 0x378   :  { %v2622_v44 = vsel %vm2601_vm4, %v2621_v31, %v2617_v20 }
 0x379   :  { %v2624_v13 = vadd.f32 %v2622_v44, %v2604_v28 }
 0x37a   :  { %v2631_v22 = vpop.permute.xlu1 %2630 }
 0x37b   :  { %v2638_v1 = vmul.f32 %v2636_v61, %v2631_v22 }
 0x37d   :  { %v2641_v8 = vrot.slane %v2638_v1, 7 }
 0x37f   :  { %v2651_v4 = vpop.permute.xlu1 %2650  ;;  %v2642_v24 = vsel %vm2601_vm4, %v2641_v8, %v2637_v57 }
 0x380   :  { %v2658_v34 = vmul.f32 %v2656_v10, %v2651_v4  ;;  %v2644_v25 = vadd.f32 %v2642_v24, %v2624_v13 }
 0x382   :  { %v2661_v50 = vrot.slane %v2658_v34, 7 }
 0x383   :  { %v2647_v36 = vpop.permute.xlu1 %2646 }
 0x384   :  { %v2657_v5 = vmul.f32 %v2656_v10, %v2647_v36 }
 0x386   :  { %v2662_v41 = vsel %vm2601_vm4, %v2661_v50, %v2657_v5 }
 0x387   :  { %v2664_v40 = vadd.f32 %v2662_v41, %v2644_v25 }
 0x389   :  { %2666 = vst.msk [vmem:[#allocation2] sm:$0x3] %vm2665_vm5, %v2664_v40 }
 0x38a   :  { %2839 = shalt.err (!%p2836_p4)
}
 0x38b   :  { %s2840_s22 = scalar_lea.hbm %s5092_s2, 32 }
 0x38c   :  { %p2841_p5 = scmp.ne.s32.totalorder %s5092_s2, %s2840_s22  ;;  %p2844_p6 = scmp.lt.u32.totalorder %s2840_s22, %s5092_s2 }
 0x38e   :  { %p2846_p7 = pnand %p2844_p6, %p2841_p5 }
 0x390   :  { %2849 = shalt.err (!%p2846_p7)
}
 0x391   :  { %2676 = dma.vmem_to_hbm [thread:$0]  %s2674_s19, 32, %s5092_s2, [#allocation3]  }
 0x392   :  { %2850 = dma.done.wait [#allocation3], 32  }
 0x393   :  { %2851 = vsyncadd [#allocation3], 4294967264 }
 0x394   :  { %2680 = vsyncpa [#allocation3], 1 }

</bundles_post_ra>
